<compile_context>
chip_gen: v6e
topology: v6e:2x2x1
jax: 0.10.0
libtpu: 0.0.40
codegen_flags: <defaults>
</compile_context>

<pallas_src>
import functools

import jax
import jax.numpy as jnp
from jax.experimental import pallas as pl
from jax.experimental.pallas import tpu as pltpu


def _lstm_kernel(x_ref,       # (T*BB, D)   bf16, time-major, batch-padded block
                 wih1_ref,    # (D, 4Hp)    bf16, layer-1 input weight (i,f,o,g)
                 b1_ref,      # (1, 4Hp)    f32,  layer-1 bias (b_ih + b_hh)
                 whh1_ref,    # (Hp, 4Hp)   bf16, layer-1 recurrent weight
                 wih2_ref,    # (Hp, 4Hp)   bf16, layer-2 input weight
                 whh2_ref,    # (Hp, 4Hp)   bf16, layer-2 recurrent weight
                 b2_ref,      # (1, 4Hp)    f32,  layer-2 bias (b_ih + b_hh)
                 wfc_ref,     # (Hp, Op)    bf16, final Linear weight
                 bfc_ref,     # (1, Op)     f32,  final Linear bias
                 out_ref,     # (BB, Op)    f32
                 xp_ref):     # scratch (T*BB, 4Hp) f32: hoisted layer-1 projection
    B = out_ref.shape[0]          # batch rows in this block (multiple of 8)
    Hp = whh1_ref.shape[0]        # lane-padded hidden size (128)
    T = x_ref.shape[0] // B
    f32 = jnp.float32
    bf16 = jnp.bfloat16

    # Hoisted layer-1 input projection (+ bias): one big MXU pass, off the
    # serial path.  bf16 operands, f32 accumulate.
    xp_ref[...] = (jnp.dot(x_ref[...], wih1_ref[...],
                           preferred_element_type=f32) + b1_ref[...])

    # Hoisted bias broadcast (JAX does not CSE broadcast_in_dim in loops).
    b2 = jnp.broadcast_to(b2_ref[...], (B, 4 * Hp))

    def apply_gates(gates, c):
        # Gate columns are ordered (i, f, o, g), each starting on a 128-lane
        # boundary: one sigmoid over the contiguous 3*Hp slab, one tanh over
        # the last Hp.  All slices are full, unmasked vregs.
        sig = jax.nn.sigmoid(gates[:, :3 * Hp])
        g = jnp.tanh(gates[:, 3 * Hp:])
        i = sig[:, :Hp]
        f = sig[:, Hp:2 * Hp]
        o = sig[:, 2 * Hp:3 * Hp]
        c_new = f * c + i * g
        return o * jnp.tanh(c_new), c_new

    def l2_gates(h1, h2):
        # Layer-2 ih / hh as two separate MXU pushes: no per-step concat.
        return (jnp.dot(h1.astype(bf16), wih2_ref[...], preferred_element_type=f32)
                + jnp.dot(h2.astype(bf16), whh2_ref[...], preferred_element_type=f32)
                + b2)

    zeros = jnp.zeros((B, Hp), f32)

    # Wavefront software pipeline over the two layers.
    # Prologue: layer-1(0) (h1_{-1} = 0, so its gates are just the projection).
    h1, c1 = apply_gates(xp_ref[pl.ds(0, B), :], zeros)

    def step(t, carry):
        # carry = (h1_{t-1}, c1_{t-1}, h2_{t-2}, c2_{t-2}); layer-1(t) and
        # layer-2(t-1) both depend only on the carry, so their chains overlap.
        h1, c1, h2, c2 = carry
        row = pl.multiple_of(t * B, 8)                     # B is a multiple of 8
        gates1 = xp_ref[pl.ds(row, B), :] + jnp.dot(
            h1.astype(bf16), whh1_ref[...], preferred_element_type=f32)
        gates2 = l2_gates(h1, h2)
        h1n, c1n = apply_gates(gates1, c1)                 # layer-1(t)
        h2n, c2n = apply_gates(gates2, c2)                 # layer-2(t-1)
        return h1n, c1n, h2n, c2n

    h1, c1, h2, c2 = jax.lax.fori_loop(
        1, T, step, (h1, c1, zeros, zeros),
        unroll=True if T <= 16 else 8)     # cap unroll to avoid vreg spills at large T

    # Epilogue: layer-2(T-1), then the final Linear (lane-padded output store).
    h2, _ = apply_gates(l2_gates(h1, h2), c2)
    out_ref[...] = (jnp.dot(h2.astype(bf16), wfc_ref[...],
                            preferred_element_type=f32)
                    + bfc_ref[...]).astype(out_ref.dtype)


@functools.partial(jax.jit, static_argnames=("out_size", "num_batch_blocks"))
def lstm_forward(x, params, *, out_size, num_batch_blocks=1):
    """x: (B, T, input_size) float32, batch_first.  Returns (B, out_size)."""
    B, T, D = x.shape
    Hp = params["whh1_t"].shape[0]        # lane-padded hidden size
    G = params["whh1_t"].shape[1]         # 4 * Hp
    Op = params["wfc_t"].shape[1]         # lane-padded output size

    B_pad = ((B + 7) // 8) * 8
    nb = num_batch_blocks                 # on v7x use 2 once B_pad >= 16
    BB = B_pad // nb
    assert nb * BB == B_pad and BB % 8 == 0

    # Device-side (XLA) pad + time-major relayout + bf16 cast, fused under this
    # jit.  For very large T*B*D, fold the relayout into the kernel's read
    # pattern (per-time-chunk DMA) instead of materializing it in HBM.
    xt = jnp.zeros((T, B_pad, D), jnp.bfloat16).at[:, :B, :].set(
        jnp.transpose(x, (1, 0, 2)).astype(jnp.bfloat16))
    xb = xt.reshape(T, nb, BB, D).transpose(1, 0, 2, 3).reshape(nb, T * BB, D)

    bf = lambda a: a.astype(jnp.bfloat16)   # bf16 MXU operands, f32 accumulate
    rep = lambda shape: pl.BlockSpec(shape, lambda i: (0,) * len(shape))

    out = pl.pallas_call(
        _lstm_kernel,
        out_shape=jax.ShapeDtypeStruct((B_pad, Op), jnp.float32),
        grid=(nb,),
        in_specs=[
            pl.BlockSpec((None, T * BB, D), lambda i: (i, 0, 0)),   # x (per block)
            rep((D, G)),         # wih1
            rep((1, G)),         # b1
            rep((Hp, G)),        # whh1
            rep((Hp, G)),        # wih2
            rep((Hp, G)),        # whh2
            rep((1, G)),         # b2
            rep((Hp, Op)),       # wfc
            rep((1, Op)),        # bfc
        ],
        out_specs=pl.BlockSpec((BB, Op), lambda i: (i, 0)),
        scratch_shapes=[pltpu.VMEM((T * BB, G), jnp.float32)],
        compiler_params=pltpu.CompilerParams(
            # Batch blocks are independent; on v7x (2 TensorCores) a 2-block
            # grid uses both cores.  "parallel" is a no-op at grid=(1,).
            dimension_semantics=("parallel",),
            vmem_limit_bytes=32 * 1024 * 1024,
        ),
    )(xb,
      bf(params["wih1_t"]), params["b1"], bf(params["whh1_t"]),
      bf(params["wih2_t"]), bf(params["whh2_t"]), params["b2"],
      bf(params["wfc_t"]), params["bfc"])
    return out[:B, :out_size]


def make_params(key, input_size, hidden_size, output_size, lane=128):
    """PyTorch-default init (U(-1/sqrt(H), 1/sqrt(H))), laid out for the kernel.

    * weights pre-transposed for (B, K) @ (K, 4H) matmuls,
    * ih/hh biases pre-summed,
    * gate columns reordered from torch's (i, f, g, o) to (i, f, o, g) so one
      sigmoid / one tanh each cover a contiguous slab,
    * hidden size (and FC output) zero-padded to a full 128-lane width so every
      gate slab and state tensor is vreg-aligned.  Pad lanes stay exactly zero
      through the recurrence (pre-activations 0 -> c_pad stays 0,
      h_pad = sigmoid(0) * tanh(0) = 0), so the real columns are unchanged.
    """
    H, O = hidden_size, output_size
    Hp = ((H + lane - 1) // lane) * lane
    Op = ((O + lane - 1) // lane) * lane
    bound = 1.0 / (float(H) ** 0.5)
    ks = jax.random.split(key, 10)
    u = lambda k, shape: jax.random.uniform(k, shape, jnp.float32, -bound, bound)

    # torch layout: (4H, K) with gates stacked (i, f, g, o)
    wih1 = u(ks[0], (4 * H, input_size))
    whh1 = u(ks[1], (4 * H, H))
    b1 = u(ks[2], (4 * H,)) + u(ks[3], (4 * H,))
    wih2 = u(ks[4], (4 * H, H))
    whh2 = u(ks[5], (4 * H, H))
    b2 = u(ks[6], (4 * H,)) + u(ks[7], (4 * H,))
    wfc = u(ks[8], (O, H))
    bfc = u(ks[9], (O,))

    # (i, f, g, o) -> (i, f, o, g)
    perm = jnp.concatenate([jnp.arange(0, 2 * H),
                            jnp.arange(3 * H, 4 * H),
                            jnp.arange(2 * H, 3 * H)])

    def lstm_w(w, k_real, k_pad):
        # (4H, K) torch-order -> (K_pad, 4*Hp): reorder gates, transpose, and
        # zero-pad each gate slab to Hp columns (and the contraction dim to K_pad).
        wt = w[perm].T.reshape(k_real, 4, H)
        out = jnp.zeros((k_pad, 4, Hp), jnp.float32).at[:k_real, :, :H].set(wt)
        return out.reshape(k_pad, 4 * Hp)

    def lstm_b(b):
        bt = b[perm].reshape(1, 4, H)
        return jnp.zeros((1, 4, Hp), jnp.float32).at[:, :, :H].set(bt).reshape(1, 4 * Hp)

    return {
        "wih1_t": lstm_w(wih1, input_size, input_size),                     # (D, 4Hp)
        "b1":     lstm_b(b1),                                               # (1, 4Hp)
        "whh1_t": lstm_w(whh1, H, Hp),                                      # (Hp, 4Hp)
        "wih2_t": lstm_w(wih2, H, Hp),                                      # (Hp, 4Hp)
        "whh2_t": lstm_w(whh2, H, Hp),                                      # (Hp, 4Hp)
        "b2":     lstm_b(b2),                                               # (1, 4Hp)
        "wfc_t":  jnp.zeros((Hp, Op), jnp.float32).at[:H, :O].set(wfc.T),   # (Hp, Op)
        "bfc":    jnp.zeros((1, Op), jnp.float32).at[:, :O].set(bfc.reshape(1, O)),
    }


if __name__ == "__main__":
    B, T = 2, 8
    input_size = 16      # data_matrix.shape[0]
    hidden_size = 64     # per the reference module
    output_size = 16     # == input_size in the reference module

    key = jax.random.PRNGKey(0)
    k_x, k_p = jax.random.split(key)
    x = jax.random.uniform(k_x, (B, T, input_size), jnp.float32)  # MinMax-scaled range
    params = make_params(k_p, input_size, hidden_size, output_size)

    out = lstm_forward(x, params, out_size=output_size)
    jax.block_until_ready(out)
    assert out.shape == (B, output_size)
    print("KERNEL_OK")
</pallas_src>

<mosaic_0001>
module attributes {stable_mosaic.version = 11 : i64} {
  func.func @_lstm_kernel(%arg0: i32, %arg1: memref<1x64x16xbf16, #tpu.memory_space<vmem>>, %arg2: memref<16x512xbf16, #tpu.memory_space<vmem>>, %arg3: memref<1x512xf32, #tpu.memory_space<vmem>>, %arg4: memref<128x512xbf16, #tpu.memory_space<vmem>>, %arg5: memref<128x512xbf16, #tpu.memory_space<vmem>>, %arg6: memref<128x512xbf16, #tpu.memory_space<vmem>>, %arg7: memref<1x512xf32, #tpu.memory_space<vmem>>, %arg8: memref<128x128xbf16, #tpu.memory_space<vmem>>, %arg9: memref<1x128xf32, #tpu.memory_space<vmem>>, %arg10: memref<8x128xf32, #tpu.memory_space<vmem>>, %arg11: memref<64x512xf32, #tpu.memory_space<vmem>>) attributes {dimension_semantics = [#tpu.dimension_semantics<parallel>], iteration_bounds = array<i64: 1>, scalar_prefetch = 0 : i64, scratch_operands = 1 : i64, tpu.core_type = #tpu.core_type<tc>, window_params = [{transform_indices = @transform_0, window_bounds = array<i64: 1, 64, 16>}, {pipeline_mode = #tpu.pipeline_mode<synchronous>, transform_indices = @transform_1, window_bounds = array<i64: 16, 512>}, {pipeline_mode = #tpu.pipeline_mode<synchronous>, transform_indices = @transform_2, window_bounds = array<i64: 1, 512>}, {pipeline_mode = #tpu.pipeline_mode<synchronous>, transform_indices = @transform_3, window_bounds = array<i64: 128, 512>}, {pipeline_mode = #tpu.pipeline_mode<synchronous>, transform_indices = @transform_4, window_bounds = array<i64: 128, 512>}, {pipeline_mode = #tpu.pipeline_mode<synchronous>, transform_indices = @transform_5, window_bounds = array<i64: 128, 512>}, {pipeline_mode = #tpu.pipeline_mode<synchronous>, transform_indices = @transform_6, window_bounds = array<i64: 1, 512>}, {pipeline_mode = #tpu.pipeline_mode<synchronous>, transform_indices = @transform_7, window_bounds = array<i64: 128, 128>}, {pipeline_mode = #tpu.pipeline_mode<synchronous>, transform_indices = @transform_8, window_bounds = array<i64: 1, 128>}, {transform_indices = @transform_9, window_bounds = array<i64: 8, 128>}]} {
    %c0 = arith.constant 0 : index
    %c0_0 = arith.constant 0 : index
    %c0_1 = arith.constant 0 : index
    %0 = vector.load %arg1[%c0, %c0_0, %c0_1] : memref<1x64x16xbf16, #tpu.memory_space<vmem>>, vector<1x64x16xbf16>
    %1 = vector.shape_cast %0 : vector<1x64x16xbf16> to vector<64x16xbf16>
    %c0_2 = arith.constant 0 : index
    %c0_3 = arith.constant 0 : index
    %2 = vector.load %arg2[%c0_2, %c0_3] : memref<16x512xbf16, #tpu.memory_space<vmem>>, vector<16x512xbf16>
    %cst = arith.constant dense<0.000000e+00> : vector<64x512xf32>
    %3 = tpu.matmul %1, %2, %cst {dimension_numbers = #tpu.dot_dimension_numbers<[1], [0], [0], [1], [0, 0, 1, 1], [], []>} : vector<64x16xbf16>, vector<16x512xbf16>, vector<64x512xf32> -> vector<64x512xf32>
    %c0_4 = arith.constant 0 : index
    %c0_5 = arith.constant 0 : index
    %4 = vector.load %arg3[%c0_4, %c0_5] : memref<1x512xf32, #tpu.memory_space<vmem>>, vector<1x512xf32>
    %5 = vector.broadcast %4 : vector<1x512xf32> to vector<64x512xf32>
    %6 = arith.addf %3, %5 : vector<64x512xf32>
    %c0_6 = arith.constant 0 : index
    %c0_7 = arith.constant 0 : index
    %7 = vector.load %arg11[%c0_6, %c0_7] : memref<64x512xf32, #tpu.memory_space<vmem>>, vector<64x512xf32>
    tpu.vector_store %arg11[%c0_6, %c0_7], %6 {strides = array<i32>} : memref<64x512xf32, #tpu.memory_space<vmem>>, vector<64x512xf32>,
    %c0_8 = arith.constant 0 : index
    %c0_9 = arith.constant 0 : index
    %8 = vector.load %arg7[%c0_8, %c0_9] : memref<1x512xf32, #tpu.memory_space<vmem>>, vector<1x512xf32>
    %9 = vector.shape_cast %8 : vector<1x512xf32> to vector<1x512xf32>
    %10 = vector.broadcast %9 : vector<1x512xf32> to vector<8x512xf32>
    %cst_10 = arith.constant 0.000000e+00 : f32
    %11 = vector.broadcast %cst_10 : f32 to vector<8x128xf32>
    %c0_11 = arith.constant 0 : index
    %c0_12 = arith.constant 0 : index
    %12 = vector.load %arg11[%c0_11, %c0_12] : memref<64x512xf32, #tpu.memory_space<vmem>>, vector<8x512xf32>
    %13 = vector.extract_strided_slice %12 {offsets = [0, 0], sizes = [8, 384], strides = [1, 1]} : vector<8x512xf32> to vector<8x384xf32>
    %14 = arith.negf %13 : vector<8x384xf32>
    %15 = math.exp %14 : vector<8x384xf32>
    %cst_13 = arith.constant 1.000000e+00 : f32
    %16 = vector.broadcast %cst_13 : f32 to vector<8x384xf32>
    %17 = arith.addf %16, %15 : vector<8x384xf32>
    %18 = arith.divf %16, %17 : vector<8x384xf32>
    %19 = vector.extract_strided_slice %12 {offsets = [0, 384], sizes = [8, 128], strides = [1, 1]} : vector<8x512xf32> to vector<8x128xf32>
    %20 = math.tanh %19 : vector<8x128xf32>
    %21 = vector.extract_strided_slice %18 {offsets = [0, 0], sizes = [8, 128], strides = [1, 1]} : vector<8x384xf32> to vector<8x128xf32>
    %22 = vector.extract_strided_slice %18 {offsets = [0, 128], sizes = [8, 128], strides = [1, 1]} : vector<8x384xf32> to vector<8x128xf32>
    %23 = vector.extract_strided_slice %18 {offsets = [0, 256], sizes = [8, 128], strides = [1, 1]} : vector<8x384xf32> to vector<8x128xf32>
    %24 = arith.mulf %22, %11 : vector<8x128xf32>
    %25 = arith.mulf %21, %20 : vector<8x128xf32>
    %26 = arith.addf %24, %25 : vector<8x128xf32>
    %27 = math.tanh %26 : vector<8x128xf32>
    %28 = arith.mulf %23, %27 : vector<8x128xf32>
    %c1_i32 = arith.constant 1 : i32
    %c8_i32 = arith.constant 8 : i32
    %29 = arith.muli %c1_i32, %c8_i32 : i32
    %30 = tpu.assume_multiple %29, 8 : i32
    %31 = arith.index_cast %30 : i32 to index
    %c0_14 = arith.constant 0 : index
    %32 = vector.load %arg11[%31, %c0_14] : memref<64x512xf32, #tpu.memory_space<vmem>>, vector<8x512xf32>
    %33 = arith.truncf %28 : vector<8x128xf32> to vector<8x128xbf16>
    %c0_15 = arith.constant 0 : index
    %c0_16 = arith.constant 0 : index
    %34 = vector.load %arg4[%c0_15, %c0_16] : memref<128x512xbf16, #tpu.memory_space<vmem>>, vector<128x512xbf16>
    %cst_17 = arith.constant dense<0.000000e+00> : vector<8x512xf32>
    %35 = tpu.matmul %33, %34, %cst_17 {dimension_numbers = #tpu.dot_dimension_numbers<[1], [0], [0], [1], [0, 0, 1, 1], [], []>} : vector<8x128xbf16>, vector<128x512xbf16>, vector<8x512xf32> -> vector<8x512xf32>
    %36 = arith.addf %32, %35 : vector<8x512xf32>
    %37 = arith.truncf %28 : vector<8x128xf32> to vector<8x128xbf16>
    %c0_18 = arith.constant 0 : index
    %c0_19 = arith.constant 0 : index
    %38 = vector.load %arg5[%c0_18, %c0_19] : memref<128x512xbf16, #tpu.memory_space<vmem>>, vector<128x512xbf16>
    %cst_20 = arith.constant dense<0.000000e+00> : vector<8x512xf32>
    %39 = tpu.matmul %37, %38, %cst_20 {dimension_numbers = #tpu.dot_dimension_numbers<[1], [0], [0], [1], [0, 0, 1, 1], [], []>} : vector<8x128xbf16>, vector<128x512xbf16>, vector<8x512xf32> -> vector<8x512xf32>
    %40 = arith.truncf %11 : vector<8x128xf32> to vector<8x128xbf16>
    %c0_21 = arith.constant 0 : index
    %c0_22 = arith.constant 0 : index
    %41 = vector.load %arg6[%c0_21, %c0_22] : memref<128x512xbf16, #tpu.memory_space<vmem>>, vector<128x512xbf16>
    %cst_23 = arith.constant dense<0.000000e+00> : vector<8x512xf32>
    %42 = tpu.matmul %40, %41, %cst_23 {dimension_numbers = #tpu.dot_dimension_numbers<[1], [0], [0], [1], [0, 0, 1, 1], [], []>} : vector<8x128xbf16>, vector<128x512xbf16>, vector<8x512xf32> -> vector<8x512xf32>
    %43 = arith.addf %39, %42 : vector<8x512xf32>
    %44 = arith.addf %43, %10 : vector<8x512xf32>
    %45 = vector.extract_strided_slice %36 {offsets = [0, 0], sizes = [8, 384], strides = [1, 1]} : vector<8x512xf32> to vector<8x384xf32>
    %46 = arith.negf %45 : vector<8x384xf32>
    %47 = math.exp %46 : vector<8x384xf32>
    %cst_24 = arith.constant 1.000000e+00 : f32
    %48 = vector.broadcast %cst_24 : f32 to vector<8x384xf32>
    %49 = arith.addf %48, %47 : vector<8x384xf32>
    %50 = arith.divf %48, %49 : vector<8x384xf32>
    %51 = vector.extract_strided_slice %36 {offsets = [0, 384], sizes = [8, 128], strides = [1, 1]} : vector<8x512xf32> to vector<8x128xf32>
    %52 = math.tanh %51 : vector<8x128xf32>
    %53 = vector.extract_strided_slice %50 {offsets = [0, 0], sizes = [8, 128], strides = [1, 1]} : vector<8x384xf32> to vector<8x128xf32>
    %54 = vector.extract_strided_slice %50 {offsets = [0, 128], sizes = [8, 128], strides = [1, 1]} : vector<8x384xf32> to vector<8x128xf32>
    %55 = vector.extract_strided_slice %50 {offsets = [0, 256], sizes = [8, 128], strides = [1, 1]} : vector<8x384xf32> to vector<8x128xf32>
    %56 = arith.mulf %54, %26 : vector<8x128xf32>
    %57 = arith.mulf %53, %52 : vector<8x128xf32>
    %58 = arith.addf %56, %57 : vector<8x128xf32>
    %59 = math.tanh %58 : vector<8x128xf32>
    %60 = arith.mulf %55, %59 : vector<8x128xf32>
    %61 = vector.extract_strided_slice %44 {offsets = [0, 0], sizes = [8, 384], strides = [1, 1]} : vector<8x512xf32> to vector<8x384xf32>
    %62 = arith.negf %61 : vector<8x384xf32>
    %63 = math.exp %62 : vector<8x384xf32>
    %cst_25 = arith.constant 1.000000e+00 : f32
    %64 = vector.broadcast %cst_25 : f32 to vector<8x384xf32>
    %65 = arith.addf %64, %63 : vector<8x384xf32>
    %66 = arith.divf %64, %65 : vector<8x384xf32>
    %67 = vector.extract_strided_slice %44 {offsets = [0, 384], sizes = [8, 128], strides = [1, 1]} : vector<8x512xf32> to vector<8x128xf32>
    %68 = math.tanh %67 : vector<8x128xf32>
    %69 = vector.extract_strided_slice %66 {offsets = [0, 0], sizes = [8, 128], strides = [1, 1]} : vector<8x384xf32> to vector<8x128xf32>
    %70 = vector.extract_strided_slice %66 {offsets = [0, 128], sizes = [8, 128], strides = [1, 1]} : vector<8x384xf32> to vector<8x128xf32>
    %71 = vector.extract_strided_slice %66 {offsets = [0, 256], sizes = [8, 128], strides = [1, 1]} : vector<8x384xf32> to vector<8x128xf32>
    %72 = arith.mulf %70, %11 : vector<8x128xf32>
    %73 = arith.mulf %69, %68 : vector<8x128xf32>
    %74 = arith.addf %72, %73 : vector<8x128xf32>
    %75 = math.tanh %74 : vector<8x128xf32>
    %76 = arith.mulf %71, %75 : vector<8x128xf32>
    %c2_i32 = arith.constant 2 : i32
    %c8_i32_26 = arith.constant 8 : i32
    %77 = arith.muli %c2_i32, %c8_i32_26 : i32
    %78 = tpu.assume_multiple %77, 8 : i32
    %79 = arith.index_cast %78 : i32 to index
    %c0_27 = arith.constant 0 : index
    %80 = vector.load %arg11[%79, %c0_27] : memref<64x512xf32, #tpu.memory_space<vmem>>, vector<8x512xf32>
    %81 = arith.truncf %60 : vector<8x128xf32> to vector<8x128xbf16>
    %c0_28 = arith.constant 0 : index
    %c0_29 = arith.constant 0 : index
    %82 = vector.load %arg4[%c0_28, %c0_29] : memref<128x512xbf16, #tpu.memory_space<vmem>>, vector<128x512xbf16>
    %cst_30 = arith.constant dense<0.000000e+00> : vector<8x512xf32>
    %83 = tpu.matmul %81, %82, %cst_30 {dimension_numbers = #tpu.dot_dimension_numbers<[1], [0], [0], [1], [0, 0, 1, 1], [], []>} : vector<8x128xbf16>, vector<128x512xbf16>, vector<8x512xf32> -> vector<8x512xf32>
    %84 = arith.addf %80, %83 : vector<8x512xf32>
    %85 = arith.truncf %60 : vector<8x128xf32> to vector<8x128xbf16>
    %c0_31 = arith.constant 0 : index
    %c0_32 = arith.constant 0 : index
    %86 = vector.load %arg5[%c0_31, %c0_32] : memref<128x512xbf16, #tpu.memory_space<vmem>>, vector<128x512xbf16>
    %cst_33 = arith.constant dense<0.000000e+00> : vector<8x512xf32>
    %87 = tpu.matmul %85, %86, %cst_33 {dimension_numbers = #tpu.dot_dimension_numbers<[1], [0], [0], [1], [0, 0, 1, 1], [], []>} : vector<8x128xbf16>, vector<128x512xbf16>, vector<8x512xf32> -> vector<8x512xf32>
    %88 = arith.truncf %76 : vector<8x128xf32> to vector<8x128xbf16>
    %c0_34 = arith.constant 0 : index
    %c0_35 = arith.constant 0 : index
    %89 = vector.load %arg6[%c0_34, %c0_35] : memref<128x512xbf16, #tpu.memory_space<vmem>>, vector<128x512xbf16>
    %cst_36 = arith.constant dense<0.000000e+00> : vector<8x512xf32>
    %90 = tpu.matmul %88, %89, %cst_36 {dimension_numbers = #tpu.dot_dimension_numbers<[1], [0], [0], [1], [0, 0, 1, 1], [], []>} : vector<8x128xbf16>, vector<128x512xbf16>, vector<8x512xf32> -> vector<8x512xf32>
    %91 = arith.addf %87, %90 : vector<8x512xf32>
    %92 = arith.addf %91, %10 : vector<8x512xf32>
    %93 = vector.extract_strided_slice %84 {offsets = [0, 0], sizes = [8, 384], strides = [1, 1]} : vector<8x512xf32> to vector<8x384xf32>
    %94 = arith.negf %93 : vector<8x384xf32>
    %95 = math.exp %94 : vector<8x384xf32>
    %cst_37 = arith.constant 1.000000e+00 : f32
    %96 = vector.broadcast %cst_37 : f32 to vector<8x384xf32>
    %97 = arith.addf %96, %95 : vector<8x384xf32>
    %98 = arith.divf %96, %97 : vector<8x384xf32>
    %99 = vector.extract_strided_slice %84 {offsets = [0, 384], sizes = [8, 128], strides = [1, 1]} : vector<8x512xf32> to vector<8x128xf32>
    %100 = math.tanh %99 : vector<8x128xf32>
    %101 = vector.extract_strided_slice %98 {offsets = [0, 0], sizes = [8, 128], strides = [1, 1]} : vector<8x384xf32> to vector<8x128xf32>
    %102 = vector.extract_strided_slice %98 {offsets = [0, 128], sizes = [8, 128], strides = [1, 1]} : vector<8x384xf32> to vector<8x128xf32>
    %103 = vector.extract_strided_slice %98 {offsets = [0, 256], sizes = [8, 128], strides = [1, 1]} : vector<8x384xf32> to vector<8x128xf32>
    %104 = arith.mulf %102, %58 : vector<8x128xf32>
    %105 = arith.mulf %101, %100 : vector<8x128xf32>
    %106 = arith.addf %104, %105 : vector<8x128xf32>
    %107 = math.tanh %106 : vector<8x128xf32>
    %108 = arith.mulf %103, %107 : vector<8x128xf32>
    %109 = vector.extract_strided_slice %92 {offsets = [0, 0], sizes = [8, 384], strides = [1, 1]} : vector<8x512xf32> to vector<8x384xf32>
    %110 = arith.negf %109 : vector<8x384xf32>
    %111 = math.exp %110 : vector<8x384xf32>
    %cst_38 = arith.constant 1.000000e+00 : f32
    %112 = vector.broadcast %cst_38 : f32 to vector<8x384xf32>
    %113 = arith.addf %112, %111 : vector<8x384xf32>
    %114 = arith.divf %112, %113 : vector<8x384xf32>
    %115 = vector.extract_strided_slice %92 {offsets = [0, 384], sizes = [8, 128], strides = [1, 1]} : vector<8x512xf32> to vector<8x128xf32>
    %116 = math.tanh %115 : vector<8x128xf32>
    %117 = vector.extract_strided_slice %114 {offsets = [0, 0], sizes = [8, 128], strides = [1, 1]} : vector<8x384xf32> to vector<8x128xf32>
    %118 = vector.extract_strided_slice %114 {offsets = [0, 128], sizes = [8, 128], strides = [1, 1]} : vector<8x384xf32> to vector<8x128xf32>
    %119 = vector.extract_strided_slice %114 {offsets = [0, 256], sizes = [8, 128], strides = [1, 1]} : vector<8x384xf32> to vector<8x128xf32>
    %120 = arith.mulf %118, %74 : vector<8x128xf32>
    %121 = arith.mulf %117, %116 : vector<8x128xf32>
    %122 = arith.addf %120, %121 : vector<8x128xf32>
    %123 = math.tanh %122 : vector<8x128xf32>
    %124 = arith.mulf %119, %123 : vector<8x128xf32>
    %c3_i32 = arith.constant 3 : i32
    %c8_i32_39 = arith.constant 8 : i32
    %125 = arith.muli %c3_i32, %c8_i32_39 : i32
    %126 = tpu.assume_multiple %125, 8 : i32
    %127 = arith.index_cast %126 : i32 to index
    %c0_40 = arith.constant 0 : index
    %128 = vector.load %arg11[%127, %c0_40] : memref<64x512xf32, #tpu.memory_space<vmem>>, vector<8x512xf32>
    %129 = arith.truncf %108 : vector<8x128xf32> to vector<8x128xbf16>
    %c0_41 = arith.constant 0 : index
    %c0_42 = arith.constant 0 : index
    %130 = vector.load %arg4[%c0_41, %c0_42] : memref<128x512xbf16, #tpu.memory_space<vmem>>, vector<128x512xbf16>
    %cst_43 = arith.constant dense<0.000000e+00> : vector<8x512xf32>
    %131 = tpu.matmul %129, %130, %cst_43 {dimension_numbers = #tpu.dot_dimension_numbers<[1], [0], [0], [1], [0, 0, 1, 1], [], []>} : vector<8x128xbf16>, vector<128x512xbf16>, vector<8x512xf32> -> vector<8x512xf32>
    %132 = arith.addf %128, %131 : vector<8x512xf32>
    %133 = arith.truncf %108 : vector<8x128xf32> to vector<8x128xbf16>
    %c0_44 = arith.constant 0 : index
    %c0_45 = arith.constant 0 : index
    %134 = vector.load %arg5[%c0_44, %c0_45] : memref<128x512xbf16, #tpu.memory_space<vmem>>, vector<128x512xbf16>
    %cst_46 = arith.constant dense<0.000000e+00> : vector<8x512xf32>
    %135 = tpu.matmul %133, %134, %cst_46 {dimension_numbers = #tpu.dot_dimension_numbers<[1], [0], [0], [1], [0, 0, 1, 1], [], []>} : vector<8x128xbf16>, vector<128x512xbf16>, vector<8x512xf32> -> vector<8x512xf32>
    %136 = arith.truncf %124 : vector<8x128xf32> to vector<8x128xbf16>
    %c0_47 = arith.constant 0 : index
    %c0_48 = arith.constant 0 : index
    %137 = vector.load %arg6[%c0_47, %c0_48] : memref<128x512xbf16, #tpu.memory_space<vmem>>, vector<128x512xbf16>
    %cst_49 = arith.constant dense<0.000000e+00> : vector<8x512xf32>
    %138 = tpu.matmul %136, %137, %cst_49 {dimension_numbers = #tpu.dot_dimension_numbers<[1], [0], [0], [1], [0, 0, 1, 1], [], []>} : vector<8x128xbf16>, vector<128x512xbf16>, vector<8x512xf32> -> vector<8x512xf32>
    %139 = arith.addf %135, %138 : vector<8x512xf32>
    %140 = arith.addf %139, %10 : vector<8x512xf32>
    %141 = vector.extract_strided_slice %132 {offsets = [0, 0], sizes = [8, 384], strides = [1, 1]} : vector<8x512xf32> to vector<8x384xf32>
    %142 = arith.negf %141 : vector<8x384xf32>
    %143 = math.exp %142 : vector<8x384xf32>
    %cst_50 = arith.constant 1.000000e+00 : f32
    %144 = vector.broadcast %cst_50 : f32 to vector<8x384xf32>
    %145 = arith.addf %144, %143 : vector<8x384xf32>
    %146 = arith.divf %144, %145 : vector<8x384xf32>
    %147 = vector.extract_strided_slice %132 {offsets = [0, 384], sizes = [8, 128], strides = [1, 1]} : vector<8x512xf32> to vector<8x128xf32>
    %148 = math.tanh %147 : vector<8x128xf32>
    %149 = vector.extract_strided_slice %146 {offsets = [0, 0], sizes = [8, 128], strides = [1, 1]} : vector<8x384xf32> to vector<8x128xf32>
    %150 = vector.extract_strided_slice %146 {offsets = [0, 128], sizes = [8, 128], strides = [1, 1]} : vector<8x384xf32> to vector<8x128xf32>
    %151 = vector.extract_strided_slice %146 {offsets = [0, 256], sizes = [8, 128], strides = [1, 1]} : vector<8x384xf32> to vector<8x128xf32>
    %152 = arith.mulf %150, %106 : vector<8x128xf32>
    %153 = arith.mulf %149, %148 : vector<8x128xf32>
    %154 = arith.addf %152, %153 : vector<8x128xf32>
    %155 = math.tanh %154 : vector<8x128xf32>
    %156 = arith.mulf %151, %155 : vector<8x128xf32>
    %157 = vector.extract_strided_slice %140 {offsets = [0, 0], sizes = [8, 384], strides = [1, 1]} : vector<8x512xf32> to vector<8x384xf32>
    %158 = arith.negf %157 : vector<8x384xf32>
    %159 = math.exp %158 : vector<8x384xf32>
    %cst_51 = arith.constant 1.000000e+00 : f32
    %160 = vector.broadcast %cst_51 : f32 to vector<8x384xf32>
    %161 = arith.addf %160, %159 : vector<8x384xf32>
    %162 = arith.divf %160, %161 : vector<8x384xf32>
    %163 = vector.extract_strided_slice %140 {offsets = [0, 384], sizes = [8, 128], strides = [1, 1]} : vector<8x512xf32> to vector<8x128xf32>
    %164 = math.tanh %163 : vector<8x128xf32>
    %165 = vector.extract_strided_slice %162 {offsets = [0, 0], sizes = [8, 128], strides = [1, 1]} : vector<8x384xf32> to vector<8x128xf32>
    %166 = vector.extract_strided_slice %162 {offsets = [0, 128], sizes = [8, 128], strides = [1, 1]} : vector<8x384xf32> to vector<8x128xf32>
    %167 = vector.extract_strided_slice %162 {offsets = [0, 256], sizes = [8, 128], strides = [1, 1]} : vector<8x384xf32> to vector<8x128xf32>
    %168 = arith.mulf %166, %122 : vector<8x128xf32>
    %169 = arith.mulf %165, %164 : vector<8x128xf32>
    %170 = arith.addf %168, %169 : vector<8x128xf32>
    %171 = math.tanh %170 : vector<8x128xf32>
    %172 = arith.mulf %167, %171 : vector<8x128xf32>
    %c4_i32 = arith.constant 4 : i32
    %c8_i32_52 = arith.constant 8 : i32
    %173 = arith.muli %c4_i32, %c8_i32_52 : i32
    %174 = tpu.assume_multiple %173, 8 : i32
    %175 = arith.index_cast %174 : i32 to index
    %c0_53 = arith.constant 0 : index
    %176 = vector.load %arg11[%175, %c0_53] : memref<64x512xf32, #tpu.memory_space<vmem>>, vector<8x512xf32>
    %177 = arith.truncf %156 : vector<8x128xf32> to vector<8x128xbf16>
    %c0_54 = arith.constant 0 : index
    %c0_55 = arith.constant 0 : index
    %178 = vector.load %arg4[%c0_54, %c0_55] : memref<128x512xbf16, #tpu.memory_space<vmem>>, vector<128x512xbf16>
    %cst_56 = arith.constant dense<0.000000e+00> : vector<8x512xf32>
    %179 = tpu.matmul %177, %178, %cst_56 {dimension_numbers = #tpu.dot_dimension_numbers<[1], [0], [0], [1], [0, 0, 1, 1], [], []>} : vector<8x128xbf16>, vector<128x512xbf16>, vector<8x512xf32> -> vector<8x512xf32>
    %180 = arith.addf %176, %179 : vector<8x512xf32>
    %181 = arith.truncf %156 : vector<8x128xf32> to vector<8x128xbf16>
    %c0_57 = arith.constant 0 : index
    %c0_58 = arith.constant 0 : index
    %182 = vector.load %arg5[%c0_57, %c0_58] : memref<128x512xbf16, #tpu.memory_space<vmem>>, vector<128x512xbf16>
    %cst_59 = arith.constant dense<0.000000e+00> : vector<8x512xf32>
    %183 = tpu.matmul %181, %182, %cst_59 {dimension_numbers = #tpu.dot_dimension_numbers<[1], [0], [0], [1], [0, 0, 1, 1], [], []>} : vector<8x128xbf16>, vector<128x512xbf16>, vector<8x512xf32> -> vector<8x512xf32>
    %184 = arith.truncf %172 : vector<8x128xf32> to vector<8x128xbf16>
    %c0_60 = arith.constant 0 : index
    %c0_61 = arith.constant 0 : index
    %185 = vector.load %arg6[%c0_60, %c0_61] : memref<128x512xbf16, #tpu.memory_space<vmem>>, vector<128x512xbf16>
    %cst_62 = arith.constant dense<0.000000e+00> : vector<8x512xf32>
    %186 = tpu.matmul %184, %185, %cst_62 {dimension_numbers = #tpu.dot_dimension_numbers<[1], [0], [0], [1], [0, 0, 1, 1], [], []>} : vector<8x128xbf16>, vector<128x512xbf16>, vector<8x512xf32> -> vector<8x512xf32>
    %187 = arith.addf %183, %186 : vector<8x512xf32>
    %188 = arith.addf %187, %10 : vector<8x512xf32>
    %189 = vector.extract_strided_slice %180 {offsets = [0, 0], sizes = [8, 384], strides = [1, 1]} : vector<8x512xf32> to vector<8x384xf32>
    %190 = arith.negf %189 : vector<8x384xf32>
    %191 = math.exp %190 : vector<8x384xf32>
    %cst_63 = arith.constant 1.000000e+00 : f32
    %192 = vector.broadcast %cst_63 : f32 to vector<8x384xf32>
    %193 = arith.addf %192, %191 : vector<8x384xf32>
    %194 = arith.divf %192, %193 : vector<8x384xf32>
    %195 = vector.extract_strided_slice %180 {offsets = [0, 384], sizes = [8, 128], strides = [1, 1]} : vector<8x512xf32> to vector<8x128xf32>
    %196 = math.tanh %195 : vector<8x128xf32>
    %197 = vector.extract_strided_slice %194 {offsets = [0, 0], sizes = [8, 128], strides = [1, 1]} : vector<8x384xf32> to vector<8x128xf32>
    %198 = vector.extract_strided_slice %194 {offsets = [0, 128], sizes = [8, 128], strides = [1, 1]} : vector<8x384xf32> to vector<8x128xf32>
    %199 = vector.extract_strided_slice %194 {offsets = [0, 256], sizes = [8, 128], strides = [1, 1]} : vector<8x384xf32> to vector<8x128xf32>
    %200 = arith.mulf %198, %154 : vector<8x128xf32>
    %201 = arith.mulf %197, %196 : vector<8x128xf32>
    %202 = arith.addf %200, %201 : vector<8x128xf32>
    %203 = math.tanh %202 : vector<8x128xf32>
    %204 = arith.mulf %199, %203 : vector<8x128xf32>
    %205 = vector.extract_strided_slice %188 {offsets = [0, 0], sizes = [8, 384], strides = [1, 1]} : vector<8x512xf32> to vector<8x384xf32>
    %206 = arith.negf %205 : vector<8x384xf32>
    %207 = math.exp %206 : vector<8x384xf32>
    %cst_64 = arith.constant 1.000000e+00 : f32
    %208 = vector.broadcast %cst_64 : f32 to vector<8x384xf32>
    %209 = arith.addf %208, %207 : vector<8x384xf32>
    %210 = arith.divf %208, %209 : vector<8x384xf32>
    %211 = vector.extract_strided_slice %188 {offsets = [0, 384], sizes = [8, 128], strides = [1, 1]} : vector<8x512xf32> to vector<8x128xf32>
    %212 = math.tanh %211 : vector<8x128xf32>
    %213 = vector.extract_strided_slice %210 {offsets = [0, 0], sizes = [8, 128], strides = [1, 1]} : vector<8x384xf32> to vector<8x128xf32>
    %214 = vector.extract_strided_slice %210 {offsets = [0, 128], sizes = [8, 128], strides = [1, 1]} : vector<8x384xf32> to vector<8x128xf32>
    %215 = vector.extract_strided_slice %210 {offsets = [0, 256], sizes = [8, 128], strides = [1, 1]} : vector<8x384xf32> to vector<8x128xf32>
    %216 = arith.mulf %214, %170 : vector<8x128xf32>
    %217 = arith.mulf %213, %212 : vector<8x128xf32>
    %218 = arith.addf %216, %217 : vector<8x128xf32>
    %219 = math.tanh %218 : vector<8x128xf32>
    %220 = arith.mulf %215, %219 : vector<8x128xf32>
    %c5_i32 = arith.constant 5 : i32
    %c8_i32_65 = arith.constant 8 : i32
    %221 = arith.muli %c5_i32, %c8_i32_65 : i32
    %222 = tpu.assume_multiple %221, 8 : i32
    %223 = arith.index_cast %222 : i32 to index
    %c0_66 = arith.constant 0 : index
    %224 = vector.load %arg11[%223, %c0_66] : memref<64x512xf32, #tpu.memory_space<vmem>>, vector<8x512xf32>
    %225 = arith.truncf %204 : vector<8x128xf32> to vector<8x128xbf16>
    %c0_67 = arith.constant 0 : index
    %c0_68 = arith.constant 0 : index
    %226 = vector.load %arg4[%c0_67, %c0_68] : memref<128x512xbf16, #tpu.memory_space<vmem>>, vector<128x512xbf16>
    %cst_69 = arith.constant dense<0.000000e+00> : vector<8x512xf32>
    %227 = tpu.matmul %225, %226, %cst_69 {dimension_numbers = #tpu.dot_dimension_numbers<[1], [0], [0], [1], [0, 0, 1, 1], [], []>} : vector<8x128xbf16>, vector<128x512xbf16>, vector<8x512xf32> -> vector<8x512xf32>
    %228 = arith.addf %224, %227 : vector<8x512xf32>
    %229 = arith.truncf %204 : vector<8x128xf32> to vector<8x128xbf16>
    %c0_70 = arith.constant 0 : index
    %c0_71 = arith.constant 0 : index
    %230 = vector.load %arg5[%c0_70, %c0_71] : memref<128x512xbf16, #tpu.memory_space<vmem>>, vector<128x512xbf16>
    %cst_72 = arith.constant dense<0.000000e+00> : vector<8x512xf32>
    %231 = tpu.matmul %229, %230, %cst_72 {dimension_numbers = #tpu.dot_dimension_numbers<[1], [0], [0], [1], [0, 0, 1, 1], [], []>} : vector<8x128xbf16>, vector<128x512xbf16>, vector<8x512xf32> -> vector<8x512xf32>
    %232 = arith.truncf %220 : vector<8x128xf32> to vector<8x128xbf16>
    %c0_73 = arith.constant 0 : index
    %c0_74 = arith.constant 0 : index
    %233 = vector.load %arg6[%c0_73, %c0_74] : memref<128x512xbf16, #tpu.memory_space<vmem>>, vector<128x512xbf16>
    %cst_75 = arith.constant dense<0.000000e+00> : vector<8x512xf32>
    %234 = tpu.matmul %232, %233, %cst_75 {dimension_numbers = #tpu.dot_dimension_numbers<[1], [0], [0], [1], [0, 0, 1, 1], [], []>} : vector<8x128xbf16>, vector<128x512xbf16>, vector<8x512xf32> -> vector<8x512xf32>
    %235 = arith.addf %231, %234 : vector<8x512xf32>
    %236 = arith.addf %235, %10 : vector<8x512xf32>
    %237 = vector.extract_strided_slice %228 {offsets = [0, 0], sizes = [8, 384], strides = [1, 1]} : vector<8x512xf32> to vector<8x384xf32>
    %238 = arith.negf %237 : vector<8x384xf32>
    %239 = math.exp %238 : vector<8x384xf32>
    %cst_76 = arith.constant 1.000000e+00 : f32
    %240 = vector.broadcast %cst_76 : f32 to vector<8x384xf32>
    %241 = arith.addf %240, %239 : vector<8x384xf32>
    %242 = arith.divf %240, %241 : vector<8x384xf32>
    %243 = vector.extract_strided_slice %228 {offsets = [0, 384], sizes = [8, 128], strides = [1, 1]} : vector<8x512xf32> to vector<8x128xf32>
    %244 = math.tanh %243 : vector<8x128xf32>
    %245 = vector.extract_strided_slice %242 {offsets = [0, 0], sizes = [8, 128], strides = [1, 1]} : vector<8x384xf32> to vector<8x128xf32>
    %246 = vector.extract_strided_slice %242 {offsets = [0, 128], sizes = [8, 128], strides = [1, 1]} : vector<8x384xf32> to vector<8x128xf32>
    %247 = vector.extract_strided_slice %242 {offsets = [0, 256], sizes = [8, 128], strides = [1, 1]} : vector<8x384xf32> to vector<8x128xf32>
    %248 = arith.mulf %246, %202 : vector<8x128xf32>
    %249 = arith.mulf %245, %244 : vector<8x128xf32>
    %250 = arith.addf %248, %249 : vector<8x128xf32>
    %251 = math.tanh %250 : vector<8x128xf32>
    %252 = arith.mulf %247, %251 : vector<8x128xf32>
    %253 = vector.extract_strided_slice %236 {offsets = [0, 0], sizes = [8, 384], strides = [1, 1]} : vector<8x512xf32> to vector<8x384xf32>
    %254 = arith.negf %253 : vector<8x384xf32>
    %255 = math.exp %254 : vector<8x384xf32>
    %cst_77 = arith.constant 1.000000e+00 : f32
    %256 = vector.broadcast %cst_77 : f32 to vector<8x384xf32>
    %257 = arith.addf %256, %255 : vector<8x384xf32>
    %258 = arith.divf %256, %257 : vector<8x384xf32>
    %259 = vector.extract_strided_slice %236 {offsets = [0, 384], sizes = [8, 128], strides = [1, 1]} : vector<8x512xf32> to vector<8x128xf32>
    %260 = math.tanh %259 : vector<8x128xf32>
    %261 = vector.extract_strided_slice %258 {offsets = [0, 0], sizes = [8, 128], strides = [1, 1]} : vector<8x384xf32> to vector<8x128xf32>
    %262 = vector.extract_strided_slice %258 {offsets = [0, 128], sizes = [8, 128], strides = [1, 1]} : vector<8x384xf32> to vector<8x128xf32>
    %263 = vector.extract_strided_slice %258 {offsets = [0, 256], sizes = [8, 128], strides = [1, 1]} : vector<8x384xf32> to vector<8x128xf32>
    %264 = arith.mulf %262, %218 : vector<8x128xf32>
    %265 = arith.mulf %261, %260 : vector<8x128xf32>
    %266 = arith.addf %264, %265 : vector<8x128xf32>
    %267 = math.tanh %266 : vector<8x128xf32>
    %268 = arith.mulf %263, %267 : vector<8x128xf32>
    %c6_i32 = arith.constant 6 : i32
    %c8_i32_78 = arith.constant 8 : i32
    %269 = arith.muli %c6_i32, %c8_i32_78 : i32
    %270 = tpu.assume_multiple %269, 8 : i32
    %271 = arith.index_cast %270 : i32 to index
    %c0_79 = arith.constant 0 : index
    %272 = vector.load %arg11[%271, %c0_79] : memref<64x512xf32, #tpu.memory_space<vmem>>, vector<8x512xf32>
    %273 = arith.truncf %252 : vector<8x128xf32> to vector<8x128xbf16>
    %c0_80 = arith.constant 0 : index
    %c0_81 = arith.constant 0 : index
    %274 = vector.load %arg4[%c0_80, %c0_81] : memref<128x512xbf16, #tpu.memory_space<vmem>>, vector<128x512xbf16>
    %cst_82 = arith.constant dense<0.000000e+00> : vector<8x512xf32>
    %275 = tpu.matmul %273, %274, %cst_82 {dimension_numbers = #tpu.dot_dimension_numbers<[1], [0], [0], [1], [0, 0, 1, 1], [], []>} : vector<8x128xbf16>, vector<128x512xbf16>, vector<8x512xf32> -> vector<8x512xf32>
    %276 = arith.addf %272, %275 : vector<8x512xf32>
    %277 = arith.truncf %252 : vector<8x128xf32> to vector<8x128xbf16>
    %c0_83 = arith.constant 0 : index
    %c0_84 = arith.constant 0 : index
    %278 = vector.load %arg5[%c0_83, %c0_84] : memref<128x512xbf16, #tpu.memory_space<vmem>>, vector<128x512xbf16>
    %cst_85 = arith.constant dense<0.000000e+00> : vector<8x512xf32>
    %279 = tpu.matmul %277, %278, %cst_85 {dimension_numbers = #tpu.dot_dimension_numbers<[1], [0], [0], [1], [0, 0, 1, 1], [], []>} : vector<8x128xbf16>, vector<128x512xbf16>, vector<8x512xf32> -> vector<8x512xf32>
    %280 = arith.truncf %268 : vector<8x128xf32> to vector<8x128xbf16>
    %c0_86 = arith.constant 0 : index
    %c0_87 = arith.constant 0 : index
    %281 = vector.load %arg6[%c0_86, %c0_87] : memref<128x512xbf16, #tpu.memory_space<vmem>>, vector<128x512xbf16>
    %cst_88 = arith.constant dense<0.000000e+00> : vector<8x512xf32>
    %282 = tpu.matmul %280, %281, %cst_88 {dimension_numbers = #tpu.dot_dimension_numbers<[1], [0], [0], [1], [0, 0, 1, 1], [], []>} : vector<8x128xbf16>, vector<128x512xbf16>, vector<8x512xf32> -> vector<8x512xf32>
    %283 = arith.addf %279, %282 : vector<8x512xf32>
    %284 = arith.addf %283, %10 : vector<8x512xf32>
    %285 = vector.extract_strided_slice %276 {offsets = [0, 0], sizes = [8, 384], strides = [1, 1]} : vector<8x512xf32> to vector<8x384xf32>
    %286 = arith.negf %285 : vector<8x384xf32>
    %287 = math.exp %286 : vector<8x384xf32>
    %cst_89 = arith.constant 1.000000e+00 : f32
    %288 = vector.broadcast %cst_89 : f32 to vector<8x384xf32>
    %289 = arith.addf %288, %287 : vector<8x384xf32>
    %290 = arith.divf %288, %289 : vector<8x384xf32>
    %291 = vector.extract_strided_slice %276 {offsets = [0, 384], sizes = [8, 128], strides = [1, 1]} : vector<8x512xf32> to vector<8x128xf32>
    %292 = math.tanh %291 : vector<8x128xf32>
    %293 = vector.extract_strided_slice %290 {offsets = [0, 0], sizes = [8, 128], strides = [1, 1]} : vector<8x384xf32> to vector<8x128xf32>
    %294 = vector.extract_strided_slice %290 {offsets = [0, 128], sizes = [8, 128], strides = [1, 1]} : vector<8x384xf32> to vector<8x128xf32>
    %295 = vector.extract_strided_slice %290 {offsets = [0, 256], sizes = [8, 128], strides = [1, 1]} : vector<8x384xf32> to vector<8x128xf32>
    %296 = arith.mulf %294, %250 : vector<8x128xf32>
    %297 = arith.mulf %293, %292 : vector<8x128xf32>
    %298 = arith.addf %296, %297 : vector<8x128xf32>
    %299 = math.tanh %298 : vector<8x128xf32>
    %300 = arith.mulf %295, %299 : vector<8x128xf32>
    %301 = vector.extract_strided_slice %284 {offsets = [0, 0], sizes = [8, 384], strides = [1, 1]} : vector<8x512xf32> to vector<8x384xf32>
    %302 = arith.negf %301 : vector<8x384xf32>
    %303 = math.exp %302 : vector<8x384xf32>
    %cst_90 = arith.constant 1.000000e+00 : f32
    %304 = vector.broadcast %cst_90 : f32 to vector<8x384xf32>
    %305 = arith.addf %304, %303 : vector<8x384xf32>
    %306 = arith.divf %304, %305 : vector<8x384xf32>
    %307 = vector.extract_strided_slice %284 {offsets = [0, 384], sizes = [8, 128], strides = [1, 1]} : vector<8x512xf32> to vector<8x128xf32>
    %308 = math.tanh %307 : vector<8x128xf32>
    %309 = vector.extract_strided_slice %306 {offsets = [0, 0], sizes = [8, 128], strides = [1, 1]} : vector<8x384xf32> to vector<8x128xf32>
    %310 = vector.extract_strided_slice %306 {offsets = [0, 128], sizes = [8, 128], strides = [1, 1]} : vector<8x384xf32> to vector<8x128xf32>
    %311 = vector.extract_strided_slice %306 {offsets = [0, 256], sizes = [8, 128], strides = [1, 1]} : vector<8x384xf32> to vector<8x128xf32>
    %312 = arith.mulf %310, %266 : vector<8x128xf32>
    %313 = arith.mulf %309, %308 : vector<8x128xf32>
    %314 = arith.addf %312, %313 : vector<8x128xf32>
    %315 = math.tanh %314 : vector<8x128xf32>
    %316 = arith.mulf %311, %315 : vector<8x128xf32>
    %c7_i32 = arith.constant 7 : i32
    %c8_i32_91 = arith.constant 8 : i32
    %317 = arith.muli %c7_i32, %c8_i32_91 : i32
    %318 = tpu.assume_multiple %317, 8 : i32
    %319 = arith.index_cast %318 : i32 to index
    %c0_92 = arith.constant 0 : index
    %320 = vector.load %arg11[%319, %c0_92] : memref<64x512xf32, #tpu.memory_space<vmem>>, vector<8x512xf32>
    %321 = arith.truncf %300 : vector<8x128xf32> to vector<8x128xbf16>
    %c0_93 = arith.constant 0 : index
    %c0_94 = arith.constant 0 : index
    %322 = vector.load %arg4[%c0_93, %c0_94] : memref<128x512xbf16, #tpu.memory_space<vmem>>, vector<128x512xbf16>
    %cst_95 = arith.constant dense<0.000000e+00> : vector<8x512xf32>
    %323 = tpu.matmul %321, %322, %cst_95 {dimension_numbers = #tpu.dot_dimension_numbers<[1], [0], [0], [1], [0, 0, 1, 1], [], []>} : vector<8x128xbf16>, vector<128x512xbf16>, vector<8x512xf32> -> vector<8x512xf32>
    %324 = arith.addf %320, %323 : vector<8x512xf32>
    %325 = arith.truncf %300 : vector<8x128xf32> to vector<8x128xbf16>
    %c0_96 = arith.constant 0 : index
    %c0_97 = arith.constant 0 : index
    %326 = vector.load %arg5[%c0_96, %c0_97] : memref<128x512xbf16, #tpu.memory_space<vmem>>, vector<128x512xbf16>
    %cst_98 = arith.constant dense<0.000000e+00> : vector<8x512xf32>
    %327 = tpu.matmul %325, %326, %cst_98 {dimension_numbers = #tpu.dot_dimension_numbers<[1], [0], [0], [1], [0, 0, 1, 1], [], []>} : vector<8x128xbf16>, vector<128x512xbf16>, vector<8x512xf32> -> vector<8x512xf32>
    %328 = arith.truncf %316 : vector<8x128xf32> to vector<8x128xbf16>
    %c0_99 = arith.constant 0 : index
    %c0_100 = arith.constant 0 : index
    %329 = vector.load %arg6[%c0_99, %c0_100] : memref<128x512xbf16, #tpu.memory_space<vmem>>, vector<128x512xbf16>
    %cst_101 = arith.constant dense<0.000000e+00> : vector<8x512xf32>
    %330 = tpu.matmul %328, %329, %cst_101 {dimension_numbers = #tpu.dot_dimension_numbers<[1], [0], [0], [1], [0, 0, 1, 1], [], []>} : vector<8x128xbf16>, vector<128x512xbf16>, vector<8x512xf32> -> vector<8x512xf32>
    %331 = arith.addf %327, %330 : vector<8x512xf32>
    %332 = arith.addf %331, %10 : vector<8x512xf32>
    %333 = vector.extract_strided_slice %324 {offsets = [0, 0], sizes = [8, 384], strides = [1, 1]} : vector<8x512xf32> to vector<8x384xf32>
    %334 = arith.negf %333 : vector<8x384xf32>
    %335 = math.exp %334 : vector<8x384xf32>
    %cst_102 = arith.constant 1.000000e+00 : f32
    %336 = vector.broadcast %cst_102 : f32 to vector<8x384xf32>
    %337 = arith.addf %336, %335 : vector<8x384xf32>
    %338 = arith.divf %336, %337 : vector<8x384xf32>
    %339 = vector.extract_strided_slice %324 {offsets = [0, 384], sizes = [8, 128], strides = [1, 1]} : vector<8x512xf32> to vector<8x128xf32>
    %340 = math.tanh %339 : vector<8x128xf32>
    %341 = vector.extract_strided_slice %338 {offsets = [0, 0], sizes = [8, 128], strides = [1, 1]} : vector<8x384xf32> to vector<8x128xf32>
    %342 = vector.extract_strided_slice %338 {offsets = [0, 128], sizes = [8, 128], strides = [1, 1]} : vector<8x384xf32> to vector<8x128xf32>
    %343 = vector.extract_strided_slice %338 {offsets = [0, 256], sizes = [8, 128], strides = [1, 1]} : vector<8x384xf32> to vector<8x128xf32>
    %344 = arith.mulf %342, %298 : vector<8x128xf32>
    %345 = arith.mulf %341, %340 : vector<8x128xf32>
    %346 = arith.addf %344, %345 : vector<8x128xf32>
    %347 = math.tanh %346 : vector<8x128xf32>
    %348 = arith.mulf %343, %347 : vector<8x128xf32>
    %349 = vector.extract_strided_slice %332 {offsets = [0, 0], sizes = [8, 384], strides = [1, 1]} : vector<8x512xf32> to vector<8x384xf32>
    %350 = arith.negf %349 : vector<8x384xf32>
    %351 = math.exp %350 : vector<8x384xf32>
    %cst_103 = arith.constant 1.000000e+00 : f32
    %352 = vector.broadcast %cst_103 : f32 to vector<8x384xf32>
    %353 = arith.addf %352, %351 : vector<8x384xf32>
    %354 = arith.divf %352, %353 : vector<8x384xf32>
    %355 = vector.extract_strided_slice %332 {offsets = [0, 384], sizes = [8, 128], strides = [1, 1]} : vector<8x512xf32> to vector<8x128xf32>
    %356 = math.tanh %355 : vector<8x128xf32>
    %357 = vector.extract_strided_slice %354 {offsets = [0, 0], sizes = [8, 128], strides = [1, 1]} : vector<8x384xf32> to vector<8x128xf32>
    %358 = vector.extract_strided_slice %354 {offsets = [0, 128], sizes = [8, 128], strides = [1, 1]} : vector<8x384xf32> to vector<8x128xf32>
    %359 = vector.extract_strided_slice %354 {offsets = [0, 256], sizes = [8, 128], strides = [1, 1]} : vector<8x384xf32> to vector<8x128xf32>
    %360 = arith.mulf %358, %314 : vector<8x128xf32>
    %361 = arith.mulf %357, %356 : vector<8x128xf32>
    %362 = arith.addf %360, %361 : vector<8x128xf32>
    %363 = math.tanh %362 : vector<8x128xf32>
    %364 = arith.mulf %359, %363 : vector<8x128xf32>
    %c7_i32_104 = arith.constant 7 : i32
    %365 = arith.truncf %348 : vector<8x128xf32> to vector<8x128xbf16>
    %c0_105 = arith.constant 0 : index
    %c0_106 = arith.constant 0 : index
    %366 = vector.load %arg5[%c0_105, %c0_106] : memref<128x512xbf16, #tpu.memory_space<vmem>>, vector<128x512xbf16>
    %cst_107 = arith.constant dense<0.000000e+00> : vector<8x512xf32>
    %367 = tpu.matmul %365, %366, %cst_107 {dimension_numbers = #tpu.dot_dimension_numbers<[1], [0], [0], [1], [0, 0, 1, 1], [], []>} : vector<8x128xbf16>, vector<128x512xbf16>, vector<8x512xf32> -> vector<8x512xf32>
    %368 = arith.truncf %364 : vector<8x128xf32> to vector<8x128xbf16>
    %c0_108 = arith.constant 0 : index
    %c0_109 = arith.constant 0 : index
    %369 = vector.load %arg6[%c0_108, %c0_109] : memref<128x512xbf16, #tpu.memory_space<vmem>>, vector<128x512xbf16>
    %cst_110 = arith.constant dense<0.000000e+00> : vector<8x512xf32>
    %370 = tpu.matmul %368, %369, %cst_110 {dimension_numbers = #tpu.dot_dimension_numbers<[1], [0], [0], [1], [0, 0, 1, 1], [], []>} : vector<8x128xbf16>, vector<128x512xbf16>, vector<8x512xf32> -> vector<8x512xf32>
    %371 = arith.addf %367, %370 : vector<8x512xf32>
    %372 = arith.addf %371, %10 : vector<8x512xf32>
    %373 = vector.extract_strided_slice %372 {offsets = [0, 0], sizes = [8, 384], strides = [1, 1]} : vector<8x512xf32> to vector<8x384xf32>
    %374 = arith.negf %373 : vector<8x384xf32>
    %375 = math.exp %374 : vector<8x384xf32>
    %cst_111 = arith.constant 1.000000e+00 : f32
    %376 = vector.broadcast %cst_111 : f32 to vector<8x384xf32>
    %377 = arith.addf %376, %375 : vector<8x384xf32>
    %378 = arith.divf %376, %377 : vector<8x384xf32>
    %379 = vector.extract_strided_slice %372 {offsets = [0, 384], sizes = [8, 128], strides = [1, 1]} : vector<8x512xf32> to vector<8x128xf32>
    %380 = math.tanh %379 : vector<8x128xf32>
    %381 = vector.extract_strided_slice %378 {offsets = [0, 0], sizes = [8, 128], strides = [1, 1]} : vector<8x384xf32> to vector<8x128xf32>
    %382 = vector.extract_strided_slice %378 {offsets = [0, 128], sizes = [8, 128], strides = [1, 1]} : vector<8x384xf32> to vector<8x128xf32>
    %383 = vector.extract_strided_slice %378 {offsets = [0, 256], sizes = [8, 128], strides = [1, 1]} : vector<8x384xf32> to vector<8x128xf32>
    %384 = arith.mulf %382, %362 : vector<8x128xf32>
    %385 = arith.mulf %381, %380 : vector<8x128xf32>
    %386 = arith.addf %384, %385 : vector<8x128xf32>
    %387 = math.tanh %386 : vector<8x128xf32>
    %388 = arith.mulf %383, %387 : vector<8x128xf32>
    %389 = arith.truncf %388 : vector<8x128xf32> to vector<8x128xbf16>
    %c0_112 = arith.constant 0 : index
    %c0_113 = arith.constant 0 : index
    %390 = vector.load %arg8[%c0_112, %c0_113] : memref<128x128xbf16, #tpu.memory_space<vmem>>, vector<128x128xbf16>
    %cst_114 = arith.constant dense<0.000000e+00> : vector<8x128xf32>
    %391 = tpu.matmul %389, %390, %cst_114 {dimension_numbers = #tpu.dot_dimension_numbers<[1], [0], [0], [1], [0, 0, 1, 1], [], []>} : vector<8x128xbf16>, vector<128x128xbf16>, vector<8x128xf32> -> vector<8x128xf32>
    %c0_115 = arith.constant 0 : index
    %c0_116 = arith.constant 0 : index
    %392 = vector.load %arg9[%c0_115, %c0_116] : memref<1x128xf32, #tpu.memory_space<vmem>>, vector<1x128xf32>
    %393 = vector.broadcast %392 : vector<1x128xf32> to vector<8x128xf32>
    %394 = arith.addf %391, %393 : vector<8x128xf32>
    %c0_117 = arith.constant 0 : index
    %c0_118 = arith.constant 0 : index
    %395 = vector.load %arg10[%c0_117, %c0_118] : memref<8x128xf32, #tpu.memory_space<vmem>>, vector<8x128xf32>
    tpu.vector_store %arg10[%c0_117, %c0_118], %394 {strides = array<i32>} : memref<8x128xf32, #tpu.memory_space<vmem>>, vector<8x128xf32>,
    return
  }
  func.func @transform_0(%arg0: i32) -> (i32, i32, i32) {
    %c0_i32 = arith.constant 0 : i32
    %c0_i32_0 = arith.constant 0 : i32
    %c0_i32_1 = arith.constant 0 : i32
    return %arg0, %c0_i32, %c0_i32_0 : i32, i32, i32
  }
  func.func @transform_1(%arg0: i32) -> (i32, i32) {
    %c0_i32 = arith.constant 0 : i32
    %c0_i32_0 = arith.constant 0 : i32
    %c0_i32_1 = arith.constant 0 : i32
    return %c0_i32, %c0_i32_0 : i32, i32
  }
  func.func @transform_2(%arg0: i32) -> (i32, i32) {
    %c0_i32 = arith.constant 0 : i32
    %c0_i32_0 = arith.constant 0 : i32
    %c0_i32_1 = arith.constant 0 : i32
    return %c0_i32, %c0_i32_0 : i32, i32
  }
  func.func @transform_3(%arg0: i32) -> (i32, i32) {
    %c0_i32 = arith.constant 0 : i32
    %c0_i32_0 = arith.constant 0 : i32
    %c0_i32_1 = arith.constant 0 : i32
    return %c0_i32, %c0_i32_0 : i32, i32
  }
  func.func @transform_4(%arg0: i32) -> (i32, i32) {
    %c0_i32 = arith.constant 0 : i32
    %c0_i32_0 = arith.constant 0 : i32
    %c0_i32_1 = arith.constant 0 : i32
    return %c0_i32, %c0_i32_0 : i32, i32
  }
  func.func @transform_5(%arg0: i32) -> (i32, i32) {
    %c0_i32 = arith.constant 0 : i32
    %c0_i32_0 = arith.constant 0 : i32
    %c0_i32_1 = arith.constant 0 : i32
    return %c0_i32, %c0_i32_0 : i32, i32
  }
  func.func @transform_6(%arg0: i32) -> (i32, i32) {
    %c0_i32 = arith.constant 0 : i32
    %c0_i32_0 = arith.constant 0 : i32
    %c0_i32_1 = arith.constant 0 : i32
    return %c0_i32, %c0_i32_0 : i32, i32
  }
  func.func @transform_7(%arg0: i32) -> (i32, i32) {
    %c0_i32 = arith.constant 0 : i32
    %c0_i32_0 = arith.constant 0 : i32
    %c0_i32_1 = arith.constant 0 : i32
    return %c0_i32, %c0_i32_0 : i32, i32
  }
  func.func @transform_8(%arg0: i32) -> (i32, i32) {
    %c0_i32 = arith.constant 0 : i32
    %c0_i32_0 = arith.constant 0 : i32
    %c0_i32_1 = arith.constant 0 : i32
    return %c0_i32, %c0_i32_0 : i32, i32
  }
  func.func @transform_9(%arg0: i32) -> (i32, i32) {
    %c0_i32 = arith.constant 0 : i32
    %c0_i32_0 = arith.constant 0 : i32
    return %arg0, %c0_i32 : i32, i32
  }
}

</mosaic_0001>

<bundles_post_ra>
// kernel: lstm_forward.1
= control target key start
LH: loop header
LB: loop body
LE: loop exit
PB: predicated region body
PF: predicated region fallthrough
CT: control target
= control target key end

     0   :  { %v6875_v1 = vmov 0   ;;  %vm107_vm0 = vcmask 130048   ;;  %v47_v43 = vlaneseq  ;;  %vm4231_vm1 = vmmov 0   ;;  %s6861_s1 = inlined_call_operand.vmem [shape: bf16[16,512], index: 1, kind: input, shape index: {}]   ;;  %s6862_s0 = inlined_call_operand.vmem [shape: bf16[1,64,16], index: 0, kind: input, shape index: {}]   ;;  %s6863_s3 = inlined_call_operand.vmem [shape: bf16[128,512], index: 3, kind: input, shape index: {}]   ;;  %s6864_s5 = inlined_call_operand.vmem [shape: bf16[128,512], index: 5, kind: input, shape index: {}]   ;;  %s6865_s4 = inlined_call_operand.vmem [shape: bf16[128,512], index: 4, kind: input, shape index: {}]   ;;  %s6866_s2 = inlined_call_operand.vmem [shape: f32[1,512], index: 2, kind: input, shape index: {}]   ;;  %s6867_s6 = inlined_call_operand.vmem [shape: f32[1,512], index: 6, kind: input, shape index: {}]   ;;  %s6868_s7 = inlined_call_operand.vmem [shape: bf16[128,128], index: 7, kind: input, shape index: {}]   ;;  %s6869_s8 = inlined_call_operand.vmem [shape: f32[1,128], index: 8, kind: input, shape index: {}]   ;;  %s6870_s9 = inlined_call_operand.vmem [shape: f32[8,128], index: 9, kind: output, shape index: {}]  }
   0x1   :  { %v3619_v0 = vld [vmem:[%s6861_s1 + $0x4] ss:$16 sps:$4 sm:$0xff]   ;;  %152 = vmatprep.mubr.bf16.mxu0 %v6875_v1  ;;  %225 = vmatprep.mubr.bf16.mxu1 %v6875_v1  ;;  %v3621_v2 = vld [vmem:[%s6861_s1] ss:$16 sps:$4 sm:$0xff]   ;;  %v3623_v4 = vld [vmem:[%s6861_s1 + $0xc] ss:$16 sps:$4 sm:$0xff]  }
   0x2   :  { %134 = vmatprep.subr.bf16.mxu0 %v3619_v0  ;;  %v3622_v3 = vld [vmem:[%s6862_s0] sm:$0xff]   ;;  %v3625_v5 = vld [vmem:[%s6861_s1 + $0x8] ss:$16 sps:$4 sm:$0xff]   ;;  %207 = vmatprep.subr.bf16.mxu1 %v3623_v4  ;;  %v4311_v7 = vld [vmem:[%s6863_s3 + $0xec] ss:$16 sps:$4 sm:$0xff]   ;;  %v4528_v44 = vshrl.u32 %v47_v43, 7 }
   0x3   :  { %135 = vmatpush1.bf16.msra.mxu0 %v3621_v2  ;;  %208 = vmatpush1.bf16.msra.mxu1 %v3625_v5  ;;  %v4306_v6 = vld [vmem:[%s6863_s3 + $0xe4] ss:$16 sps:$4 sm:$0xff]   ;;  %v4317_v8 = vld [vmem:[%s6863_s3 + $0xe0] ss:$16 sps:$4 sm:$0xff]   ;;  %v4322_v9 = vld [vmem:[%s6863_s3 + $0xe8] ss:$16 sps:$4 sm:$0xff]  }
   0x4   :  { %548 = vmatprep.subr.bf16.mxu0 %v4306_v6  ;;  %589 = vmatprep.subr.bf16.mxu1 %v4311_v7  ;;  %v3632_v10 = vld [vmem:[%s6862_s0 + $0x8] sm:$0xff]   ;;  %v4333_v11 = vld [vmem:[%s6863_s3 + $0xc4] ss:$16 sps:$4 sm:$0xff]   ;;  %v4344_v13 = vld [vmem:[%s6863_s3 + $0xc0] ss:$16 sps:$4 sm:$0xff]   ;;  %v6874_v45 = vsub.s32 0, %v4528_v44 }
   0x5   :  { %v4338_v12 = vld [vmem:[%s6863_s3 + $0xcc] ss:$16 sps:$4 sm:$0xff]   ;;  %v4349_v14 = vld [vmem:[%s6863_s3 + $0xc8] ss:$16 sps:$4 sm:$0xff]   ;;  %v4361_v15 = vld [vmem:[%s6863_s3 + $0xa4] ss:$16 sps:$4 sm:$0xff]  }
   0x6   :  { %3426 = vmatmul.mubr.msk.bf16.vlgmr.msra.gmra.mxu0 %vm107_vm0, %v3622_v3  ;;  %3430 = vmatmul.mubr.msk.bf16.vlgmr.msra.gmra.mxu1 %vm107_vm0, %v3622_v3  ;;  %v4366_v16 = vld [vmem:[%s6863_s3 + $0xac] ss:$16 sps:$4 sm:$0xff]   ;;  %v4371_v17 = vld [vmem:[%s6863_s3 + $0xa0] ss:$16 sps:$4 sm:$0xff]   ;;  %v4376_v18 = vld [vmem:[%s6863_s3 + $0xa8] ss:$16 sps:$4 sm:$0xff]  }
   0x7   :  { %162 = vmatprep.mubr.bf16.mxu0 %v6875_v1  ;;  %235 = vmatprep.mubr.bf16.mxu1 %v6875_v1  ;;  %v3645_v19 = vld [vmem:[%s6862_s0 + $0x10] sm:$0xff]   ;;  %v4393_v21 = vld [vmem:[%s6863_s3 + $0x8c] ss:$16 sps:$4 sm:$0xff]   ;;  %v4404_v23 = vld [vmem:[%s6863_s3 + $0x88] ss:$16 sps:$4 sm:$0xff]   ;;  %v6873_v47 = vsub.s32 1, %v4528_v44 }
   0x8   :  { %549 = vmatpush1.bf16.msra.mxu0 %v4317_v8  ;;  %590 = vmatpush1.bf16.msra.mxu1 %v4322_v9  ;;  %v4388_v20 = vld [vmem:[%s6863_s3 + $0x84] ss:$16 sps:$4 sm:$0xff]   ;;  %v4399_v22 = vld [vmem:[%s6863_s3 + $0x80] ss:$16 sps:$4 sm:$0xff]   ;;  %v4421_v25 = vld [vmem:[%s6863_s3 + $0x6c] ss:$16 sps:$4 sm:$0xff]  }
   0x9   :  { %550 = vmatprep.subr.bf16.mxu0 %v4333_v11  ;;  %591 = vmatprep.subr.bf16.mxu1 %v4338_v12  ;;  %v4416_v24 = vld [vmem:[%s6863_s3 + $0x64] ss:$16 sps:$4 sm:$0xff]   ;;  %v4426_v26 = vld [vmem:[%s6863_s3 + $0x60] ss:$16 sps:$4 sm:$0xff]   ;;  %v4431_v27 = vld [vmem:[%s6863_s3 + $0x68] ss:$16 sps:$4 sm:$0xff]  }
   0xa   :  { %v3658_v28 = vld [vmem:[%s6862_s0 + $0x18] sm:$0xff]   ;;  %v4441_v29 = vld [vmem:[%s6863_s3 + $0x44] ss:$16 sps:$4 sm:$0xff]   ;;  %v4453_v31 = vld [vmem:[%s6863_s3 + $0x40] ss:$16 sps:$4 sm:$0xff]   ;;  %v6872_v55 = vsub.s32 2, %v4528_v44 }
   0xb   :  { %v4446_v30 = vld [vmem:[%s6863_s3 + $0x4c] ss:$16 sps:$4 sm:$0xff]   ;;  %v4458_v32 = vld [vmem:[%s6863_s3 + $0x48] ss:$16 sps:$4 sm:$0xff]   ;;  %v4465_v33 = vld [vmem:[%s6863_s3 + $0x24] ss:$16 sps:$4 sm:$0xff]  }
   0xc   :  { %551 = vmatpush1.bf16.msra.mxu0 %v4344_v13  ;;  %592 = vmatpush1.bf16.msra.mxu1 %v4349_v14  ;;  %v4470_v34 = vld [vmem:[%s6863_s3 + $0x2c] ss:$16 sps:$4 sm:$0xff]   ;;  %v4477_v35 = vld [vmem:[%s6863_s3 + $0x20] ss:$16 sps:$4 sm:$0xff]   ;;  %v4482_v36 = vld [vmem:[%s6863_s3 + $0x28] ss:$16 sps:$4 sm:$0xff]  }
   0xd   :  { %552 = vmatprep.subr.bf16.mxu0 %v4361_v15  ;;  %593 = vmatprep.subr.bf16.mxu1 %v4366_v16  ;;  %v4487_v37 = vld [vmem:[%s6863_s3 + $0x4] ss:$16 sps:$4 sm:$0xff]   ;;  %v4496_v38 = vld [vmem:[%s6863_s3 + $0xc] ss:$16 sps:$4 sm:$0xff]   ;;  %v4503_v39 = vld [vmem:[%s6863_s3] ss:$16 sps:$4 sm:$0xff]  }
   0xe   :  { %3427 = vmatmul.mubr.msk.bf16.gmra.mxu0 %vm107_vm0, %v3632_v10  ;;  %3431 = vmatmul.mubr.msk.bf16.gmra.mxu1 %vm107_vm0, %v3632_v10  ;;  %v4508_v40 = vld [vmem:[%s6863_s3 + $0x8] ss:$16 sps:$4 sm:$0xff]   ;;  %v4513_v41 = vld [vmem:[%s6864_s5 + $0xe4] ss:$16 sps:$4 sm:$0xff]   ;;  %v4518_v42 = vld [vmem:[%s6864_s5 + $0xec] ss:$16 sps:$4 sm:$0xff]  }
   0xf   :  { %172 = vmatprep.mubr.bf16.mxu0 %v6875_v1  ;;  %245 = vmatprep.mubr.bf16.mxu1 %v6875_v1  ;;  %v45_v46 = vld [vmem:[%s6866_s2] sm:$0xf]  ;;  %v6871_v58 = vsub.s32 3, %v4528_v44 }
  0x10   :  { %553 = vmatpush1.bf16.msra.mxu0 %v4371_v17  ;;  %594 = vmatpush1.bf16.msra.mxu1 %v4376_v18  ;;  %v4537_v48 = vrot.slane %v45_v46, %v6874_v45  ;;  %v4541_v49 = vrot.slane %v45_v46, %v6873_v47  ;;  %v4548_v57 = vrot.slane %v45_v46, %v6872_v55  ;;  %v4680_v55 = vld [vmem:[%s6864_s5 + $0x4c] ss:$16 sps:$4 sm:$0xff]   ;;  %v4687_v47 = vld [vmem:[%s6864_s5 + $0x40] ss:$16 sps:$4 sm:$0xff]   ;;  %v4692_v45 = vld [vmem:[%s6864_s5 + $0x48] ss:$16 sps:$4 sm:$0xff]  }
  0x11   :  { %554 = vmatprep.subr.bf16.mxu0 %v4388_v20  ;;  %595 = vmatprep.subr.bf16.mxu1 %v4393_v21  ;;  %v4554_v61 = vrot.slane %v45_v46, %v6871_v58  ;;  %v4675_v58 = vld [vmem:[%s6864_s5 + $0x44] ss:$16 sps:$4 sm:$0xff]   ;;  %7179 = vst [vmem:[#allocation9_spill] sm:$0xff] %v4680_v55  ;;  %7180 = vst [vmem:[#allocation10_spill] sm:$0xff] %v4687_v47 }
  0x12   :  { %7173 = vst [vmem:[#allocation3_spill] sm:$0xff] %v4537_v48  ;;  %7174 = vst [vmem:[#allocation4_spill] sm:$0xff] %v4541_v49 }
  0x13   :  { %7175 = vst [vmem:[#allocation5_spill] sm:$0xff] %v4554_v61  ;;  %7178 = vst [vmem:[#allocation8_spill] sm:$0xff] %v4675_v58 }
  0x14   :  { %555 = vmatpush1.bf16.msra.mxu0 %v4399_v22  ;;  %596 = vmatpush1.bf16.msra.mxu1 %v4404_v23  ;;  %7181 = vst [vmem:[#allocation11_spill] sm:$0xff] %v4692_v45 }
  0x15   :  { %556 = vmatprep.subr.bf16.mxu0 %v4416_v24  ;;  %597 = vmatprep.subr.bf16.mxu1 %v4421_v25 }
  0x16   :  { %3428 = vmatmul.mubr.msk.bf16.gmra.mxu0 %vm107_vm0, %v3645_v19  ;;  %3432 = vmatmul.mubr.msk.bf16.gmra.mxu1 %vm107_vm0, %v3645_v19 }
  0x17   :  { %182 = vmatprep.mubr.bf16.mxu0 %v6875_v1  ;;  %255 = vmatprep.mubr.bf16.mxu1 %v6875_v1 }
  0x18   :  { %557 = vmatpush1.bf16.msra.mxu0 %v4426_v26  ;;  %598 = vmatpush1.bf16.msra.mxu1 %v4431_v27 }
  0x19   :  { %558 = vmatprep.subr.bf16.mxu0 %v4441_v29  ;;  %599 = vmatprep.subr.bf16.mxu1 %v4446_v30 }
  0x1c   :  { %559 = vmatpush1.bf16.msra.mxu0 %v4453_v31  ;;  %600 = vmatpush1.bf16.msra.mxu1 %v4458_v32 }
  0x1d   :  { %560 = vmatprep.subr.bf16.mxu0 %v4465_v33  ;;  %601 = vmatprep.subr.bf16.mxu1 %v4470_v34 }
  0x1e   :  { %3429 = vmatmul.mubr.msk.bf16.gmra.mxu0 %vm107_vm0, %v3658_v28  ;;  %3433 = vmatmul.mubr.msk.bf16.gmra.mxu1 %vm107_vm0, %v3658_v28 }
  0x1f   :  { %580 = vmatprep.mubr.bf16.mxu0 %v6875_v1  ;;  %621 = vmatprep.mubr.bf16.mxu1 %v6875_v1 }
  0x20   :  { %561 = vmatpush1.bf16.msra.mxu0 %v4477_v35  ;;  %602 = vmatpush1.bf16.msra.mxu1 %v4482_v36 }
  0x21   :  { %562 = vmatprep.subr.bf16.mxu0 %v4487_v37  ;;  %603 = vmatprep.subr.bf16.mxu1 %v4496_v38 }
  0x24   :  { %563 = vmatpush1.bf16.msra.mxu0 %v4503_v39  ;;  %604 = vmatpush1.bf16.msra.mxu1 %v4508_v40 }
  0x25   :  { %858 = vmatprep.subr.bf16.mxu0 %v4513_v41  ;;  %899 = vmatprep.subr.bf16.mxu1 %v4518_v42 }
  0xc6   :  { %v154_v50 = vpop.f32.mrf.mxu0  ;;  %v227_v59 = vpop.f32.mrf.mxu1 }
  0xc7   :  { %v155_v51 = vadd.f32 %v154_v50, %v4537_v48  ;;  %v228_v60 = vadd.f32 %v227_v59, %v4548_v57  ;;  %v4563_v59 = vld [vmem:[%s6864_s5 + $0xe0] ss:$16 sps:$4 sm:$0xff]  }
  0xc8   :  { %v156_v52 = vpop.f32.mrf.mxu0  ;;  %v229_v63 = vpop.f32.mrf.mxu1 }
  0xc9   :  { %v3434_v53 = vmul.f32 -1.442695, %v155_v51  ;;  %v157_v54 = vadd.f32 %v156_v52, %v4541_v49  ;;  %v3436_v62 = vmul.f32 -1.442695, %v228_v60  ;;  %v230_v0 = vadd.f32 %v229_v63, %v4554_v61  ;;  %v4568_v60 = vld [vmem:[%s6864_s5 + $0xe8] ss:$16 sps:$4 sm:$0xff]  }
  0xca   :  { %v4575_v63 = vld [vmem:[%s6864_s5 + $0xc4] ss:$16 sps:$4 sm:$0xff]  }
  0xcb   :  { %3781 = vpow2.f32 %v3434_v53  ;;  %v3435_v56 = vmul.f32 -1.442695, %v157_v54 }
  0xcd   :  { %3783 = vpow2.f32 %v3435_v56 }
  0xce   :  { %3785 = vpow2.f32 %v3436_v62 }
  0xcf   :  { %3787 = vtanh.f32 %v230_v0  ;;  %v4580_v0 = vld [vmem:[%s6864_s5 + $0xcc] ss:$16 sps:$4 sm:$0xff]  }
  0xd8   :  { %v3782_v2 = vpop.eup %3781 }
  0xd9   :  { %v333_v3 = vadd.f32 1.0, %v3782_v2  ;;  %v4589_v2 = vld [vmem:[%s6864_s5 + $0xc0] ss:$16 sps:$4 sm:$0xff]  }
  0xda   :  { %v3784_v4 = vpop.eup %3783 }
  0xdb   :  { %3789 = vrcp.f32 %v333_v3  ;;  %v334_v5 = vadd.f32 1.0, %v3784_v4  ;;  %v3786_v10 = vpop.eup %3785  ;;  %v4594_v3 = vld [vmem:[%s6864_s5 + $0xc8] ss:$16 sps:$4 sm:$0xff]   ;;  %v4601_v4 = vld [vmem:[%s6864_s5 + $0xa4] ss:$16 sps:$4 sm:$0xff]  }
  0xdc   :  { %v3788_v19 = vpop.eup %3787  ;;  %v335_v50 = vadd.f32 1.0, %v3786_v10  ;;  %v4615_v10 = vld [vmem:[%s6864_s5 + $0xa0] ss:$16 sps:$4 sm:$0xff]  }
  0xdd   :  { %3791 = vrcp.f32 %v334_v5  ;;  %v4606_v5 = vld [vmem:[%s6864_s5 + $0xac] ss:$16 sps:$4 sm:$0xff]  }
  0xde   :  { %3793 = vrcp.f32 %v335_v50  ;;  %v4639_v50 = vld [vmem:[%s6864_s5 + $0x80] ss:$16 sps:$4 sm:$0xff]  }
  0xe8   :  { %v3790_v28 = vpop.eup %3789 }
  0xe9   :  { %v344_v46 = vmul.f32 %v3790_v28, %v3788_v19  ;;  %v4620_v19 = vld [vmem:[%s6864_s5 + $0xa8] ss:$16 sps:$4 sm:$0xff]   ;;  %v4627_v28 = vld [vmem:[%s6864_s5 + $0x84] ss:$16 sps:$4 sm:$0xff]  }
  0xea   :  { %v3792_v43 = vpop.eup %3791 }
  0xeb   :  { %v343_v51 = vmul.f32 0.0, %v3792_v43  ;;  %v3794_v53 = vpop.eup %3793  ;;  %v4632_v43 = vld [vmem:[%s6864_s5 + $0x8c] ss:$16 sps:$4 sm:$0xff]  }
  0xed   :  { %v4557_v52 = vadd.f32 %v344_v46, %v343_v51  ;;  %v4644_v51 = vld [vmem:[%s6864_s5 + $0x88] ss:$16 sps:$4 sm:$0xff]   ;;  %v4651_v46 = vld [vmem:[%s6864_s5 + $0x64] ss:$16 sps:$4 sm:$0xff]  }
  0xef   :  { %3795 = vtanh.f32 %v4557_v52 }
  0xfc   :  { %v3796_v54 = vpop.eup %3795 }
  0xfd   :  { %v347_v56 = vmul.f32 %v3796_v54, %v3794_v53  ;;  %v4656_v53 = vld [vmem:[%s6864_s5 + $0x6c] ss:$16 sps:$4 sm:$0xff]   ;;  %v4663_v54 = vld [vmem:[%s6864_s5 + $0x60] ss:$16 sps:$4 sm:$0xff]  }
  0xfe   :  { %7176 = vst [vmem:[#allocation6_spill] sm:$0xff] %v4663_v54 }
  0xff   :  { %v4570_v62 = vpack.c.bf16 %v347_v56, %v347_v56  ;;  %v4668_v56 = vld [vmem:[%s6864_s5 + $0x68] ss:$16 sps:$4 sm:$0xff]  }
 0x100   :  { %7177 = vst [vmem:[#allocation7_spill] sm:$0xff] %v4668_v56 }
 0x101   :  { %581 = vmatmul.mubr.bf16.vlgmr.msra.gmra.mxu0 %v4570_v62  ;;  %622 = vmatmul.mubr.bf16.vlgmr.msra.gmra.mxu1 %v4570_v62 }
 0x102   :  { %859 = vmatpush1.bf16.msra.mxu0 %v4563_v59  ;;  %900 = vmatpush1.bf16.msra.mxu1 %v4568_v60 }
 0x103   :  { %860 = vmatprep.subr.bf16.mxu0 %v4575_v63  ;;  %901 = vmatprep.subr.bf16.mxu1 %v4580_v0 }
 0x104   :  { %890 = vmatprep.mubr.bf16.mxu0 %v6875_v1  ;;  %931 = vmatprep.mubr.bf16.mxu1 %v6875_v1  ;;  %v4699_v1 = vld [vmem:[%s6864_s5 + $0x24] ss:$16 sps:$4 sm:$0xff]  }
 0x105   :  { %7182 = vst [vmem:[#allocation12_spill] sm:$0xff] %v4699_v1 }
 0x106   :  { %861 = vmatpush1.bf16.msra.mxu0 %v4589_v2  ;;  %902 = vmatpush1.bf16.msra.mxu1 %v4594_v3 }
 0x107   :  { %862 = vmatprep.subr.bf16.mxu0 %v4601_v4  ;;  %903 = vmatprep.subr.bf16.mxu1 %v4606_v5 }
 0x10a   :  { %863 = vmatpush1.bf16.msra.mxu0 %v4615_v10  ;;  %904 = vmatpush1.bf16.msra.mxu1 %v4620_v19 }
 0x10b   :  { %864 = vmatprep.subr.bf16.mxu0 %v4627_v28  ;;  %905 = vmatprep.subr.bf16.mxu1 %v4632_v43 }
 0x10e   :  { %865 = vmatpush1.bf16.msra.mxu0 %v4639_v50  ;;  %906 = vmatpush1.bf16.msra.mxu1 %v4644_v51 }
 0x10f   :  { %866 = vmatprep.subr.bf16.mxu0 %v4651_v46  ;;  %907 = vmatprep.subr.bf16.mxu1 %v4656_v53 }
 0x112   :  { %867 = vmatpush1.bf16.msra.mxu0 %v4663_v54  ;;  %908 = vmatpush1.bf16.msra.mxu1 %v4668_v56  ;;  %v4704_v56 = vld [vmem:[%s6864_s5 + $0x2c] ss:$16 sps:$4 sm:$0xff]   ;;  %v7196_v54 = vmov 0  }
 0x113   :  { %868 = vmatprep.subr.bf16.mxu0 %v4675_v58  ;;  %909 = vmatprep.subr.bf16.mxu1 %v4680_v55  ;;  %7183 = vst [vmem:[#allocation13_spill] sm:$0xff] %v4704_v56  ;;  %v4711_v58 = vld [vmem:[%s6864_s5 + $0x20] ss:$16 sps:$4 sm:$0xff]   ;;  %v4716_v55 = vld [vmem:[%s6864_s5 + $0x28] ss:$16 sps:$4 sm:$0xff]  }
 0x114   :  { %7184 = vst [vmem:[#allocation14_spill] sm:$0xff] %v4711_v58  ;;  %7185 = vst [vmem:[#allocation15_spill] sm:$0xff] %v4716_v55 }
 0x116   :  { %869 = vmatpush1.bf16.msra.mxu0 %v4687_v47  ;;  %910 = vmatpush1.bf16.msra.mxu1 %v4692_v45  ;;  %v4723_v47 = vld [vmem:[%s6864_s5 + $0x4] ss:$16 sps:$4 sm:$0xff]   ;;  %v4728_v45 = vld [vmem:[%s6864_s5 + $0xc] ss:$16 sps:$4 sm:$0xff]  }
 0x117   :  { %870 = vmatprep.subr.bf16.mxu0 %v4699_v1  ;;  %911 = vmatprep.subr.bf16.mxu1 %v4704_v56  ;;  %7186 = vst [vmem:[#allocation16_spill] sm:$0xff] %v4723_v47  ;;  %7187 = vst [vmem:[#allocation17_spill] sm:$0xff] %v4728_v45  ;;  %v4735_v1 = vld [vmem:[%s6864_s5] ss:$16 sps:$4 sm:$0xff]   ;;  %v4740_v56 = vld [vmem:[%s6864_s5 + $0x8] ss:$16 sps:$4 sm:$0xff]  }
 0x118   :  { %7188 = vst [vmem:[#allocation18_spill] sm:$0xff] %v4735_v1  ;;  %7189 = vst [vmem:[#allocation19_spill] sm:$0xff] %v4740_v56 }
 0x11a   :  { %871 = vmatpush1.bf16.msra.mxu0 %v4711_v58  ;;  %912 = vmatpush1.bf16.msra.mxu1 %v4716_v55  ;;  %v4747_v58 = vld [vmem:[%s6865_s4 + $0xe4] ss:$16 sps:$4 sm:$0xff]   ;;  %v4752_v55 = vld [vmem:[%s6865_s4 + $0xec] ss:$16 sps:$4 sm:$0xff]  }
 0x11b   :  { %872 = vmatprep.subr.bf16.mxu0 %v4723_v47  ;;  %913 = vmatprep.subr.bf16.mxu1 %v4728_v45  ;;  %7190 = vst [vmem:[#allocation20_spill] sm:$0xff] %v4747_v58  ;;  %7191 = vst [vmem:[#allocation21_spill] sm:$0xff] %v4752_v55  ;;  %v4759_v47 = vld [vmem:[%s6865_s4 + $0xe0] ss:$16 sps:$4 sm:$0xff]   ;;  %v4764_v45 = vld [vmem:[%s6865_s4 + $0xe8] ss:$16 sps:$4 sm:$0xff]  }
 0x11c   :  { %7192 = vst [vmem:[#allocation22_spill] sm:$0xff] %v4759_v47  ;;  %7193 = vst [vmem:[#allocation23_spill] sm:$0xff] %v4764_v45 }
 0x11e   :  { %873 = vmatpush1.bf16.msra.mxu0 %v4735_v1  ;;  %914 = vmatpush1.bf16.msra.mxu1 %v4740_v56  ;;  %v4771_v1 = vld [vmem:[%s6865_s4 + $0xc4] ss:$16 sps:$4 sm:$0xff]   ;;  %v4776_v56 = vld [vmem:[%s6865_s4 + $0xcc] ss:$16 sps:$4 sm:$0xff]  }
 0x11f   :  { %1100 = vmatprep.subr.bf16.mxu0 %v4747_v58  ;;  %1141 = vmatprep.subr.bf16.mxu1 %v4752_v55  ;;  %7194 = vst [vmem:[#allocation24_spill] sm:$0xff] %v4771_v1  ;;  %7195 = vst [vmem:[#allocation25_spill] sm:$0xff] %v4776_v56  ;;  %v4785_v55 = vld [vmem:[%s6865_s4 + $0xc0] ss:$16 sps:$4 sm:$0xff]   ;;  %v4790_v58 = vld [vmem:[%s6865_s4 + $0xc8] ss:$16 sps:$4 sm:$0xff]  }
 0x120   :  { %7197 = vst [vmem:[#allocation26_spill] sm:$0xff] %v4785_v55  ;;  %7198 = vst [vmem:[#allocation27_spill] sm:$0xff] %v4790_v58 }
 0x121   :  { %891 = vmatmul.mubr.bf16.vlgmr.msra.gmra.mxu0 %v7196_v54  ;;  %932 = vmatmul.mubr.bf16.vlgmr.msra.gmra.mxu1 %v7196_v54 }
 0x122   :  { %1101 = vmatpush1.bf16.msra.mxu0 %v4759_v47  ;;  %1142 = vmatpush1.bf16.msra.mxu1 %v4764_v45  ;;  %v4797_v47 = vld [vmem:[%s6865_s4 + $0xa4] ss:$16 sps:$4 sm:$0xff]   ;;  %v4802_v45 = vld [vmem:[%s6865_s4 + $0xac] ss:$16 sps:$4 sm:$0xff]  }
 0x123   :  { %1102 = vmatprep.subr.bf16.mxu0 %v4771_v1  ;;  %1143 = vmatprep.subr.bf16.mxu1 %v4776_v56  ;;  %7199 = vst [vmem:[#allocation28_spill] sm:$0xff] %v4797_v47  ;;  %7200 = vst [vmem:[#allocation29_spill] sm:$0xff] %v4802_v45  ;;  %v4811_v56 = vld [vmem:[%s6865_s4 + $0xa0] ss:$16 sps:$4 sm:$0xff]   ;;  %v4816_v1 = vld [vmem:[%s6865_s4 + $0xa8] ss:$16 sps:$4 sm:$0xff]  }
 0x124   :  { %1132 = vmatprep.mubr.bf16.mxu0 %v7196_v54  ;;  %1173 = vmatprep.mubr.bf16.mxu1 %v7196_v54  ;;  %7201 = vst [vmem:[#allocation30_spill] sm:$0xff] %v4811_v56  ;;  %7202 = vst [vmem:[#allocation31_spill] sm:$0xff] %v4816_v1 }
 0x126   :  { %1103 = vmatpush1.bf16.msra.mxu0 %v4785_v55  ;;  %1144 = vmatpush1.bf16.msra.mxu1 %v4790_v58  ;;  %v4823_v55 = vld [vmem:[%s6865_s4 + $0x84] ss:$16 sps:$4 sm:$0xff]   ;;  %v4828_v58 = vld [vmem:[%s6865_s4 + $0x8c] ss:$16 sps:$4 sm:$0xff]  }
 0x127   :  { %1104 = vmatprep.subr.bf16.mxu0 %v4797_v47  ;;  %1145 = vmatprep.subr.bf16.mxu1 %v4802_v45  ;;  %7203 = vst [vmem:[#allocation32_spill] sm:$0xff] %v4823_v55  ;;  %7204 = vst [vmem:[#allocation33_spill] sm:$0xff] %v4828_v58  ;;  %v4835_v47 = vld [vmem:[%s6865_s4 + $0x80] ss:$16 sps:$4 sm:$0xff]   ;;  %v4840_v45 = vld [vmem:[%s6865_s4 + $0x88] ss:$16 sps:$4 sm:$0xff]  }
 0x128   :  { %7205 = vst [vmem:[#allocation34_spill] sm:$0xff] %v4835_v47  ;;  %7206 = vst [vmem:[#allocation35_spill] sm:$0xff] %v4840_v45 }
 0x12a   :  { %1105 = vmatpush1.bf16.msra.mxu0 %v4811_v56  ;;  %1146 = vmatpush1.bf16.msra.mxu1 %v4816_v1  ;;  %v4847_v56 = vld [vmem:[%s6865_s4 + $0x64] ss:$16 sps:$4 sm:$0xff]   ;;  %v4852_v1 = vld [vmem:[%s6865_s4 + $0x6c] ss:$16 sps:$4 sm:$0xff]  }
 0x12b   :  { %1106 = vmatprep.subr.bf16.mxu0 %v4823_v55  ;;  %1147 = vmatprep.subr.bf16.mxu1 %v4828_v58  ;;  %7207 = vst [vmem:[#allocation36_spill] sm:$0xff] %v4847_v56  ;;  %7208 = vst [vmem:[#allocation37_spill] sm:$0xff] %v4852_v1  ;;  %v4859_v55 = vld [vmem:[%s6865_s4 + $0x60] ss:$16 sps:$4 sm:$0xff]   ;;  %v4864_v58 = vld [vmem:[%s6865_s4 + $0x68] ss:$16 sps:$4 sm:$0xff]  }
 0x12c   :  { %7209 = vst [vmem:[#allocation38_spill] sm:$0xff] %v4859_v55  ;;  %7210 = vst [vmem:[#allocation39_spill] sm:$0xff] %v4864_v58 }
 0x12e   :  { %1107 = vmatpush1.bf16.msra.mxu0 %v4835_v47  ;;  %1148 = vmatpush1.bf16.msra.mxu1 %v4840_v45  ;;  %v4871_v47 = vld [vmem:[%s6865_s4 + $0x44] ss:$16 sps:$4 sm:$0xff]   ;;  %v4876_v45 = vld [vmem:[%s6865_s4 + $0x4c] ss:$16 sps:$4 sm:$0xff]  }
 0x12f   :  { %1108 = vmatprep.subr.bf16.mxu0 %v4847_v56  ;;  %1149 = vmatprep.subr.bf16.mxu1 %v4852_v1  ;;  %7211 = vst [vmem:[#allocation40_spill] sm:$0xff] %v4871_v47  ;;  %7212 = vst [vmem:[#allocation41_spill] sm:$0xff] %v4876_v45  ;;  %v4883_v56 = vld [vmem:[%s6865_s4 + $0x40] ss:$16 sps:$4 sm:$0xff]   ;;  %v4888_v1 = vld [vmem:[%s6865_s4 + $0x48] ss:$16 sps:$4 sm:$0xff]  }
 0x130   :  { %7213 = vst [vmem:[#allocation42_spill] sm:$0xff] %v4883_v56  ;;  %7214 = vst [vmem:[#allocation43_spill] sm:$0xff] %v4888_v1 }
 0x132   :  { %1109 = vmatpush1.bf16.msra.mxu0 %v4859_v55  ;;  %1150 = vmatpush1.bf16.msra.mxu1 %v4864_v58  ;;  %v4895_v55 = vld [vmem:[%s6865_s4 + $0x24] ss:$16 sps:$4 sm:$0xff]   ;;  %v4900_v58 = vld [vmem:[%s6865_s4 + $0x2c] ss:$16 sps:$4 sm:$0xff]  }
 0x133   :  { %1110 = vmatprep.subr.bf16.mxu0 %v4871_v47  ;;  %1151 = vmatprep.subr.bf16.mxu1 %v4876_v45  ;;  %7215 = vst [vmem:[#allocation44_spill] sm:$0xff] %v4895_v55  ;;  %7216 = vst [vmem:[#allocation45_spill] sm:$0xff] %v4900_v58  ;;  %v4907_v47 = vld [vmem:[%s6865_s4 + $0x20] ss:$16 sps:$4 sm:$0xff]   ;;  %v4912_v45 = vld [vmem:[%s6865_s4 + $0x28] ss:$16 sps:$4 sm:$0xff]  }
 0x134   :  { %7217 = vst [vmem:[#allocation46_spill] sm:$0xff] %v4907_v47  ;;  %7218 = vst [vmem:[#allocation47_spill] sm:$0xff] %v4912_v45 }
 0x136   :  { %1111 = vmatpush1.bf16.msra.mxu0 %v4883_v56  ;;  %1152 = vmatpush1.bf16.msra.mxu1 %v4888_v1  ;;  %v4919_v56 = vld [vmem:[%s6865_s4 + $0x4] ss:$16 sps:$4 sm:$0xff]   ;;  %v4924_v1 = vld [vmem:[%s6865_s4 + $0xc] ss:$16 sps:$4 sm:$0xff]  }
 0x137   :  { %1112 = vmatprep.subr.bf16.mxu0 %v4895_v55  ;;  %1153 = vmatprep.subr.bf16.mxu1 %v4900_v58  ;;  %7219 = vst [vmem:[#allocation48_spill] sm:$0xff] %v4919_v56  ;;  %7220 = vst [vmem:[#allocation49_spill] sm:$0xff] %v4924_v1  ;;  %v4931_v55 = vld [vmem:[%s6865_s4] ss:$16 sps:$4 sm:$0xff]   ;;  %v4936_v58 = vld [vmem:[%s6865_s4 + $0x8] ss:$16 sps:$4 sm:$0xff]  }
 0x138   :  { %7221 = vst [vmem:[#allocation50_spill] sm:$0xff] %v4931_v55  ;;  %7222 = vst [vmem:[#allocation51_spill] sm:$0xff] %v4936_v58 }
 0x13a   :  { %1113 = vmatpush1.bf16.msra.mxu0 %v4907_v47  ;;  %1154 = vmatpush1.bf16.msra.mxu1 %v4912_v45 }
 0x13b   :  { %1114 = vmatprep.subr.bf16.mxu0 %v4919_v56  ;;  %1155 = vmatprep.subr.bf16.mxu1 %v4924_v1 }
 0x13e   :  { %1115 = vmatpush1.bf16.msra.mxu0 %v4931_v55  ;;  %1156 = vmatpush1.bf16.msra.mxu1 %v4936_v58 }
 0x13f   :  { %1242 = vmatprep.subr.bf16.mxu0 %v4306_v6  ;;  %1283 = vmatprep.subr.bf16.mxu1 %v4311_v7  ;;  %v231_v6 = vpop.f32.mrf.mxu1  ;;  %v158_v7 = vpop.f32.mrf.mxu0 }
 0x141   :  { %1133 = vmatmul.mubr.bf16.vlgmr.msra.gmra.mxu0 %v4570_v62  ;;  %1174 = vmatmul.mubr.bf16.vlgmr.msra.gmra.mxu1 %v4570_v62 }
 0x142   :  { %1243 = vmatpush1.bf16.msra.mxu0 %v4317_v8  ;;  %1284 = vmatpush1.bf16.msra.mxu1 %v4322_v9  ;;  %v233_v8 = vpop.f32.mrf.mxu1  ;;  %v160_v9 = vpop.f32.mrf.mxu0 }
 0x143   :  { %1244 = vmatprep.subr.bf16.mxu0 %v4333_v11  ;;  %1285 = vmatprep.subr.bf16.mxu1 %v4338_v12 }
 0x144   :  { %1274 = vmatprep.mubr.bf16.mxu0 %v7196_v54  ;;  %1315 = vmatprep.mubr.bf16.mxu1 %v7196_v54  ;;  %v4980_v11 = vpop.f32.mrf.mxu1  ;;  %v4982_v12 = vpop.f32.mrf.mxu0 }
 0x146   :  { %1245 = vmatpush1.bf16.msra.mxu0 %v4344_v13  ;;  %1286 = vmatpush1.bf16.msra.mxu1 %v4349_v14  ;;  %v4984_v13 = vpop.f32.mrf.mxu1  ;;  %v4986_v14 = vpop.f32.mrf.mxu0 }
 0x147   :  { %1246 = vmatprep.subr.bf16.mxu0 %v4361_v15  ;;  %1287 = vmatprep.subr.bf16.mxu1 %v4366_v16 }
 0x148   :  { %v4988_v15 = vpop.f32.mrf.mxu1  ;;  %v4990_v16 = vpop.f32.mrf.mxu0 }
 0x149   :  { %7223 = vst [vmem:[#allocation52_spill] sm:$0xff] %v4988_v15  ;;  %7224 = vst [vmem:[#allocation53_spill] sm:$0xff] %v4990_v16 }
 0x14a   :  { %1247 = vmatpush1.bf16.msra.mxu0 %v4371_v17  ;;  %1288 = vmatpush1.bf16.msra.mxu1 %v4376_v18  ;;  %v4992_v17 = vpop.f32.mrf.mxu1  ;;  %v4994_v18 = vpop.f32.mrf.mxu0 }
 0x14b   :  { %1248 = vmatprep.subr.bf16.mxu0 %v4388_v20  ;;  %1289 = vmatprep.subr.bf16.mxu1 %v4393_v21  ;;  %7225 = vst [vmem:[#allocation54_spill] sm:$0xff] %v4992_v17  ;;  %7226 = vst [vmem:[#allocation55_spill] sm:$0xff] %v4994_v18 }
 0x14c   :  { %v4996_v20 = vpop.f32.mrf.mxu1  ;;  %v4998_v21 = vpop.f32.mrf.mxu0 }
 0x14d   :  { %7227 = vst [vmem:[#allocation56_spill] sm:$0xff] %v4996_v20  ;;  %7228 = vst [vmem:[#allocation57_spill] sm:$0xff] %v4998_v21  ;;  %v7263_v20 = vld [vmem:[#allocation18_spill] sm:$0xff] }
 0x14e   :  { %1249 = vmatpush1.bf16.msra.mxu0 %v4399_v22  ;;  %1290 = vmatpush1.bf16.msra.mxu1 %v4404_v23  ;;  %v5000_v22 = vpop.f32.mrf.mxu1  ;;  %v5002_v23 = vpop.f32.mrf.mxu0 }
 0x14f   :  { %1250 = vmatprep.subr.bf16.mxu0 %v4416_v24  ;;  %1291 = vmatprep.subr.bf16.mxu1 %v4421_v25  ;;  %7229 = vst [vmem:[#allocation58_spill] sm:$0xff] %v5000_v22  ;;  %7230 = vst [vmem:[#allocation59_spill] sm:$0xff] %v5002_v23  ;;  %v7259_v22 = vld [vmem:[#allocation14_spill] sm:$0xff]  ;;  %v7266_v23 = vld [vmem:[#allocation21_spill] sm:$0xff] }
 0x150   :  { %v5004_v24 = vpop.f32.mrf.mxu1  ;;  %v5006_v25 = vpop.f32.mrf.mxu0 }
 0x151   :  { %7231 = vst [vmem:[#allocation60_spill] sm:$0xff] %v5004_v24  ;;  %7232 = vst [vmem:[#allocation61_spill] sm:$0xff] %v5006_v25 }
 0x152   :  { %1251 = vmatpush1.bf16.msra.mxu0 %v4426_v26  ;;  %1292 = vmatpush1.bf16.msra.mxu1 %v4431_v27  ;;  %v5008_v26 = vpop.f32.mrf.mxu1  ;;  %v5010_v27 = vpop.f32.mrf.mxu0 }
 0x153   :  { %1252 = vmatprep.subr.bf16.mxu0 %v4441_v29  ;;  %1293 = vmatprep.subr.bf16.mxu1 %v4446_v30  ;;  %7233 = vst [vmem:[#allocation62_spill] sm:$0xff] %v5008_v26  ;;  %7234 = vst [vmem:[#allocation63_spill] sm:$0xff] %v5010_v27 }
 0x154   :  { %v5012_v29 = vpop.f32.mrf.mxu1  ;;  %v5014_v30 = vpop.f32.mrf.mxu0 }
 0x155   :  { %7235 = vst [vmem:[#allocation64_spill] sm:$0xff] %v5012_v29  ;;  %7236 = vst [vmem:[#allocation65_spill] sm:$0xff] %v5014_v30 }
 0x156   :  { %1253 = vmatpush1.bf16.msra.mxu0 %v4453_v31  ;;  %1294 = vmatpush1.bf16.msra.mxu1 %v4458_v32  ;;  %v5016_v31 = vpop.f32.mrf.mxu1  ;;  %v5018_v32 = vpop.f32.mrf.mxu0 }
 0x157   :  { %1254 = vmatprep.subr.bf16.mxu0 %v4465_v33  ;;  %1295 = vmatprep.subr.bf16.mxu1 %v4470_v34  ;;  %7237 = vst [vmem:[#allocation66_spill] sm:$0xff] %v5016_v31  ;;  %7238 = vst [vmem:[#allocation67_spill] sm:$0xff] %v5018_v32 }
 0x158   :  { %v5020_v33 = vpop.f32.mrf.mxu1  ;;  %v5022_v34 = vpop.f32.mrf.mxu0 }
 0x159   :  { %7239 = vst [vmem:[#allocation68_spill] sm:$0xff] %v5020_v33  ;;  %7240 = vst [vmem:[#allocation69_spill] sm:$0xff] %v5022_v34 }
 0x15a   :  { %1255 = vmatpush1.bf16.msra.mxu0 %v4477_v35  ;;  %1296 = vmatpush1.bf16.msra.mxu1 %v4482_v36  ;;  %v5024_v35 = vpop.f32.mrf.mxu1  ;;  %v5026_v36 = vpop.f32.mrf.mxu0 }
 0x15b   :  { %1256 = vmatprep.subr.bf16.mxu0 %v4487_v37  ;;  %1297 = vmatprep.subr.bf16.mxu1 %v4496_v38  ;;  %7241 = vst [vmem:[#allocation70_spill] sm:$0xff] %v5024_v35  ;;  %7242 = vst [vmem:[#allocation71_spill] sm:$0xff] %v5026_v36  ;;  %v159_v37 = vadd.f32 %v158_v7, %v4537_v48  ;;  %v232_v35 = vadd.f32 %v231_v6, %v4548_v57 }
 0x15c   :  { %v234_v7 = vadd.f32 %v233_v8, %v4554_v61 }
 0x15e   :  { %1257 = vmatpush1.bf16.msra.mxu0 %v4503_v39  ;;  %1298 = vmatpush1.bf16.msra.mxu1 %v4508_v40  ;;  %v161_v40 = vadd.f32 %v160_v9, %v4541_v49 }
 0x15f   :  { %1329 = vmatprep.subr.bf16.mxu0 %v4513_v41  ;;  %1370 = vmatprep.subr.bf16.mxu1 %v4518_v42 }
 0x1c1   :  { %v582_v38 = vpop.f32.mrf.mxu0  ;;  %v623_v39 = vpop.f32.mrf.mxu1 }
 0x1c2   :  { %v630_v41 = vadd.f32 %v582_v38, %v159_v37  ;;  %v632_v36 = vadd.f32 %v623_v39, %v232_v35 }
 0x1c3   :  { %v584_v42 = vpop.f32.mrf.mxu0  ;;  %v625_v62 = vpop.f32.mrf.mxu1 }
 0x1c4   :  { %v3533_v29 = vmul.f32 -1.442695, %v630_v41  ;;  %v631_v31 = vadd.f32 %v584_v42, %v161_v40  ;;  %v3535_v24 = vmul.f32 -1.442695, %v632_v36  ;;  %v633_v9 = vadd.f32 %v625_v62, %v234_v7 }
 0x1c5   :  { %v586_v32 = vpop.f32.mrf.mxu0  ;;  %v627_v30 = vpop.f32.mrf.mxu1 }
 0x1c6   :  { %3797 = vpow2.f32 %v3533_v29  ;;  %v3534_v33 = vmul.f32 -1.442695, %v631_v31 }
 0x1c7   :  { %v587_v34 = vpop.f32.mrf.mxu0  ;;  %v628_v26 = vpop.f32.mrf.mxu1 }
 0x1c8   :  { %3799 = vpow2.f32 %v3534_v33 }
 0x1c9   :  { %3801 = vpow2.f32 %v3535_v24 }
 0x1d3   :  { %v3798_v27 = vpop.eup %3797 }
 0x1d4   :  { %v1195_v37 = vadd.f32 1.0, %v3798_v27 }
 0x1d5   :  { %v3800_v38 = vpop.eup %3799 }
 0x1d6   :  { %3803 = vrcp.f32 %v1195_v37  ;;  %v1196_v40 = vadd.f32 1.0, %v3800_v38  ;;  %v3802_v31 = vpop.eup %3801  ;;  %v7243_v38 = vsub.s32 0, %v4528_v44 }
 0x1d7   :  { %3805 = vtanh.f32 %v633_v9  ;;  %v1197_v8 = vadd.f32 1.0, %v3802_v31 }
 0x1d8   :  { %3807 = vrcp.f32 %v1196_v40 }
 0x1d9   :  { %3809 = vrcp.f32 %v1197_v8 }
 0x1e1   :  { %v892_v29 = vpop.f32.mrf.mxu0  ;;  %v933_v30 = vpop.f32.mrf.mxu1 }
 0x1e3   :  { %v3804_v26 = vpop.eup %3803  ;;  %v894_v32 = vpop.f32.mrf.mxu0 }
 0x1e4   :  { %v5032_v33 = vpop.f32.mrf.mxu1  ;;  %v3806_v6 = vpop.eup %3805 }
 0x1e5   :  { %v3808_v34 = vpop.eup %3807  ;;  %v896_v35 = vpop.f32.mrf.mxu0  ;;  %v1206_v39 = vmul.f32 %v3806_v6, %v3804_v26 }
 0x1e6   :  { %v937_v36 = vpop.f32.mrf.mxu1  ;;  %v1205_v27 = vmul.f32 %v3808_v34, %v4557_v52  ;;  %v3810_v62 = vpop.eup %3809  ;;  %v298_v52 = vld [vmem:[%s6867_s6] sm:$0xf]  ;;  %v7245_v34 = vsub.s32 1, %v4528_v44 }
 0x1e7   :  { %v897_v24 = vpop.f32.mrf.mxu0  ;;  %v5053_v40 = vrot.slane %v298_v52, %v7243_v38 }
 0x1e8   :  { %v938_v41 = vpop.f32.mrf.mxu1  ;;  %v5035_v42 = vadd.f32 %v1206_v39, %v1205_v27  ;;  %v5059_v8 = vrot.slane %v298_v52, %v7245_v34  ;;  %v7249_v34 = vld [vmem:[#allocation6_spill] sm:$0xff] }
 0x1e9   :  { %7244 = vst [vmem:[#allocation72_spill] sm:$0xff] %v5053_v40 }
 0x1ea   :  { %3811 = vtanh.f32 %v5035_v42  ;;  %7246 = vst [vmem:[#allocation73_spill] sm:$0xff] %v5059_v8 }
 0x1f7   :  { %v3812_v7 = vpop.eup %3811 }
 0x1f8   :  { %v1209_v9 = vmul.f32 %v3812_v7, %v3810_v62 }
 0x1fa   :  { %v5038_v37 = vpack.c.bf16 %v1209_v9, %v1209_v9 }
 0x1fc   :  { %1275 = vmatmul.mubr.bf16.vlgmr.msra.gmra.mxu0 %v5038_v37  ;;  %1316 = vmatmul.mubr.bf16.vlgmr.msra.gmra.mxu1 %v5038_v37 }
 0x1fd   :  { %1330 = vmatpush1.bf16.msra.mxu0 %v4563_v59  ;;  %1371 = vmatpush1.bf16.msra.mxu1 %v4568_v60 }
 0x1fe   :  { %1331 = vmatprep.subr.bf16.mxu0 %v4575_v63  ;;  %1372 = vmatprep.subr.bf16.mxu1 %v4580_v0 }
 0x1ff   :  { %1361 = vmatprep.mubr.bf16.mxu0 %v7196_v54  ;;  %1402 = vmatprep.mubr.bf16.mxu1 %v7196_v54 }
 0x201   :  { %v1134_v31 = vpop.f32.mrf.mxu0  ;;  %v1175_v26 = vpop.f32.mrf.mxu1  ;;  %1332 = vmatpush1.bf16.msra.mxu0 %v4589_v2  ;;  %1373 = vmatpush1.bf16.msra.mxu1 %v4594_v3 }
 0x202   :  { %v1135_v6 = vadd.f32 %v1134_v31, %v892_v29  ;;  %1333 = vmatprep.subr.bf16.mxu0 %v4601_v4  ;;  %1374 = vmatprep.subr.bf16.mxu1 %v4606_v5 }
 0x203   :  { %v1136_v35 = vpop.f32.mrf.mxu0  ;;  %v1177_v36 = vpop.f32.mrf.mxu1 }
 0x204   :  { %v1182_v27 = vadd.f32 %v1135_v6, %v5053_v40  ;;  %v1137_v39 = vadd.f32 %v1136_v35, %v894_v32  ;;  %v7247_v32 = vsub.s32 2, %v4528_v44  ;;  %v1176_v6 = vadd.f32 %v1175_v26, %v933_v30  ;;  %v7250_v35 = vld [vmem:[#allocation7_spill] sm:$0xff]  ;;  %v7257_v30 = vld [vmem:[#allocation12_spill] sm:$0xff]  ;;  %v7258_v26 = vld [vmem:[#allocation13_spill] sm:$0xff] }
 0x205   :  { %v1138_v24 = vpop.f32.mrf.mxu0  ;;  %v1179_v41 = vpop.f32.mrf.mxu1  ;;  %1334 = vmatpush1.bf16.msra.mxu0 %v4615_v10  ;;  %1375 = vmatpush1.bf16.msra.mxu1 %v4620_v19  ;;  %v7269_v40 = vld [vmem:[#allocation24_spill] sm:$0xff] }
 0x206   :  { %v3536_v29 = vmul.f32 -1.442695, %v1182_v27  ;;  %v1183_v62 = vadd.f32 %v1137_v39, %v5059_v8  ;;  %1335 = vmatprep.subr.bf16.mxu0 %v4627_v28  ;;  %1376 = vmatprep.subr.bf16.mxu1 %v4632_v43  ;;  %v5075_v31 = vrot.slane %v298_v52, %v7247_v32  ;;  %v7251_v27 = vld [vmem:[#allocation8_spill] sm:$0xff]  ;;  %v7252_v39 = vld [vmem:[#allocation9_spill] sm:$0xff]  ;;  %v7253_v41 = vsub.s32 3, %v4528_v44  ;;  %v7268_v8 = vld [vmem:[#allocation23_spill] sm:$0xff] }
 0x207   :  { %v1139_v7 = vpop.f32.mrf.mxu0  ;;  %v1180_v9 = vpop.f32.mrf.mxu1 }
 0x208   :  { %3813 = vpow2.f32 %v3536_v29  ;;  %v3537_v38 = vmul.f32 -1.442695, %v1183_v62  ;;  %7248 = vst [vmem:[#allocation74_spill] sm:$0xff] %v5075_v31  ;;  %v1184_v24 = vadd.f32 %v1176_v6, %v5075_v31  ;;  %v5084_v29 = vrot.slane %v298_v52, %v7253_v41  ;;  %v7255_v7 = vld [vmem:[#allocation10_spill] sm:$0xff]  ;;  %v7256_v9 = vld [vmem:[#allocation11_spill] sm:$0xff]  ;;  %v7261_v52 = vld [vmem:[#allocation16_spill] sm:$0xff] }
 0x209   :  { %1336 = vmatpush1.bf16.msra.mxu0 %v4639_v50  ;;  %1377 = vmatpush1.bf16.msra.mxu1 %v4644_v51  ;;  %v1178_v62 = vadd.f32 %v1177_v36, %v5032_v33  ;;  %v7260_v6 = vld [vmem:[#allocation15_spill] sm:$0xff]  ;;  %v7262_v33 = vld [vmem:[#allocation17_spill] sm:$0xff]  ;;  %v7267_v31 = vld [vmem:[#allocation22_spill] sm:$0xff] }
 0x20a   :  { %3815 = vpow2.f32 %v3537_v38  ;;  %1337 = vmatprep.subr.bf16.mxu0 %v4651_v46  ;;  %1378 = vmatprep.subr.bf16.mxu1 %v4656_v53  ;;  %7254 = vst [vmem:[#allocation6_spill] sm:$0xff] %v5084_v29  ;;  %v3538_v38 = vmul.f32 -1.442695, %v1184_v24  ;;  %v7264_v24 = vld [vmem:[#allocation19_spill] sm:$0xff] }
 0x20b   :  { %v1185_v25 = vadd.f32 %v1178_v62, %v5084_v29  ;;  %v7265_v62 = vld [vmem:[#allocation20_spill] sm:$0xff] }
 0x20c   :  { %3817 = vpow2.f32 %v3538_v38 }
 0x20d   :  { %1338 = vmatpush1.bf16.msra.mxu0 %v7249_v34  ;;  %1379 = vmatpush1.bf16.msra.mxu1 %v7250_v35 }
 0x20e   :  { %1339 = vmatprep.subr.bf16.mxu0 %v7251_v27  ;;  %1380 = vmatprep.subr.bf16.mxu1 %v7252_v39 }
 0x211   :  { %1340 = vmatpush1.bf16.msra.mxu0 %v7255_v7  ;;  %1381 = vmatpush1.bf16.msra.mxu1 %v7256_v9 }
 0x212   :  { %1341 = vmatprep.subr.bf16.mxu0 %v7257_v30  ;;  %1382 = vmatprep.subr.bf16.mxu1 %v7258_v26 }
 0x215   :  { %v3814_v32 = vpop.eup %3813  ;;  %1342 = vmatpush1.bf16.msra.mxu0 %v7259_v22  ;;  %1383 = vmatpush1.bf16.msra.mxu1 %v7260_v6 }
 0x216   :  { %v1219_v44 = vadd.f32 1.0, %v3814_v32  ;;  %1343 = vmatprep.subr.bf16.mxu0 %v7261_v52  ;;  %1384 = vmatprep.subr.bf16.mxu1 %v7262_v33 }
 0x217   :  { %v3816_v36 = vpop.eup %3815 }
 0x218   :  { %3819 = vrcp.f32 %v1219_v44  ;;  %v1220_v41 = vadd.f32 1.0, %v3816_v36 }
 0x219   :  { %3821 = vtanh.f32 %v1185_v25  ;;  %1344 = vmatpush1.bf16.msra.mxu0 %v7263_v20  ;;  %1385 = vmatpush1.bf16.msra.mxu1 %v7264_v24  ;;  %v3818_v21 = vpop.eup %3817 }
 0x21a   :  { %3823 = vrcp.f32 %v1220_v41  ;;  %1411 = vmatprep.subr.bf16.mxu0 %v7265_v62  ;;  %1452 = vmatprep.subr.bf16.mxu1 %v7266_v23  ;;  %v1221_v18 = vadd.f32 1.0, %v3818_v21  ;;  %v7270_v21 = vld [vmem:[#allocation25_spill] sm:$0xff] }
 0x21c   :  { %3825 = vrcp.f32 %v1221_v18  ;;  %v7274_v18 = vld [vmem:[#allocation29_spill] sm:$0xff] }
 0x225   :  { %v3820_v32 = vpop.eup %3819 }
 0x226   :  { %v3822_v17 = vpop.eup %3821 }
 0x227   :  { %v3824_v15 = vpop.eup %3823  ;;  %v1230_v29 = vmul.f32 %v3822_v17, %v3820_v32  ;;  %v7273_v17 = vld [vmem:[#allocation28_spill] sm:$0xff]  ;;  %v7276_v32 = vld [vmem:[#allocation31_spill] sm:$0xff] }
 0x228   :  { %v1229_v16 = vmul.f32 0.0, %v3824_v15  ;;  %v7271_v15 = vld [vmem:[#allocation26_spill] sm:$0xff] }
 0x229   :  { %v3826_v25 = vpop.eup %3825 }
 0x22a   :  { %v5100_v38 = vadd.f32 %v1230_v29, %v1229_v16  ;;  %v7272_v16 = vld [vmem:[#allocation27_spill] sm:$0xff]  ;;  %v7275_v29 = vld [vmem:[#allocation30_spill] sm:$0xff] }
 0x22c   :  { %3827 = vtanh.f32 %v5100_v38 }
 0x239   :  { %v3828_v44 = vpop.eup %3827 }
 0x23a   :  { %v1233_v36 = vmul.f32 %v3828_v44, %v3826_v25  ;;  %v7277_v25 = vld [vmem:[#allocation32_spill] sm:$0xff]  ;;  %v7278_v44 = vld [vmem:[#allocation33_spill] sm:$0xff] }
 0x23c   :  { %v1328_v41 = vpack.c.bf16 %v1233_v36, %v1233_v36  ;;  %v7279_v36 = vld [vmem:[#allocation34_spill] sm:$0xff] }
 0x23e   :  { %1362 = vmatmul.mubr.bf16.vlgmr.msra.gmra.mxu0 %v1328_v41  ;;  %1403 = vmatmul.mubr.bf16.vlgmr.msra.gmra.mxu1 %v1328_v41  ;;  %v7280_v41 = vld [vmem:[#allocation35_spill] sm:$0xff] }
 0x23f   :  { %1412 = vmatpush1.bf16.msra.mxu0 %v7267_v31  ;;  %1453 = vmatpush1.bf16.msra.mxu1 %v7268_v8 }
 0x240   :  { %1413 = vmatprep.subr.bf16.mxu0 %v7269_v40  ;;  %1454 = vmatprep.subr.bf16.mxu1 %v7270_v21  ;;  %v7281_v21 = vld [vmem:[#allocation36_spill] sm:$0xff] }
 0x241   :  { %1443 = vmatprep.mubr.bf16.mxu0 %v7196_v54  ;;  %1484 = vmatprep.mubr.bf16.mxu1 %v7196_v54 }
 0x243   :  { %1414 = vmatpush1.bf16.msra.mxu0 %v7271_v15  ;;  %1455 = vmatpush1.bf16.msra.mxu1 %v7272_v16  ;;  %v7282_v15 = vld [vmem:[#allocation37_spill] sm:$0xff]  ;;  %v7283_v16 = vld [vmem:[#allocation38_spill] sm:$0xff] }
 0x244   :  { %1415 = vmatprep.subr.bf16.mxu0 %v7273_v17  ;;  %1456 = vmatprep.subr.bf16.mxu1 %v7274_v18  ;;  %v7284_v17 = vld [vmem:[#allocation39_spill] sm:$0xff]  ;;  %v7285_v18 = vld [vmem:[#allocation40_spill] sm:$0xff] }
 0x247   :  { %1416 = vmatpush1.bf16.msra.mxu0 %v7275_v29  ;;  %1457 = vmatpush1.bf16.msra.mxu1 %v7276_v32  ;;  %v7286_v29 = vld [vmem:[#allocation41_spill] sm:$0xff]  ;;  %v7287_v32 = vld [vmem:[#allocation42_spill] sm:$0xff] }
 0x248   :  { %1417 = vmatprep.subr.bf16.mxu0 %v7277_v25  ;;  %1458 = vmatprep.subr.bf16.mxu1 %v7278_v44  ;;  %v7288_v25 = vld [vmem:[#allocation43_spill] sm:$0xff]  ;;  %v7289_v44 = vld [vmem:[#allocation44_spill] sm:$0xff] }
 0x24b   :  { %1418 = vmatpush1.bf16.msra.mxu0 %v7279_v36  ;;  %1459 = vmatpush1.bf16.msra.mxu1 %v7280_v41  ;;  %v7290_v36 = vld [vmem:[#allocation45_spill] sm:$0xff] }
 0x24c   :  { %1419 = vmatprep.subr.bf16.mxu0 %v7281_v21  ;;  %1460 = vmatprep.subr.bf16.mxu1 %v7282_v15 }
 0x24f   :  { %1420 = vmatpush1.bf16.msra.mxu0 %v7283_v16  ;;  %1461 = vmatpush1.bf16.msra.mxu1 %v7284_v17 }
 0x250   :  { %1421 = vmatprep.subr.bf16.mxu0 %v7285_v18  ;;  %1462 = vmatprep.subr.bf16.mxu1 %v7286_v29 }
 0x253   :  { %1422 = vmatpush1.bf16.msra.mxu0 %v7287_v32  ;;  %1463 = vmatpush1.bf16.msra.mxu1 %v7288_v25  ;;  %v5138_v25 = vld [vmem:[%s6863_s3 + $0xe4] ss:$16 sps:$4 sm:$0xff]  }
 0x254   :  { %1423 = vmatprep.subr.bf16.mxu0 %v7289_v44  ;;  %1464 = vmatprep.subr.bf16.mxu1 %v7290_v36  ;;  %7291 = vst [vmem:[#allocation7_spill] sm:$0xff] %v5138_v25 }
 0x257   :  { %1424 = vmatpush1.bf16.msra.mxu0 %v4907_v47  ;;  %1465 = vmatpush1.bf16.msra.mxu1 %v4912_v45  ;;  %v5144_v47 = vld [vmem:[%s6863_s3 + $0xec] ss:$16 sps:$4 sm:$0xff]  }
 0x258   :  { %1425 = vmatprep.subr.bf16.mxu0 %v4919_v56  ;;  %1466 = vmatprep.subr.bf16.mxu1 %v4924_v1  ;;  %7292 = vst [vmem:[#allocation8_spill] sm:$0xff] %v5144_v47 }
 0x25b   :  { %1426 = vmatpush1.bf16.msra.mxu0 %v4931_v55  ;;  %1467 = vmatpush1.bf16.msra.mxu1 %v4936_v58  ;;  %v5152_v58 = vld [vmem:[%s6863_s3 + $0xe0] ss:$16 sps:$4 sm:$0xff]  }
 0x25c   :  { %1553 = vmatprep.subr.bf16.mxu0 %v5138_v25  ;;  %1594 = vmatprep.subr.bf16.mxu1 %v5144_v47  ;;  %7293 = vst [vmem:[#allocation9_spill] sm:$0xff] %v5152_v58  ;;  %v5158_v25 = vld [vmem:[%s6863_s3 + $0xe8] ss:$16 sps:$4 sm:$0xff]   ;;  %v5164_v47 = vld [vmem:[%s6863_s3 + $0xc4] ss:$16 sps:$4 sm:$0xff]  }
 0x25d   :  { %7294 = vst [vmem:[#allocation10_spill] sm:$0xff] %v5158_v25  ;;  %7295 = vst [vmem:[#allocation11_spill] sm:$0xff] %v5164_v47 }
 0x25e   :  { %1444 = vmatmul.mubr.bf16.vlgmr.msra.gmra.mxu0 %v5038_v37  ;;  %1485 = vmatmul.mubr.bf16.vlgmr.msra.gmra.mxu1 %v5038_v37  ;;  %v5170_v37 = vld [vmem:[%s6863_s3 + $0xcc] ss:$16 sps:$4 sm:$0xff]  }
 0x25f   :  { %1554 = vmatpush1.bf16.msra.mxu0 %v5152_v58  ;;  %1595 = vmatpush1.bf16.msra.mxu1 %v5158_v25  ;;  %7296 = vst [vmem:[#allocation12_spill] sm:$0xff] %v5170_v37  ;;  %v5178_v25 = vld [vmem:[%s6863_s3 + $0xc0] ss:$16 sps:$4 sm:$0xff]   ;;  %v5196_v58 = vld [vmem:[%s6863_s3 + $0xac] ss:$16 sps:$4 sm:$0xff]  }
 0x260   :  { %1555 = vmatprep.subr.bf16.mxu0 %v5164_v47  ;;  %1596 = vmatprep.subr.bf16.mxu1 %v5170_v37  ;;  %7297 = vst [vmem:[#allocation13_spill] sm:$0xff] %v5178_v25  ;;  %v5184_v47 = vld [vmem:[%s6863_s3 + $0xc8] ss:$16 sps:$4 sm:$0xff]   ;;  %v5190_v37 = vld [vmem:[%s6863_s3 + $0xa4] ss:$16 sps:$4 sm:$0xff]   ;;  %7300 = vst [vmem:[#allocation16_spill] sm:$0xff] %v5196_v58 }
 0x261   :  { %1585 = vmatprep.mubr.bf16.mxu0 %v7196_v54  ;;  %1626 = vmatprep.mubr.bf16.mxu1 %v7196_v54  ;;  %7298 = vst [vmem:[#allocation14_spill] sm:$0xff] %v5184_v47  ;;  %7299 = vst [vmem:[#allocation15_spill] sm:$0xff] %v5190_v37 }
 0x263   :  { %1556 = vmatpush1.bf16.msra.mxu0 %v5178_v25  ;;  %1597 = vmatpush1.bf16.msra.mxu1 %v5184_v47  ;;  %v5202_v25 = vld [vmem:[%s6863_s3 + $0xa0] ss:$16 sps:$4 sm:$0xff]   ;;  %v5208_v47 = vld [vmem:[%s6863_s3 + $0xa8] ss:$16 sps:$4 sm:$0xff]  }
 0x264   :  { %1557 = vmatprep.subr.bf16.mxu0 %v5190_v37  ;;  %1598 = vmatprep.subr.bf16.mxu1 %v5196_v58  ;;  %7301 = vst [vmem:[#allocation17_spill] sm:$0xff] %v5202_v25  ;;  %7302 = vst [vmem:[#allocation18_spill] sm:$0xff] %v5208_v47  ;;  %v5214_v37 = vld [vmem:[%s6863_s3 + $0x84] ss:$16 sps:$4 sm:$0xff]   ;;  %v5220_v58 = vld [vmem:[%s6863_s3 + $0x8c] ss:$16 sps:$4 sm:$0xff]  }
 0x265   :  { %7303 = vst [vmem:[#allocation19_spill] sm:$0xff] %v5214_v37  ;;  %7304 = vst [vmem:[#allocation20_spill] sm:$0xff] %v5220_v58 }
 0x267   :  { %1558 = vmatpush1.bf16.msra.mxu0 %v5202_v25  ;;  %1599 = vmatpush1.bf16.msra.mxu1 %v5208_v47  ;;  %v5226_v25 = vld [vmem:[%s6863_s3 + $0x80] ss:$16 sps:$4 sm:$0xff]   ;;  %v5232_v47 = vld [vmem:[%s6863_s3 + $0x88] ss:$16 sps:$4 sm:$0xff]  }
 0x268   :  { %1559 = vmatprep.subr.bf16.mxu0 %v5214_v37  ;;  %1600 = vmatprep.subr.bf16.mxu1 %v5220_v58  ;;  %7305 = vst [vmem:[#allocation21_spill] sm:$0xff] %v5226_v25  ;;  %7306 = vst [vmem:[#allocation22_spill] sm:$0xff] %v5232_v47  ;;  %v5238_v37 = vld [vmem:[%s6863_s3 + $0x64] ss:$16 sps:$4 sm:$0xff]   ;;  %v5244_v58 = vld [vmem:[%s6863_s3 + $0x6c] ss:$16 sps:$4 sm:$0xff]  }
 0x269   :  { %7307 = vst [vmem:[#allocation23_spill] sm:$0xff] %v5238_v37  ;;  %7308 = vst [vmem:[#allocation24_spill] sm:$0xff] %v5244_v58 }
 0x26b   :  { %1560 = vmatpush1.bf16.msra.mxu0 %v5226_v25  ;;  %1601 = vmatpush1.bf16.msra.mxu1 %v5232_v47  ;;  %v5250_v25 = vld [vmem:[%s6863_s3 + $0x60] ss:$16 sps:$4 sm:$0xff]   ;;  %v5256_v47 = vld [vmem:[%s6863_s3 + $0x68] ss:$16 sps:$4 sm:$0xff]  }
 0x26c   :  { %1561 = vmatprep.subr.bf16.mxu0 %v5238_v37  ;;  %1602 = vmatprep.subr.bf16.mxu1 %v5244_v58  ;;  %7309 = vst [vmem:[#allocation35_spill] sm:$0xff] %v5250_v25  ;;  %7310 = vst [vmem:[#allocation36_spill] sm:$0xff] %v5256_v47  ;;  %v5262_v37 = vld [vmem:[%s6863_s3 + $0x44] ss:$16 sps:$4 sm:$0xff]   ;;  %v5268_v58 = vld [vmem:[%s6863_s3 + $0x4c] ss:$16 sps:$4 sm:$0xff]  }
 0x26d   :  { %7311 = vst [vmem:[#allocation37_spill] sm:$0xff] %v5262_v37  ;;  %7312 = vst [vmem:[#allocation75_spill] sm:$0xff] %v5268_v58 }
 0x26f   :  { %1562 = vmatpush1.bf16.msra.mxu0 %v5250_v25  ;;  %1603 = vmatpush1.bf16.msra.mxu1 %v5256_v47  ;;  %v5274_v25 = vld [vmem:[%s6863_s3 + $0x40] ss:$16 sps:$4 sm:$0xff]   ;;  %v5280_v47 = vld [vmem:[%s6863_s3 + $0x48] ss:$16 sps:$4 sm:$0xff]  }
 0x270   :  { %1563 = vmatprep.subr.bf16.mxu0 %v5262_v37  ;;  %1604 = vmatprep.subr.bf16.mxu1 %v5268_v58  ;;  %7313 = vst [vmem:[#allocation76_spill] sm:$0xff] %v5274_v25  ;;  %7314 = vst [vmem:[#allocation77_spill] sm:$0xff] %v5280_v47  ;;  %v5286_v37 = vld [vmem:[%s6863_s3 + $0x24] ss:$16 sps:$4 sm:$0xff]   ;;  %v5292_v58 = vld [vmem:[%s6863_s3 + $0x2c] ss:$16 sps:$4 sm:$0xff]  }
 0x271   :  { %7315 = vst [vmem:[#allocation78_spill] sm:$0xff] %v5286_v37  ;;  %7316 = vst [vmem:[#allocation79_spill] sm:$0xff] %v5292_v58 }
 0x273   :  { %1564 = vmatpush1.bf16.msra.mxu0 %v5274_v25  ;;  %1605 = vmatpush1.bf16.msra.mxu1 %v5280_v47  ;;  %v5298_v25 = vld [vmem:[%s6863_s3 + $0x20] ss:$16 sps:$4 sm:$0xff]   ;;  %v5304_v47 = vld [vmem:[%s6863_s3 + $0x28] ss:$16 sps:$4 sm:$0xff]  }
 0x274   :  { %1565 = vmatprep.subr.bf16.mxu0 %v5286_v37  ;;  %1606 = vmatprep.subr.bf16.mxu1 %v5292_v58  ;;  %7317 = vst [vmem:[#allocation80_spill] sm:$0xff] %v5298_v25  ;;  %7318 = vst [vmem:[#allocation81_spill] sm:$0xff] %v5304_v47  ;;  %v5310_v37 = vld [vmem:[%s6863_s3 + $0x4] ss:$16 sps:$4 sm:$0xff]   ;;  %v5316_v58 = vld [vmem:[%s6863_s3 + $0xc] ss:$16 sps:$4 sm:$0xff]  }
 0x275   :  { %7319 = vst [vmem:[#allocation82_spill] sm:$0xff] %v5310_v37  ;;  %7320 = vst [vmem:[#allocation83_spill] sm:$0xff] %v5316_v58 }
 0x277   :  { %1566 = vmatpush1.bf16.msra.mxu0 %v5298_v25  ;;  %1607 = vmatpush1.bf16.msra.mxu1 %v5304_v47  ;;  %v5322_v25 = vld [vmem:[%s6863_s3] ss:$16 sps:$4 sm:$0xff]   ;;  %v5328_v47 = vld [vmem:[%s6863_s3 + $0x8] ss:$16 sps:$4 sm:$0xff]  }
 0x278   :  { %1567 = vmatprep.subr.bf16.mxu0 %v5310_v37  ;;  %1608 = vmatprep.subr.bf16.mxu1 %v5316_v58  ;;  %7321 = vst [vmem:[#allocation84_spill] sm:$0xff] %v5322_v25  ;;  %7322 = vst [vmem:[#allocation85_spill] sm:$0xff] %v5328_v47  ;;  %v5334_v37 = vld [vmem:[%s6864_s5 + $0xe4] ss:$16 sps:$4 sm:$0xff]   ;;  %v5340_v58 = vld [vmem:[%s6864_s5 + $0xec] ss:$16 sps:$4 sm:$0xff]  }
 0x279   :  { %7323 = vst [vmem:[#allocation86_spill] sm:$0xff] %v5334_v37  ;;  %7324 = vst [vmem:[#allocation87_spill] sm:$0xff] %v5340_v58 }
 0x27b   :  { %1568 = vmatpush1.bf16.msra.mxu0 %v5322_v25  ;;  %1609 = vmatpush1.bf16.msra.mxu1 %v5328_v47  ;;  %v165_v25 = vadd.f32 %v4982_v12, %v4537_v48  ;;  %v167_v47 = vadd.f32 %v4986_v14, %v4541_v49  ;;  %v238_v12 = vadd.f32 %v4980_v11, %v4548_v57 }
 0x27c   :  { %1640 = vmatprep.subr.bf16.mxu0 %v5334_v37  ;;  %1681 = vmatprep.subr.bf16.mxu1 %v5340_v58  ;;  %v240_v58 = vadd.f32 %v4984_v13, %v4554_v61 }
 0x2bc   :  { %v1276_v55 = vpop.f32.mrf.mxu0  ;;  %v1317_v1 = vpop.f32.mrf.mxu1 }
 0x2bd   :  { %v1324_v56 = vadd.f32 %v1276_v55, %v165_v25  ;;  %v1326_v48 = vadd.f32 %v1317_v1, %v238_v12 }
 0x2be   :  { %v1278_v45 = vpop.f32.mrf.mxu0  ;;  %v1319_v36 = vpop.f32.mrf.mxu1 }
 0x2bf   :  { %v3539_v44 = vmul.f32 -1.442695, %v1324_v56  ;;  %v1325_v37 = vadd.f32 %v1278_v45, %v167_v47  ;;  %v3541_v14 = vmul.f32 -1.442695, %v1326_v48  ;;  %v1327_v55 = vadd.f32 %v1319_v36, %v240_v58 }
 0x2c0   :  { %v1280_v32 = vpop.f32.mrf.mxu0  ;;  %v1321_v29 = vpop.f32.mrf.mxu1 }
 0x2c1   :  { %3829 = vpow2.f32 %v3539_v44  ;;  %v3540_v18 = vmul.f32 -1.442695, %v1325_v37 }
 0x2c2   :  { %v1281_v17 = vpop.f32.mrf.mxu0  ;;  %v1322_v16 = vpop.f32.mrf.mxu1 }
 0x2c3   :  { %3831 = vpow2.f32 %v3540_v18 }
 0x2c4   :  { %3833 = vpow2.f32 %v3541_v14 }
 0x2c5   :  { %3835 = vtanh.f32 %v1327_v55 }
 0x2ce   :  { %v3830_v25 = vpop.eup %3829 }
 0x2cf   :  { %v1506_v49 = vadd.f32 1.0, %v3830_v25 }
 0x2d0   :  { %v3832_v45 = vpop.eup %3831 }
 0x2d1   :  { %3837 = vrcp.f32 %v1506_v49  ;;  %v1507_v47 = vadd.f32 1.0, %v3832_v45  ;;  %v3834_v56 = vpop.eup %3833 }
 0x2d2   :  { %v3836_v16 = vpop.eup %3835  ;;  %v1508_v11 = vadd.f32 1.0, %v3834_v56 }
 0x2d3   :  { %3839 = vrcp.f32 %v1507_v47 }
 0x2d4   :  { %3841 = vrcp.f32 %v1508_v11  ;;  %v7329_v11 = vld [vmem:[#allocation25_spill] sm:$0xff] }
 0x2de   :  { %v3838_v17 = vpop.eup %3837 }
 0x2df   :  { %v1517_v18 = vmul.f32 %v3838_v17, %v3836_v16 }
 0x2e0   :  { %v3840_v29 = vpop.eup %3839 }
 0x2e1   :  { %v1516_v1 = vmul.f32 %v3840_v29, %v5035_v42  ;;  %v3842_v48 = vpop.eup %3841 }
 0x2e3   :  { %v5352_v32 = vadd.f32 %v1517_v18, %v1516_v1  ;;  %v7331_v1 = vld [vmem:[#allocation27_spill] sm:$0xff] }
 0x2e5   :  { %3843 = vtanh.f32 %v5352_v32 }
 0x2f2   :  { %v3844_v58 = vpop.eup %3843 }
 0x2f3   :  { %v1520_v13 = vmul.f32 %v3844_v58, %v3842_v48  ;;  %v7332_v48 = vld [vmem:[#allocation28_spill] sm:$0xff]  ;;  %v7333_v58 = vld [vmem:[#allocation29_spill] sm:$0xff] }
 0x2f5   :  { %v5355_v44 = vpack.c.bf16 %v1520_v13, %v1520_v13  ;;  %v7334_v13 = vld [vmem:[#allocation30_spill] sm:$0xff] }
 0x2f7   :  { %1586 = vmatmul.mubr.bf16.vlgmr.msra.gmra.mxu0 %v5355_v44  ;;  %1627 = vmatmul.mubr.bf16.vlgmr.msra.gmra.mxu1 %v5355_v44 }
 0x2f8   :  { %1641 = vmatpush1.bf16.msra.mxu0 %v4563_v59  ;;  %1682 = vmatpush1.bf16.msra.mxu1 %v4568_v60 }
 0x2f9   :  { %1642 = vmatprep.subr.bf16.mxu0 %v4575_v63  ;;  %1683 = vmatprep.subr.bf16.mxu1 %v4580_v0 }
 0x2fa   :  { %1672 = vmatprep.mubr.bf16.mxu0 %v7196_v54  ;;  %1713 = vmatprep.mubr.bf16.mxu1 %v7196_v54 }
 0x2fc   :  { %1643 = vmatpush1.bf16.msra.mxu0 %v4589_v2  ;;  %1684 = vmatpush1.bf16.msra.mxu1 %v4594_v3 }
 0x2fd   :  { %1644 = vmatprep.subr.bf16.mxu0 %v4601_v4  ;;  %1685 = vmatprep.subr.bf16.mxu1 %v4606_v5 }
 0x2fe   :  { %v1363_v49 = vpop.f32.mrf.mxu0  ;;  %v1404_v59 = vpop.f32.mrf.mxu1 }
 0x300   :  { %v1365_v42 = vpop.f32.mrf.mxu0  ;;  %v1406_v60 = vpop.f32.mrf.mxu1  ;;  %1645 = vmatpush1.bf16.msra.mxu0 %v4615_v10  ;;  %1686 = vmatpush1.bf16.msra.mxu1 %v4620_v19 }
 0x301   :  { %1646 = vmatprep.subr.bf16.mxu0 %v4627_v28  ;;  %1687 = vmatprep.subr.bf16.mxu1 %v4632_v43  ;;  %v7325_v43 = vld [vmem:[#allocation72_spill] sm:$0xff] }
 0x302   :  { %v1367_v63 = vpop.f32.mrf.mxu0  ;;  %v1408_v0 = vpop.f32.mrf.mxu1 }
 0x303   :  { %v7342_v63 = vld [vmem:[#allocation41_spill] sm:$0xff]  ;;  %v7343_v0 = vld [vmem:[#allocation42_spill] sm:$0xff] }
 0x304   :  { %v1368_v2 = vpop.f32.mrf.mxu0  ;;  %v1409_v3 = vpop.f32.mrf.mxu1  ;;  %1647 = vmatpush1.bf16.msra.mxu0 %v4639_v50  ;;  %1688 = vmatpush1.bf16.msra.mxu1 %v4644_v51 }
 0x305   :  { %1648 = vmatprep.subr.bf16.mxu0 %v4651_v46  ;;  %1689 = vmatprep.subr.bf16.mxu1 %v4656_v53  ;;  %v7344_v2 = vld [vmem:[#allocation43_spill] sm:$0xff]  ;;  %v7345_v3 = vld [vmem:[#allocation44_spill] sm:$0xff] }
 0x308   :  { %1649 = vmatpush1.bf16.msra.mxu0 %v7249_v34  ;;  %1690 = vmatpush1.bf16.msra.mxu1 %v7250_v35  ;;  %v7326_v34 = vld [vmem:[#allocation73_spill] sm:$0xff] }
 0x309   :  { %1650 = vmatprep.subr.bf16.mxu0 %v7251_v27  ;;  %1691 = vmatprep.subr.bf16.mxu1 %v7252_v39 }
 0x30c   :  { %1651 = vmatpush1.bf16.msra.mxu0 %v7255_v7  ;;  %1692 = vmatpush1.bf16.msra.mxu1 %v7256_v9 }
 0x30d   :  { %1652 = vmatprep.subr.bf16.mxu0 %v7257_v30  ;;  %1693 = vmatprep.subr.bf16.mxu1 %v7258_v26 }
 0x310   :  { %1653 = vmatpush1.bf16.msra.mxu0 %v7259_v22  ;;  %1694 = vmatpush1.bf16.msra.mxu1 %v7260_v6 }
 0x311   :  { %1654 = vmatprep.subr.bf16.mxu0 %v7261_v52  ;;  %1695 = vmatprep.subr.bf16.mxu1 %v7262_v33  ;;  %v7328_v52 = vld [vmem:[#allocation6_spill] sm:$0xff] }
 0x314   :  { %1655 = vmatpush1.bf16.msra.mxu0 %v7263_v20  ;;  %1696 = vmatpush1.bf16.msra.mxu1 %v7264_v24 }
 0x315   :  { %1722 = vmatprep.subr.bf16.mxu0 %v7265_v62  ;;  %1763 = vmatprep.subr.bf16.mxu1 %v7266_v23  ;;  %v7327_v23 = vld [vmem:[#allocation74_spill] sm:$0xff] }
 0x31e   :  { %v1445_v4 = vpop.f32.mrf.mxu0  ;;  %v1486_v5 = vpop.f32.mrf.mxu1 }
 0x31f   :  { %v1446_v10 = vadd.f32 %v1445_v4, %v1363_v49  ;;  %v1487_v7 = vadd.f32 %v1486_v5, %v1404_v59  ;;  %v7338_v49 = vld [vmem:[#allocation34_spill] sm:$0xff]  ;;  %v7346_v4 = vld [vmem:[#allocation45_spill] sm:$0xff] }
 0x320   :  { %v1447_v19 = vpop.f32.mrf.mxu0  ;;  %v1488_v28 = vpop.f32.mrf.mxu1  ;;  %v7339_v59 = vld [vmem:[#allocation38_spill] sm:$0xff]  ;;  %v7350_v5 = vld [vmem:[#allocation49_spill] sm:$0xff] }
 0x321   :  { %v1493_v50 = vadd.f32 %v1446_v10, %v7325_v43  ;;  %v1448_v51 = vadd.f32 %v1447_v19, %v1365_v42  ;;  %v1495_v9 = vadd.f32 %v1487_v7, %v7327_v23  ;;  %v1489_v30 = vadd.f32 %v1488_v28, %v1406_v60  ;;  %v7340_v42 = vld [vmem:[#allocation39_spill] sm:$0xff]  ;;  %v7341_v60 = vld [vmem:[#allocation40_spill] sm:$0xff]  ;;  %v7351_v10 = vld [vmem:[#allocation50_spill] sm:$0xff] }
 0x322   :  { %v1449_v46 = vpop.f32.mrf.mxu0  ;;  %v1490_v53 = vpop.f32.mrf.mxu1  ;;  %v7352_v19 = vld [vmem:[#allocation51_spill] sm:$0xff]  ;;  %v7364_v7 = vld [vmem:[#allocation18_spill] sm:$0xff] }
 0x323   :  { %v3542_v22 = vmul.f32 -1.442695, %v1493_v50  ;;  %v1494_v35 = vadd.f32 %v1448_v51, %v7326_v34  ;;  %v3544_v26 = vmul.f32 -1.442695, %v1495_v9  ;;  %v1496_v33 = vadd.f32 %v1489_v30, %v7328_v52  ;;  %v7353_v28 = vld [vmem:[#allocation7_spill] sm:$0xff]  ;;  %v7354_v50 = vld [vmem:[#allocation8_spill] sm:$0xff] }
 0x324   :  { %v1450_v20 = vpop.f32.mrf.mxu0  ;;  %v1491_v27 = vpop.f32.mrf.mxu1  ;;  %v7355_v51 = vld [vmem:[#allocation9_spill] sm:$0xff]  ;;  %v7356_v46 = vld [vmem:[#allocation10_spill] sm:$0xff]  ;;  %v7357_v53 = vld [vmem:[#allocation11_spill] sm:$0xff] }
 0x325   :  { %3845 = vpow2.f32 %v3542_v22  ;;  %v3543_v39 = vmul.f32 -1.442695, %v1494_v35  ;;  %v7358_v22 = vld [vmem:[#allocation12_spill] sm:$0xff]  ;;  %v7359_v35 = vld [vmem:[#allocation13_spill] sm:$0xff]  ;;  %v7360_v20 = vld [vmem:[#allocation14_spill] sm:$0xff] }
 0x326   :  { %v7361_v27 = vld [vmem:[#allocation15_spill] sm:$0xff]  ;;  %v7366_v30 = vld [vmem:[#allocation20_spill] sm:$0xff] }
 0x327   :  { %3847 = vpow2.f32 %v3543_v39  ;;  %v7362_v39 = vld [vmem:[#allocation16_spill] sm:$0xff]  ;;  %v7365_v9 = vld [vmem:[#allocation19_spill] sm:$0xff] }
 0x328   :  { %3849 = vpow2.f32 %v3544_v26  ;;  %v7367_v26 = vld [vmem:[#allocation21_spill] sm:$0xff] }
 0x332   :  { %v3846_v6 = vpop.eup %3845 }
 0x333   :  { %v1530_v24 = vadd.f32 1.0, %v3846_v6  ;;  %v7368_v6 = vld [vmem:[#allocation22_spill] sm:$0xff] }
 0x334   :  { %v3848_v62 = vpop.eup %3847 }
 0x335   :  { %3851 = vrcp.f32 %v1530_v24  ;;  %v1531_v36 = vadd.f32 1.0, %v3848_v62  ;;  %v3850_v37 = vpop.eup %3849  ;;  %v7370_v24 = vld [vmem:[#allocation24_spill] sm:$0xff]  ;;  %v7371_v62 = vld [vmem:[#allocation35_spill] sm:$0xff] }
 0x336   :  { %3853 = vtanh.f32 %v1496_v33  ;;  %v1532_v25 = vadd.f32 1.0, %v3850_v37  ;;  %v7369_v33 = vld [vmem:[#allocation23_spill] sm:$0xff]  ;;  %v7373_v37 = vld [vmem:[#allocation37_spill] sm:$0xff] }
 0x337   :  { %3855 = vrcp.f32 %v1531_v36  ;;  %v7372_v36 = vld [vmem:[#allocation36_spill] sm:$0xff] }
 0x338   :  { %3857 = vrcp.f32 %v1532_v25  ;;  %v7377_v25 = vld [vmem:[#allocation78_spill] sm:$0xff] }
 0x342   :  { %v3852_v12 = vpop.eup %3851 }
 0x343   :  { %v3854_v14 = vpop.eup %3853 }
 0x344   :  { %v3856_v55 = vpop.eup %3855  ;;  %v1541_v47 = vmul.f32 %v3854_v14, %v3852_v12  ;;  %v7374_v12 = vld [vmem:[#allocation75_spill] sm:$0xff]  ;;  %v7375_v14 = vld [vmem:[#allocation76_spill] sm:$0xff] }
 0x345   :  { %v1540_v45 = vmul.f32 %v3856_v55, %v5100_v38  ;;  %v3858_v16 = vpop.eup %3857  ;;  %v7330_v38 = vld [vmem:[#allocation26_spill] sm:$0xff]  ;;  %v7376_v55 = vld [vmem:[#allocation77_spill] sm:$0xff] }
 0x347   :  { %v5398_v56 = vadd.f32 %v1541_v47, %v1540_v45  ;;  %v7378_v45 = vld [vmem:[#allocation79_spill] sm:$0xff]  ;;  %v7379_v47 = vld [vmem:[#allocation80_spill] sm:$0xff] }
 0x349   :  { %3859 = vtanh.f32 %v5398_v56 }
 0x356   :  { %v3860_v17 = vpop.eup %3859 }
 0x357   :  { %v1544_v18 = vmul.f32 %v3860_v17, %v3858_v16  ;;  %v7380_v16 = vld [vmem:[#allocation81_spill] sm:$0xff]  ;;  %v7381_v17 = vld [vmem:[#allocation82_spill] sm:$0xff] }
 0x359   :  { %v1639_v29 = vpack.c.bf16 %v1544_v18, %v1544_v18  ;;  %v7382_v18 = vld [vmem:[#allocation83_spill] sm:$0xff] }
 0x35b   :  { %1673 = vmatmul.mubr.bf16.vlgmr.msra.gmra.mxu0 %v1639_v29  ;;  %1714 = vmatmul.mubr.bf16.vlgmr.msra.gmra.mxu1 %v1639_v29  ;;  %v7383_v29 = vld [vmem:[#allocation84_spill] sm:$0xff] }
 0x35c   :  { %1723 = vmatpush1.bf16.msra.mxu0 %v7267_v31  ;;  %1764 = vmatpush1.bf16.msra.mxu1 %v7268_v8  ;;  %v7335_v31 = vld [vmem:[#allocation31_spill] sm:$0xff]  ;;  %v7336_v8 = vld [vmem:[#allocation32_spill] sm:$0xff] }
 0x35d   :  { %1724 = vmatprep.subr.bf16.mxu0 %v7269_v40  ;;  %1765 = vmatprep.subr.bf16.mxu1 %v7329_v11  ;;  %v7337_v40 = vld [vmem:[#allocation33_spill] sm:$0xff] }
 0x35e   :  { %1754 = vmatprep.mubr.bf16.mxu0 %v7196_v54  ;;  %1795 = vmatprep.mubr.bf16.mxu1 %v7196_v54  ;;  %v7384_v11 = vld [vmem:[#allocation85_spill] sm:$0xff] }
 0x360   :  { %1725 = vmatpush1.bf16.msra.mxu0 %v7330_v38  ;;  %1766 = vmatpush1.bf16.msra.mxu1 %v7331_v1  ;;  %v7385_v38 = vld [vmem:[#allocation86_spill] sm:$0xff]  ;;  %v7386_v1 = vld [vmem:[#allocation87_spill] sm:$0xff] }
 0x361   :  { %1726 = vmatprep.subr.bf16.mxu0 %v7332_v48  ;;  %1767 = vmatprep.subr.bf16.mxu1 %v7333_v58  ;;  %v7387_v48 = vld [vmem:[#allocation3_spill] sm:$0xff]  ;;  %v7388_v58 = vld [vmem:[#allocation53_spill] sm:$0xff] }
 0x364   :  { %1727 = vmatpush1.bf16.msra.mxu0 %v7334_v13  ;;  %1768 = vmatpush1.bf16.msra.mxu1 %v7335_v31  ;;  %v169_v13 = vadd.f32 %v7388_v58, %v7387_v48  ;;  %v7392_v58 = vld [vmem:[#allocation54_spill] sm:$0xff] }
 0x365   :  { %1728 = vmatprep.subr.bf16.mxu0 %v7336_v8  ;;  %1769 = vmatprep.subr.bf16.mxu1 %v7337_v40  ;;  %v7389_v40 = vld [vmem:[#allocation4_spill] sm:$0xff] }
 0x368   :  { %1729 = vmatpush1.bf16.msra.mxu0 %v7338_v49  ;;  %1770 = vmatpush1.bf16.msra.mxu1 %v7280_v41  ;;  %v7347_v41 = vld [vmem:[#allocation46_spill] sm:$0xff]  ;;  %v7390_v49 = vld [vmem:[#allocation55_spill] sm:$0xff] }
 0x369   :  { %1730 = vmatprep.subr.bf16.mxu0 %v7281_v21  ;;  %1771 = vmatprep.subr.bf16.mxu1 %v7282_v15  ;;  %v7348_v21 = vld [vmem:[#allocation47_spill] sm:$0xff]  ;;  %v7349_v15 = vld [vmem:[#allocation48_spill] sm:$0xff] }
 0x36c   :  { %1731 = vmatpush1.bf16.msra.mxu0 %v7339_v59  ;;  %1772 = vmatpush1.bf16.msra.mxu1 %v7340_v42  ;;  %v171_v59 = vadd.f32 %v7390_v49, %v7389_v40 }
 0x36d   :  { %1732 = vmatprep.subr.bf16.mxu0 %v7341_v60  ;;  %1773 = vmatprep.subr.bf16.mxu1 %v7342_v63 }
 0x370   :  { %1733 = vmatpush1.bf16.msra.mxu0 %v7343_v0  ;;  %1774 = vmatpush1.bf16.msra.mxu1 %v7344_v2 }
 0x371   :  { %1734 = vmatprep.subr.bf16.mxu0 %v7345_v3  ;;  %1775 = vmatprep.subr.bf16.mxu1 %v7346_v4 }
 0x374   :  { %1735 = vmatpush1.bf16.msra.mxu0 %v7347_v41  ;;  %1776 = vmatpush1.bf16.msra.mxu1 %v7348_v21 }
 0x375   :  { %1736 = vmatprep.subr.bf16.mxu0 %v7349_v15  ;;  %1777 = vmatprep.subr.bf16.mxu1 %v7350_v5  ;;  %v7391_v5 = vld [vmem:[#allocation52_spill] sm:$0xff] }
 0x378   :  { %1737 = vmatpush1.bf16.msra.mxu0 %v7351_v10  ;;  %1778 = vmatpush1.bf16.msra.mxu1 %v7352_v19  ;;  %v242_v10 = vadd.f32 %v7391_v5, %v4548_v57 }
 0x379   :  { %1864 = vmatprep.subr.bf16.mxu0 %v7353_v28  ;;  %1905 = vmatprep.subr.bf16.mxu1 %v7354_v50 }
 0x37b   :  { %1755 = vmatmul.mubr.bf16.vlgmr.msra.gmra.mxu0 %v5355_v44  ;;  %1796 = vmatmul.mubr.bf16.vlgmr.msra.gmra.mxu1 %v5355_v44  ;;  %v7363_v44 = vld [vmem:[#allocation17_spill] sm:$0xff] }
 0x37c   :  { %1865 = vmatpush1.bf16.msra.mxu0 %v7355_v51  ;;  %1906 = vmatpush1.bf16.msra.mxu1 %v7356_v46 }
 0x37d   :  { %1866 = vmatprep.subr.bf16.mxu0 %v7357_v53  ;;  %1907 = vmatprep.subr.bf16.mxu1 %v7358_v22 }
 0x37e   :  { %1896 = vmatprep.mubr.bf16.mxu0 %v7196_v54  ;;  %1937 = vmatprep.mubr.bf16.mxu1 %v7196_v54 }
 0x380   :  { %1867 = vmatpush1.bf16.msra.mxu0 %v7359_v35  ;;  %1908 = vmatpush1.bf16.msra.mxu1 %v7360_v20 }
 0x381   :  { %1868 = vmatprep.subr.bf16.mxu0 %v7361_v27  ;;  %1909 = vmatprep.subr.bf16.mxu1 %v7362_v39 }
 0x384   :  { %1869 = vmatpush1.bf16.msra.mxu0 %v7363_v44  ;;  %1910 = vmatpush1.bf16.msra.mxu1 %v7364_v7 }
 0x385   :  { %1870 = vmatprep.subr.bf16.mxu0 %v7365_v9  ;;  %1911 = vmatprep.subr.bf16.mxu1 %v7366_v30 }
 0x388   :  { %1871 = vmatpush1.bf16.msra.mxu0 %v7367_v26  ;;  %1912 = vmatpush1.bf16.msra.mxu1 %v7368_v6 }
 0x389   :  { %1872 = vmatprep.subr.bf16.mxu0 %v7369_v33  ;;  %1913 = vmatprep.subr.bf16.mxu1 %v7370_v24 }
 0x38c   :  { %1873 = vmatpush1.bf16.msra.mxu0 %v7371_v62  ;;  %1914 = vmatpush1.bf16.msra.mxu1 %v7372_v36 }
 0x38d   :  { %1874 = vmatprep.subr.bf16.mxu0 %v7373_v37  ;;  %1915 = vmatprep.subr.bf16.mxu1 %v7374_v12 }
 0x390   :  { %1875 = vmatpush1.bf16.msra.mxu0 %v7375_v14  ;;  %1916 = vmatpush1.bf16.msra.mxu1 %v7376_v55 }
 0x391   :  { %1876 = vmatprep.subr.bf16.mxu0 %v7377_v25  ;;  %1917 = vmatprep.subr.bf16.mxu1 %v7378_v45 }
 0x394   :  { %1877 = vmatpush1.bf16.msra.mxu0 %v7379_v47  ;;  %1918 = vmatpush1.bf16.msra.mxu1 %v7380_v16 }
 0x395   :  { %1878 = vmatprep.subr.bf16.mxu0 %v7381_v17  ;;  %1919 = vmatprep.subr.bf16.mxu1 %v7382_v18 }
 0x398   :  { %1879 = vmatpush1.bf16.msra.mxu0 %v7383_v29  ;;  %1920 = vmatpush1.bf16.msra.mxu1 %v7384_v11 }
 0x399   :  { %1951 = vmatprep.subr.bf16.mxu0 %v7385_v38  ;;  %1992 = vmatprep.subr.bf16.mxu1 %v7386_v1  ;;  %v244_v1 = vadd.f32 %v7392_v58, %v4554_v61  ;;  %v5516_v58 = vld [vmem:[%s6864_s5 + $0xc0] ss:$16 sps:$4 sm:$0xff]  }
 0x39a   :  { %7398 = vst [vmem:[#allocation26_spill] sm:$0xff] %v5516_v58 }
 0x3b7   :  { %v1587_v31 = vpop.f32.mrf.mxu0  ;;  %v1628_v8 = vpop.f32.mrf.mxu1 }
 0x3b8   :  { %v1635_v42 = vadd.f32 %v1587_v31, %v169_v13  ;;  %v1637_v19 = vadd.f32 %v1628_v8, %v242_v10  ;;  %v5502_v10 = vld [vmem:[%s6864_s5 + $0xc4] ss:$16 sps:$4 sm:$0xff]  }
 0x3b9   :  { %v1589_v60 = vpop.f32.mrf.mxu0  ;;  %v1630_v63 = vpop.f32.mrf.mxu1  ;;  %7396 = vst [vmem:[#allocation6_spill] sm:$0xff] %v5502_v10 }
 0x3ba   :  { %v3545_v0 = vmul.f32 -1.442695, %v1635_v42  ;;  %v1636_v2 = vadd.f32 %v1589_v60, %v171_v59  ;;  %v3547_v49 = vmul.f32 -1.442695, %v1637_v19  ;;  %v1638_v13 = vadd.f32 %v1630_v63, %v244_v1  ;;  %v5508_v19 = vld [vmem:[%s6864_s5 + $0xcc] ss:$16 sps:$4 sm:$0xff]  }
 0x3bb   :  { %v1591_v3 = vpop.f32.mrf.mxu0  ;;  %v1632_v4 = vpop.f32.mrf.mxu1  ;;  %7397 = vst [vmem:[#allocation25_spill] sm:$0xff] %v5508_v19 }
 0x3bc   :  { %3861 = vpow2.f32 %v3545_v0  ;;  %v3546_v41 = vmul.f32 -1.442695, %v1636_v2 }
 0x3bd   :  { %v1592_v21 = vpop.f32.mrf.mxu0  ;;  %v1633_v15 = vpop.f32.mrf.mxu1 }
 0x3be   :  { %3863 = vpow2.f32 %v3546_v41 }
 0x3bf   :  { %3865 = vpow2.f32 %v3547_v49  ;;  %v5522_v49 = vld [vmem:[%s6864_s5 + $0xc8] ss:$16 sps:$4 sm:$0xff]  }
 0x3c0   :  { %3867 = vtanh.f32 %v1638_v13  ;;  %7399 = vst [vmem:[#allocation27_spill] sm:$0xff] %v5522_v49  ;;  %v5528_v13 = vld [vmem:[%s6864_s5 + $0xa4] ss:$16 sps:$4 sm:$0xff]  }
 0x3c1   :  { %7400 = vst [vmem:[#allocation28_spill] sm:$0xff] %v5528_v13 }
 0x3c9   :  { %v3862_v31 = vpop.eup %3861 }
 0x3ca   :  { %v1817_v38 = vadd.f32 1.0, %v3862_v31  ;;  %v5534_v31 = vld [vmem:[%s6864_s5 + $0xac] ss:$16 sps:$4 sm:$0xff]  }
 0x3cb   :  { %v3864_v59 = vpop.eup %3863  ;;  %7401 = vst [vmem:[#allocation29_spill] sm:$0xff] %v5534_v31 }
 0x3cc   :  { %3869 = vrcp.f32 %v1817_v38  ;;  %v1818_v42 = vadd.f32 1.0, %v3864_v59  ;;  %v3866_v60 = vpop.eup %3865  ;;  %v5490_v38 = vld [vmem:[%s6864_s5 + $0xe0] ss:$16 sps:$4 sm:$0xff]  }
 0x3cd   :  { %v3868_v0 = vpop.eup %3867  ;;  %v1819_v41 = vadd.f32 1.0, %v3866_v60  ;;  %7394 = vst [vmem:[#allocation73_spill] sm:$0xff] %v5490_v38  ;;  %v5540_v59 = vld [vmem:[%s6864_s5 + $0xa0] ss:$16 sps:$4 sm:$0xff]   ;;  %v5552_v60 = vld [vmem:[%s6864_s5 + $0x84] ss:$16 sps:$4 sm:$0xff]  }
 0x3ce   :  { %3871 = vrcp.f32 %v1818_v42  ;;  %7402 = vst [vmem:[#allocation30_spill] sm:$0xff] %v5540_v59  ;;  %v5546_v42 = vld [vmem:[%s6864_s5 + $0xa8] ss:$16 sps:$4 sm:$0xff]   ;;  %7404 = vst [vmem:[#allocation32_spill] sm:$0xff] %v5552_v60 }
 0x3cf   :  { %3873 = vrcp.f32 %v1819_v41  ;;  %7403 = vst [vmem:[#allocation31_spill] sm:$0xff] %v5546_v42  ;;  %v5582_v41 = vld [vmem:[%s6864_s5 + $0x6c] ss:$16 sps:$4 sm:$0xff]  }
 0x3d0   :  { %7409 = vst [vmem:[#allocation40_spill] sm:$0xff] %v5582_v41 }
 0x3d9   :  { %v3870_v2 = vpop.eup %3869 }
 0x3da   :  { %v1828_v3 = vmul.f32 %v3870_v2, %v3868_v0  ;;  %v5558_v0 = vld [vmem:[%s6864_s5 + $0x8c] ss:$16 sps:$4 sm:$0xff]   ;;  %v5564_v2 = vld [vmem:[%s6864_s5 + $0x80] ss:$16 sps:$4 sm:$0xff]  }
 0x3db   :  { %v3872_v4 = vpop.eup %3871  ;;  %7405 = vst [vmem:[#allocation33_spill] sm:$0xff] %v5558_v0  ;;  %7406 = vst [vmem:[#allocation34_spill] sm:$0xff] %v5564_v2 }
 0x3dc   :  { %v1827_v8 = vmul.f32 %v3872_v4, %v5352_v32  ;;  %v3874_v1 = vpop.eup %3873  ;;  %v5496_v32 = vld [vmem:[%s6864_s5 + $0xe8] ss:$16 sps:$4 sm:$0xff]   ;;  %v5576_v4 = vld [vmem:[%s6864_s5 + $0x64] ss:$16 sps:$4 sm:$0xff]  }
 0x3dd   :  { %7395 = vst [vmem:[#allocation74_spill] sm:$0xff] %v5496_v32  ;;  %7408 = vst [vmem:[#allocation39_spill] sm:$0xff] %v5576_v4 }
 0x3de   :  { %v5480_v21 = vadd.f32 %v1828_v3, %v1827_v8  ;;  %v5570_v3 = vld [vmem:[%s6864_s5 + $0x88] ss:$16 sps:$4 sm:$0xff]   ;;  %v5588_v8 = vld [vmem:[%s6864_s5 + $0x60] ss:$16 sps:$4 sm:$0xff]  }
 0x3df   :  { %7407 = vst [vmem:[#allocation38_spill] sm:$0xff] %v5570_v3  ;;  %7410 = vst [vmem:[#allocation41_spill] sm:$0xff] %v5588_v8 }
 0x3e0   :  { %7393 = vst [vmem:[#allocation72_spill] sm:$0xff] %v5480_v21  ;;  %3875 = vtanh.f32 %v5480_v21 }
 0x3ed   :  { %v3876_v63 = vpop.eup %3875 }
 0x3ee   :  { %v1831_v15 = vmul.f32 %v3876_v63, %v3874_v1  ;;  %v5594_v1 = vld [vmem:[%s6864_s5 + $0x68] ss:$16 sps:$4 sm:$0xff]   ;;  %v5600_v63 = vld [vmem:[%s6864_s5 + $0x44] ss:$16 sps:$4 sm:$0xff]  }
 0x3ef   :  { %7411 = vst [vmem:[#allocation42_spill] sm:$0xff] %v5594_v1  ;;  %7412 = vst [vmem:[#allocation43_spill] sm:$0xff] %v5600_v63 }
 0x3f0   :  { %v5483_v5 = vpack.c.bf16 %v1831_v15, %v1831_v15  ;;  %v5606_v15 = vld [vmem:[%s6864_s5 + $0x4c] ss:$16 sps:$4 sm:$0xff]  }
 0x3f1   :  { %7413 = vst [vmem:[#allocation44_spill] sm:$0xff] %v5606_v15 }
 0x3f2   :  { %1897 = vmatmul.mubr.bf16.vlgmr.msra.gmra.mxu0 %v5483_v5  ;;  %1938 = vmatmul.mubr.bf16.vlgmr.msra.gmra.mxu1 %v5483_v5 }
 0x3f3   :  { %1952 = vmatpush1.bf16.msra.mxu0 %v5490_v38  ;;  %1993 = vmatpush1.bf16.msra.mxu1 %v5496_v32 }
 0x3f4   :  { %1953 = vmatprep.subr.bf16.mxu0 %v5502_v10  ;;  %1994 = vmatprep.subr.bf16.mxu1 %v5508_v19 }
 0x3f5   :  { %1983 = vmatprep.mubr.bf16.mxu0 %v7196_v54  ;;  %2024 = vmatprep.mubr.bf16.mxu1 %v7196_v54 }
 0x3f7   :  { %1954 = vmatpush1.bf16.msra.mxu0 %v5516_v58  ;;  %1995 = vmatpush1.bf16.msra.mxu1 %v5522_v49 }
 0x3f8   :  { %1955 = vmatprep.subr.bf16.mxu0 %v5528_v13  ;;  %1996 = vmatprep.subr.bf16.mxu1 %v5534_v31 }
 0x3fb   :  { %1956 = vmatpush1.bf16.msra.mxu0 %v5540_v59  ;;  %1997 = vmatpush1.bf16.msra.mxu1 %v5546_v42 }
 0x3fc   :  { %1957 = vmatprep.subr.bf16.mxu0 %v5552_v60  ;;  %1998 = vmatprep.subr.bf16.mxu1 %v5558_v0 }
 0x3ff   :  { %1958 = vmatpush1.bf16.msra.mxu0 %v5564_v2  ;;  %1999 = vmatpush1.bf16.msra.mxu1 %v5570_v3 }
 0x400   :  { %1959 = vmatprep.subr.bf16.mxu0 %v5576_v4  ;;  %2000 = vmatprep.subr.bf16.mxu1 %v5582_v41 }
 0x403   :  { %1960 = vmatpush1.bf16.msra.mxu0 %v5588_v8  ;;  %2001 = vmatpush1.bf16.msra.mxu1 %v5594_v1  ;;  %v5612_v8 = vld [vmem:[%s6864_s5 + $0x40] ss:$16 sps:$4 sm:$0xff]   ;;  %v5618_v1 = vld [vmem:[%s6864_s5 + $0x48] ss:$16 sps:$4 sm:$0xff]  }
 0x404   :  { %1961 = vmatprep.subr.bf16.mxu0 %v5600_v63  ;;  %2002 = vmatprep.subr.bf16.mxu1 %v5606_v15  ;;  %7414 = vst [vmem:[#allocation45_spill] sm:$0xff] %v5612_v8  ;;  %7415 = vst [vmem:[#allocation46_spill] sm:$0xff] %v5618_v1  ;;  %v5624_v63 = vld [vmem:[%s6864_s5 + $0x24] ss:$16 sps:$4 sm:$0xff]   ;;  %v5630_v15 = vld [vmem:[%s6864_s5 + $0x2c] ss:$16 sps:$4 sm:$0xff]  }
 0x405   :  { %7416 = vst [vmem:[#allocation47_spill] sm:$0xff] %v5624_v63  ;;  %7417 = vst [vmem:[#allocation48_spill] sm:$0xff] %v5630_v15 }
 0x407   :  { %1962 = vmatpush1.bf16.msra.mxu0 %v5612_v8  ;;  %2003 = vmatpush1.bf16.msra.mxu1 %v5618_v1  ;;  %v5636_v8 = vld [vmem:[%s6864_s5 + $0x20] ss:$16 sps:$4 sm:$0xff]   ;;  %v5642_v1 = vld [vmem:[%s6864_s5 + $0x28] ss:$16 sps:$4 sm:$0xff]  }
 0x408   :  { %1963 = vmatprep.subr.bf16.mxu0 %v5624_v63  ;;  %2004 = vmatprep.subr.bf16.mxu1 %v5630_v15  ;;  %7418 = vst [vmem:[#allocation49_spill] sm:$0xff] %v5636_v8  ;;  %7419 = vst [vmem:[#allocation50_spill] sm:$0xff] %v5642_v1  ;;  %v5648_v63 = vld [vmem:[%s6864_s5 + $0x4] ss:$16 sps:$4 sm:$0xff]   ;;  %v5654_v15 = vld [vmem:[%s6864_s5 + $0xc] ss:$16 sps:$4 sm:$0xff]  }
 0x409   :  { %7420 = vst [vmem:[#allocation51_spill] sm:$0xff] %v5648_v63  ;;  %7421 = vst [vmem:[#allocation7_spill] sm:$0xff] %v5654_v15 }
 0x40b   :  { %1964 = vmatpush1.bf16.msra.mxu0 %v5636_v8  ;;  %2005 = vmatpush1.bf16.msra.mxu1 %v5642_v1  ;;  %v5660_v8 = vld [vmem:[%s6864_s5] ss:$16 sps:$4 sm:$0xff]   ;;  %v5666_v1 = vld [vmem:[%s6864_s5 + $0x8] ss:$16 sps:$4 sm:$0xff]  }
 0x40c   :  { %1965 = vmatprep.subr.bf16.mxu0 %v5648_v63  ;;  %2006 = vmatprep.subr.bf16.mxu1 %v5654_v15  ;;  %7422 = vst [vmem:[#allocation8_spill] sm:$0xff] %v5660_v8  ;;  %7423 = vst [vmem:[#allocation9_spill] sm:$0xff] %v5666_v1  ;;  %v5672_v63 = vld [vmem:[%s6865_s4 + $0xe4] ss:$16 sps:$4 sm:$0xff]   ;;  %v5678_v15 = vld [vmem:[%s6865_s4 + $0xec] ss:$16 sps:$4 sm:$0xff]  }
 0x40d   :  { %7424 = vst [vmem:[#allocation10_spill] sm:$0xff] %v5672_v63  ;;  %7425 = vst [vmem:[#allocation11_spill] sm:$0xff] %v5678_v15 }
 0x40f   :  { %1966 = vmatpush1.bf16.msra.mxu0 %v5660_v8  ;;  %2007 = vmatpush1.bf16.msra.mxu1 %v5666_v1 }
 0x410   :  { %2033 = vmatprep.subr.bf16.mxu0 %v5672_v63  ;;  %2074 = vmatprep.subr.bf16.mxu1 %v5678_v15 }
 0x41b   :  { %v1674_v8 = vpop.f32.mrf.mxu0  ;;  %v1715_v41 = vpop.f32.mrf.mxu1 }
 0x41d   :  { %v1676_v4 = vpop.f32.mrf.mxu0  ;;  %v1717_v3 = vpop.f32.mrf.mxu1 }
 0x41f   :  { %v1678_v2 = vpop.f32.mrf.mxu0  ;;  %v1719_v1 = vpop.f32.mrf.mxu1 }
 0x421   :  { %v1679_v0 = vpop.f32.mrf.mxu0  ;;  %v1720_v60 = vpop.f32.mrf.mxu1 }
 0x43b   :  { %v1756_v42 = vpop.f32.mrf.mxu0  ;;  %v1797_v59 = vpop.f32.mrf.mxu1 }
 0x43c   :  { %v1757_v31 = vadd.f32 %v1756_v42, %v1674_v8  ;;  %v1798_v0 = vadd.f32 %v1797_v59, %v1715_v41 }
 0x43d   :  { %v1758_v13 = vpop.f32.mrf.mxu0  ;;  %v1799_v63 = vpop.f32.mrf.mxu1 }
 0x43e   :  { %v1804_v49 = vadd.f32 %v1757_v31, %v7325_v43  ;;  %v1759_v58 = vadd.f32 %v1758_v13, %v1676_v4  ;;  %v1806_v60 = vadd.f32 %v1798_v0, %v7327_v23  ;;  %v1800_v1 = vadd.f32 %v1799_v63, %v1717_v3  ;;  %v5710_v0 = vld [vmem:[%s6865_s4 + $0xcc] ss:$16 sps:$4 sm:$0xff]  }
 0x43f   :  { %v1760_v19 = vpop.f32.mrf.mxu0  ;;  %v1801_v10 = vpop.f32.mrf.mxu1 }
 0x440   :  { %v3548_v32 = vmul.f32 -1.442695, %v1804_v49  ;;  %v1805_v15 = vadd.f32 %v1759_v58, %v7326_v34  ;;  %v3550_v42 = vmul.f32 -1.442695, %v1806_v60  ;;  %v1807_v61 = vadd.f32 %v1800_v1, %v7328_v52  ;;  %v5718_v60 = vld [vmem:[%s6865_s4 + $0xc0] ss:$16 sps:$4 sm:$0xff]  }
 0x441   :  { %v1761_v38 = vpop.f32.mrf.mxu0  ;;  %v1802_v21 = vpop.f32.mrf.mxu1  ;;  %v5724_v1 = vld [vmem:[%s6865_s4 + $0xc8] ss:$16 sps:$4 sm:$0xff]  }
 0x442   :  { %3877 = vpow2.f32 %v3548_v32  ;;  %v3549_v2 = vmul.f32 -1.442695, %v1805_v15 }
 0x444   :  { %3879 = vpow2.f32 %v3549_v2  ;;  %v5704_v2 = vld [vmem:[%s6865_s4 + $0xc4] ss:$16 sps:$4 sm:$0xff]  }
 0x445   :  { %3881 = vpow2.f32 %v3550_v42  ;;  %v5730_v42 = vld [vmem:[%s6865_s4 + $0xa4] ss:$16 sps:$4 sm:$0xff]  }
 0x44f   :  { %v3878_v8 = vpop.eup %3877 }
 0x450   :  { %v1841_v31 = vadd.f32 1.0, %v3878_v8  ;;  %v5736_v8 = vld [vmem:[%s6865_s4 + $0xac] ss:$16 sps:$4 sm:$0xff]  }
 0x451   :  { %v3880_v13 = vpop.eup %3879 }
 0x452   :  { %3883 = vrcp.f32 %v1841_v31  ;;  %v1842_v10 = vadd.f32 1.0, %v3880_v13  ;;  %v3882_v38 = vpop.eup %3881  ;;  %v5742_v31 = vld [vmem:[%s6865_s4 + $0xa0] ss:$16 sps:$4 sm:$0xff]   ;;  %v5748_v13 = vld [vmem:[%s6865_s4 + $0xa8] ss:$16 sps:$4 sm:$0xff]  }
 0x453   :  { %3885 = vtanh.f32 %v1807_v61  ;;  %v1843_v58 = vadd.f32 1.0, %v3882_v38  ;;  %v5692_v61 = vld [vmem:[%s6865_s4 + $0xe0] ss:$16 sps:$4 sm:$0xff]   ;;  %v5760_v38 = vld [vmem:[%s6865_s4 + $0x8c] ss:$16 sps:$4 sm:$0xff]  }
 0x454   :  { %3887 = vrcp.f32 %v1842_v10  ;;  %v5754_v10 = vld [vmem:[%s6865_s4 + $0x84] ss:$16 sps:$4 sm:$0xff]  }
 0x455   :  { %3889 = vrcp.f32 %v1843_v58  ;;  %v5784_v58 = vld [vmem:[%s6865_s4 + $0x6c] ss:$16 sps:$4 sm:$0xff]  }
 0x45f   :  { %v3884_v21 = vpop.eup %3883 }
 0x460   :  { %v3886_v32 = vpop.eup %3885 }
 0x461   :  { %v3888_v19 = vpop.eup %3887  ;;  %v1852_v59 = vmul.f32 %v3886_v32, %v3884_v21  ;;  %v5766_v21 = vld [vmem:[%s6865_s4 + $0x80] ss:$16 sps:$4 sm:$0xff]   ;;  %v5772_v32 = vld [vmem:[%s6865_s4 + $0x88] ss:$16 sps:$4 sm:$0xff]  }
 0x462   :  { %v1851_v49 = vmul.f32 %v3888_v19, %v5398_v56  ;;  %v3890_v4 = vpop.eup %3889  ;;  %v5698_v56 = vld [vmem:[%s6865_s4 + $0xe8] ss:$16 sps:$4 sm:$0xff]   ;;  %v5778_v19 = vld [vmem:[%s6865_s4 + $0x64] ss:$16 sps:$4 sm:$0xff]  }
 0x464   :  { %v5686_v3 = vadd.f32 %v1852_v59, %v1851_v49  ;;  %v5790_v49 = vld [vmem:[%s6865_s4 + $0x60] ss:$16 sps:$4 sm:$0xff]   ;;  %v5796_v59 = vld [vmem:[%s6865_s4 + $0x68] ss:$16 sps:$4 sm:$0xff]  }
 0x466   :  { %3891 = vtanh.f32 %v5686_v3 }
 0x473   :  { %v3892_v41 = vpop.eup %3891 }
 0x474   :  { %v1855_v63 = vmul.f32 %v3892_v41, %v3890_v4  ;;  %v5802_v4 = vld [vmem:[%s6865_s4 + $0x44] ss:$16 sps:$4 sm:$0xff]   ;;  %v5808_v41 = vld [vmem:[%s6865_s4 + $0x4c] ss:$16 sps:$4 sm:$0xff]  }
 0x475   :  { %7426 = vst [vmem:[#allocation12_spill] sm:$0xff] %v5802_v4  ;;  %7427 = vst [vmem:[#allocation13_spill] sm:$0xff] %v5808_v41 }
 0x476   :  { %v1950_v15 = vpack.c.bf16 %v1855_v63, %v1855_v63  ;;  %v5814_v63 = vld [vmem:[%s6865_s4 + $0x40] ss:$16 sps:$4 sm:$0xff]  }
 0x477   :  { %7428 = vst [vmem:[#allocation14_spill] sm:$0xff] %v5814_v63 }
 0x478   :  { %1984 = vmatmul.mubr.bf16.vlgmr.msra.gmra.mxu0 %v1950_v15  ;;  %2025 = vmatmul.mubr.bf16.vlgmr.msra.gmra.mxu1 %v1950_v15  ;;  %v5820_v15 = vld [vmem:[%s6865_s4 + $0x48] ss:$16 sps:$4 sm:$0xff]  }
 0x479   :  { %2034 = vmatpush1.bf16.msra.mxu0 %v5692_v61  ;;  %2075 = vmatpush1.bf16.msra.mxu1 %v5698_v56  ;;  %7429 = vst [vmem:[#allocation15_spill] sm:$0xff] %v5820_v15 }
 0x47a   :  { %2035 = vmatprep.subr.bf16.mxu0 %v5704_v2  ;;  %2076 = vmatprep.subr.bf16.mxu1 %v5710_v0 }
 0x47b   :  { %2065 = vmatprep.mubr.bf16.mxu0 %v7196_v54  ;;  %2106 = vmatprep.mubr.bf16.mxu1 %v7196_v54 }
 0x47d   :  { %2036 = vmatpush1.bf16.msra.mxu0 %v5718_v60  ;;  %2077 = vmatpush1.bf16.msra.mxu1 %v5724_v1 }
 0x47e   :  { %2037 = vmatprep.subr.bf16.mxu0 %v5730_v42  ;;  %2078 = vmatprep.subr.bf16.mxu1 %v5736_v8 }
 0x481   :  { %2038 = vmatpush1.bf16.msra.mxu0 %v5742_v31  ;;  %2079 = vmatpush1.bf16.msra.mxu1 %v5748_v13 }
 0x482   :  { %2039 = vmatprep.subr.bf16.mxu0 %v5754_v10  ;;  %2080 = vmatprep.subr.bf16.mxu1 %v5760_v38 }
 0x485   :  { %2040 = vmatpush1.bf16.msra.mxu0 %v5766_v21  ;;  %2081 = vmatpush1.bf16.msra.mxu1 %v5772_v32 }
 0x486   :  { %2041 = vmatprep.subr.bf16.mxu0 %v5778_v19  ;;  %2082 = vmatprep.subr.bf16.mxu1 %v5784_v58 }
 0x489   :  { %2042 = vmatpush1.bf16.msra.mxu0 %v5790_v49  ;;  %2083 = vmatpush1.bf16.msra.mxu1 %v5796_v59 }
 0x48a   :  { %2043 = vmatprep.subr.bf16.mxu0 %v5802_v4  ;;  %2084 = vmatprep.subr.bf16.mxu1 %v5808_v41  ;;  %v5826_v4 = vld [vmem:[%s6865_s4 + $0x24] ss:$16 sps:$4 sm:$0xff]   ;;  %v5832_v41 = vld [vmem:[%s6865_s4 + $0x2c] ss:$16 sps:$4 sm:$0xff]  }
 0x48b   :  { %7430 = vst [vmem:[#allocation16_spill] sm:$0xff] %v5826_v4  ;;  %7431 = vst [vmem:[#allocation17_spill] sm:$0xff] %v5832_v41 }
 0x48d   :  { %2044 = vmatpush1.bf16.msra.mxu0 %v5814_v63  ;;  %2085 = vmatpush1.bf16.msra.mxu1 %v5820_v15  ;;  %v5838_v63 = vld [vmem:[%s6865_s4 + $0x20] ss:$16 sps:$4 sm:$0xff]   ;;  %v5844_v15 = vld [vmem:[%s6865_s4 + $0x28] ss:$16 sps:$4 sm:$0xff]  }
 0x48e   :  { %2045 = vmatprep.subr.bf16.mxu0 %v5826_v4  ;;  %2086 = vmatprep.subr.bf16.mxu1 %v5832_v41  ;;  %7432 = vst [vmem:[#allocation18_spill] sm:$0xff] %v5838_v63  ;;  %7433 = vst [vmem:[#allocation19_spill] sm:$0xff] %v5844_v15  ;;  %v5850_v4 = vld [vmem:[%s6865_s4 + $0x4] ss:$16 sps:$4 sm:$0xff]   ;;  %v5856_v41 = vld [vmem:[%s6865_s4 + $0xc] ss:$16 sps:$4 sm:$0xff]  }
 0x491   :  { %2046 = vmatpush1.bf16.msra.mxu0 %v5838_v63  ;;  %2087 = vmatpush1.bf16.msra.mxu1 %v5844_v15  ;;  %v5862_v63 = vld [vmem:[%s6865_s4] ss:$16 sps:$4 sm:$0xff]   ;;  %v5868_v15 = vld [vmem:[%s6865_s4 + $0x8] ss:$16 sps:$4 sm:$0xff]  }
 0x492   :  { %2047 = vmatprep.subr.bf16.mxu0 %v5850_v4  ;;  %2088 = vmatprep.subr.bf16.mxu1 %v5856_v41 }
 0x495   :  { %2048 = vmatpush1.bf16.msra.mxu0 %v5862_v63  ;;  %2089 = vmatpush1.bf16.msra.mxu1 %v5868_v15 }
 0x496   :  { %2175 = vmatprep.subr.bf16.mxu0 %v7353_v28  ;;  %2216 = vmatprep.subr.bf16.mxu1 %v7354_v50  ;;  %v7434_v28 = vld [vmem:[#allocation57_spill] sm:$0xff] }
 0x497   :  { %v175_v50 = vadd.f32 %v7434_v28, %v7387_v48 }
 0x498   :  { %2066 = vmatmul.mubr.bf16.vlgmr.msra.gmra.mxu0 %v5483_v5  ;;  %2107 = vmatmul.mubr.bf16.vlgmr.msra.gmra.mxu1 %v5483_v5 }
 0x499   :  { %2176 = vmatpush1.bf16.msra.mxu0 %v7355_v51  ;;  %2217 = vmatpush1.bf16.msra.mxu1 %v7356_v46 }
 0x49a   :  { %2177 = vmatprep.subr.bf16.mxu0 %v7357_v53  ;;  %2218 = vmatprep.subr.bf16.mxu1 %v7358_v22  ;;  %v7435_v53 = vld [vmem:[#allocation59_spill] sm:$0xff] }
 0x49b   :  { %2207 = vmatprep.mubr.bf16.mxu0 %v7196_v54  ;;  %2248 = vmatprep.mubr.bf16.mxu1 %v7196_v54  ;;  %v177_v22 = vadd.f32 %v7435_v53, %v7389_v40 }
 0x49d   :  { %2178 = vmatpush1.bf16.msra.mxu0 %v7359_v35  ;;  %2219 = vmatpush1.bf16.msra.mxu1 %v7360_v20 }
 0x49e   :  { %2179 = vmatprep.subr.bf16.mxu0 %v7361_v27  ;;  %2220 = vmatprep.subr.bf16.mxu1 %v7362_v39 }
 0x4a1   :  { %2180 = vmatpush1.bf16.msra.mxu0 %v7363_v44  ;;  %2221 = vmatpush1.bf16.msra.mxu1 %v7364_v7 }
 0x4a2   :  { %2181 = vmatprep.subr.bf16.mxu0 %v7365_v9  ;;  %2222 = vmatprep.subr.bf16.mxu1 %v7366_v30  ;;  %v7436_v30 = vld [vmem:[#allocation86_spill] sm:$0xff] }
 0x4a5   :  { %2182 = vmatpush1.bf16.msra.mxu0 %v7367_v26  ;;  %2223 = vmatpush1.bf16.msra.mxu1 %v7368_v6  ;;  %v7437_v26 = vld [vmem:[#allocation87_spill] sm:$0xff] }
 0x4a6   :  { %2183 = vmatprep.subr.bf16.mxu0 %v7369_v33  ;;  %2224 = vmatprep.subr.bf16.mxu1 %v7370_v24 }
 0x4a9   :  { %2184 = vmatpush1.bf16.msra.mxu0 %v7371_v62  ;;  %2225 = vmatpush1.bf16.msra.mxu1 %v7372_v36  ;;  %v7438_v62 = vld [vmem:[#allocation56_spill] sm:$0xff] }
 0x4aa   :  { %2185 = vmatprep.subr.bf16.mxu0 %v7373_v37  ;;  %2226 = vmatprep.subr.bf16.mxu1 %v7374_v12  ;;  %v248_v36 = vadd.f32 %v7438_v62, %v4548_v57  ;;  %v7439_v12 = vld [vmem:[#allocation5_spill] sm:$0xff]  ;;  %v7450_v62 = vld [vmem:[#allocation30_spill] sm:$0xff] }
 0x4ad   :  { %2186 = vmatpush1.bf16.msra.mxu0 %v7375_v14  ;;  %2227 = vmatpush1.bf16.msra.mxu1 %v7376_v55  ;;  %v7440_v14 = vld [vmem:[#allocation58_spill] sm:$0xff] }
 0x4ae   :  { %2187 = vmatprep.subr.bf16.mxu0 %v7377_v25  ;;  %2228 = vmatprep.subr.bf16.mxu1 %v7378_v45  ;;  %v250_v55 = vadd.f32 %v7440_v14, %v7439_v12  ;;  %v7453_v14 = vld [vmem:[#allocation33_spill] sm:$0xff] }
 0x4b1   :  { %2188 = vmatpush1.bf16.msra.mxu0 %v7379_v47  ;;  %2229 = vmatpush1.bf16.msra.mxu1 %v7380_v16 }
 0x4b2   :  { %v1898_v51 = vpop.f32.mrf.mxu0  ;;  %v1939_v46 = vpop.f32.mrf.mxu1  ;;  %2189 = vmatprep.subr.bf16.mxu0 %v7381_v17  ;;  %2230 = vmatprep.subr.bf16.mxu1 %v7382_v18 }
 0x4b3   :  { %v1946_v35 = vadd.f32 %v1898_v51, %v175_v50  ;;  %v1948_v37 = vadd.f32 %v1939_v46, %v248_v36  ;;  %v7441_v46 = vld [vmem:[#allocation72_spill] sm:$0xff]  ;;  %v7451_v36 = vld [vmem:[#allocation31_spill] sm:$0xff] }
 0x4b4   :  { %v1900_v20 = vpop.f32.mrf.mxu0  ;;  %v1941_v27 = vpop.f32.mrf.mxu1 }
 0x4b5   :  { %v3551_v39 = vmul.f32 -1.442695, %v1946_v35  ;;  %v1947_v44 = vadd.f32 %v1900_v20, %v177_v22  ;;  %2190 = vmatpush1.bf16.msra.mxu0 %v7383_v29  ;;  %2231 = vmatpush1.bf16.msra.mxu1 %v7384_v11  ;;  %v3553_v25 = vmul.f32 -1.442695, %v1948_v37  ;;  %v1949_v45 = vadd.f32 %v1941_v27, %v250_v55  ;;  %v7452_v37 = vld [vmem:[#allocation32_spill] sm:$0xff]  ;;  %v7454_v55 = vld [vmem:[#allocation34_spill] sm:$0xff] }
 0x4b6   :  { %v1902_v7 = vpop.f32.mrf.mxu0  ;;  %v1943_v9 = vpop.f32.mrf.mxu1  ;;  %2262 = vmatprep.subr.bf16.mxu0 %v7436_v30  ;;  %2303 = vmatprep.subr.bf16.mxu1 %v7437_v26  ;;  %v7445_v30 = vld [vmem:[#allocation25_spill] sm:$0xff]  ;;  %v7446_v26 = vld [vmem:[#allocation26_spill] sm:$0xff] }
 0x4b7   :  { %3893 = vpow2.f32 %v3551_v39  ;;  %v3552_v6 = vmul.f32 -1.442695, %v1947_v44  ;;  %v7442_v44 = vld [vmem:[#allocation73_spill] sm:$0xff]  ;;  %v7443_v7 = vld [vmem:[#allocation74_spill] sm:$0xff] }
 0x4b8   :  { %v1903_v33 = vpop.f32.mrf.mxu0  ;;  %v1944_v24 = vpop.f32.mrf.mxu1  ;;  %v7444_v9 = vld [vmem:[#allocation6_spill] sm:$0xff] }
 0x4b9   :  { %3895 = vpow2.f32 %v3552_v6  ;;  %v7447_v6 = vld [vmem:[#allocation27_spill] sm:$0xff]  ;;  %v7448_v33 = vld [vmem:[#allocation28_spill] sm:$0xff]  ;;  %v7449_v24 = vld [vmem:[#allocation29_spill] sm:$0xff] }
 0x4ba   :  { %3897 = vpow2.f32 %v3553_v25  ;;  %v7455_v25 = vld [vmem:[#allocation38_spill] sm:$0xff] }
 0x4bb   :  { %3899 = vtanh.f32 %v1949_v45  ;;  %v7456_v45 = vld [vmem:[#allocation39_spill] sm:$0xff] }
 0x4c4   :  { %v3894_v47 = vpop.eup %3893 }
 0x4c5   :  { %v2128_v16 = vadd.f32 1.0, %v3894_v47  ;;  %v7457_v47 = vld [vmem:[#allocation40_spill] sm:$0xff] }
 0x4c6   :  { %v3896_v17 = vpop.eup %3895 }
 0x4c7   :  { %3901 = vrcp.f32 %v2128_v16  ;;  %v2129_v18 = vadd.f32 1.0, %v3896_v17  ;;  %v3898_v29 = vpop.eup %3897  ;;  %v7458_v16 = vld [vmem:[#allocation41_spill] sm:$0xff]  ;;  %v7459_v17 = vld [vmem:[#allocation42_spill] sm:$0xff] }
 0x4c8   :  { %v3900_v11 = vpop.eup %3899  ;;  %v2130_v51 = vadd.f32 1.0, %v3898_v29  ;;  %v7461_v29 = vld [vmem:[#allocation44_spill] sm:$0xff] }
 0x4c9   :  { %3903 = vrcp.f32 %v2129_v18  ;;  %v7460_v18 = vld [vmem:[#allocation43_spill] sm:$0xff] }
 0x4ca   :  { %3905 = vrcp.f32 %v2130_v51  ;;  %v7466_v51 = vld [vmem:[#allocation49_spill] sm:$0xff] }
 0x4d4   :  { %v3902_v5 = vpop.eup %3901 }
 0x4d5   :  { %v2139_v28 = vmul.f32 %v3902_v5, %v3900_v11  ;;  %v7462_v11 = vld [vmem:[#allocation45_spill] sm:$0xff]  ;;  %v7463_v5 = vld [vmem:[#allocation46_spill] sm:$0xff] }
 0x4d6   :  { %v3904_v50 = vpop.eup %3903 }
 0x4d7   :  { %v2138_v53 = vmul.f32 %v3904_v50, %v7441_v46  ;;  %v3906_v35 = vpop.eup %3905  ;;  %v7465_v50 = vld [vmem:[#allocation48_spill] sm:$0xff]  ;;  %v7467_v46 = vld [vmem:[#allocation50_spill] sm:$0xff] }
 0x4d9   :  { %v5918_v22 = vadd.f32 %v2139_v28, %v2138_v53  ;;  %v7464_v28 = vld [vmem:[#allocation47_spill] sm:$0xff] }
 0x4da   :  { %v7468_v53 = vld [vmem:[#allocation51_spill] sm:$0xff] }
 0x4db   :  { %3907 = vtanh.f32 %v5918_v22 }
 0x4e8   :  { %v3908_v20 = vpop.eup %3907 }
 0x4e9   :  { %v2142_v27 = vmul.f32 %v3908_v20, %v3906_v35  ;;  %v7469_v35 = vld [vmem:[#allocation7_spill] sm:$0xff]  ;;  %v7470_v20 = vld [vmem:[#allocation8_spill] sm:$0xff] }
 0x4eb   :  { %v5921_v39 = vpack.c.bf16 %v2142_v27, %v2142_v27  ;;  %v7471_v27 = vld [vmem:[#allocation9_spill] sm:$0xff] }
 0x4ed   :  { %2208 = vmatmul.mubr.bf16.vlgmr.msra.gmra.mxu0 %v5921_v39  ;;  %2249 = vmatmul.mubr.bf16.vlgmr.msra.gmra.mxu1 %v5921_v39 }
 0x4ee   :  { %2263 = vmatpush1.bf16.msra.mxu0 %v7442_v44  ;;  %2304 = vmatpush1.bf16.msra.mxu1 %v7443_v7 }
 0x4ef   :  { %2264 = vmatprep.subr.bf16.mxu0 %v7444_v9  ;;  %2305 = vmatprep.subr.bf16.mxu1 %v7445_v30 }
 0x4f0   :  { %2294 = vmatprep.mubr.bf16.mxu0 %v7196_v54  ;;  %2335 = vmatprep.mubr.bf16.mxu1 %v7196_v54 }
 0x4f2   :  { %2265 = vmatpush1.bf16.msra.mxu0 %v7446_v26  ;;  %2306 = vmatpush1.bf16.msra.mxu1 %v7447_v6 }
 0x4f3   :  { %2266 = vmatprep.subr.bf16.mxu0 %v7448_v33  ;;  %2307 = vmatprep.subr.bf16.mxu1 %v7449_v24 }
 0x4f6   :  { %2267 = vmatpush1.bf16.msra.mxu0 %v7450_v62  ;;  %2308 = vmatpush1.bf16.msra.mxu1 %v7451_v36 }
 0x4f7   :  { %2268 = vmatprep.subr.bf16.mxu0 %v7452_v37  ;;  %2309 = vmatprep.subr.bf16.mxu1 %v7453_v14 }
 0x4fa   :  { %2269 = vmatpush1.bf16.msra.mxu0 %v7454_v55  ;;  %2310 = vmatpush1.bf16.msra.mxu1 %v7455_v25 }
 0x4fb   :  { %2270 = vmatprep.subr.bf16.mxu0 %v7456_v45  ;;  %2311 = vmatprep.subr.bf16.mxu1 %v7457_v47 }
 0x4fe   :  { %2271 = vmatpush1.bf16.msra.mxu0 %v7458_v16  ;;  %2312 = vmatpush1.bf16.msra.mxu1 %v7459_v17 }
 0x4ff   :  { %2272 = vmatprep.subr.bf16.mxu0 %v7460_v18  ;;  %2313 = vmatprep.subr.bf16.mxu1 %v7461_v29  ;;  %v7472_v29 = vld [vmem:[#allocation10_spill] sm:$0xff] }
 0x502   :  { %2273 = vmatpush1.bf16.msra.mxu0 %v7462_v11  ;;  %2314 = vmatpush1.bf16.msra.mxu1 %v7463_v5  ;;  %v7473_v11 = vld [vmem:[#allocation11_spill] sm:$0xff] }
 0x503   :  { %2274 = vmatprep.subr.bf16.mxu0 %v7464_v28  ;;  %2315 = vmatprep.subr.bf16.mxu1 %v7465_v50 }
 0x506   :  { %2275 = vmatpush1.bf16.msra.mxu0 %v7466_v51  ;;  %2316 = vmatpush1.bf16.msra.mxu1 %v7467_v46 }
 0x507   :  { %2276 = vmatprep.subr.bf16.mxu0 %v7468_v53  ;;  %2317 = vmatprep.subr.bf16.mxu1 %v7469_v35 }
 0x50a   :  { %2277 = vmatpush1.bf16.msra.mxu0 %v7470_v20  ;;  %2318 = vmatpush1.bf16.msra.mxu1 %v7471_v27 }
 0x50b   :  { %2344 = vmatprep.subr.bf16.mxu0 %v7472_v29  ;;  %2385 = vmatprep.subr.bf16.mxu1 %v7473_v11 }
 0x538   :  { %v1985_v5 = vpop.f32.mrf.mxu0  ;;  %v2026_v28 = vpop.f32.mrf.mxu1 }
 0x53a   :  { %v1987_v18 = vpop.f32.mrf.mxu0  ;;  %v2028_v50 = vpop.f32.mrf.mxu1 }
 0x53c   :  { %v1989_v17 = vpop.f32.mrf.mxu0  ;;  %v2030_v51 = vpop.f32.mrf.mxu1 }
 0x53e   :  { %v1990_v16 = vpop.f32.mrf.mxu0  ;;  %v2031_v46 = vpop.f32.mrf.mxu1 }
 0x558   :  { %v2067_v47 = vpop.f32.mrf.mxu0  ;;  %v2108_v53 = vpop.f32.mrf.mxu1 }
 0x559   :  { %v2068_v45 = vadd.f32 %v2067_v47, %v1985_v5  ;;  %v2109_v16 = vadd.f32 %v2108_v53, %v2026_v28 }
 0x55a   :  { %v2069_v35 = vpop.f32.mrf.mxu0  ;;  %v2110_v25 = vpop.f32.mrf.mxu1 }
 0x55b   :  { %v2115_v20 = vadd.f32 %v2068_v45, %v7325_v43  ;;  %v2070_v27 = vadd.f32 %v2069_v35, %v1987_v18  ;;  %v2117_v51 = vadd.f32 %v2109_v16, %v7327_v23  ;;  %v2111_v46 = vadd.f32 %v2110_v25, %v2028_v50  ;;  %v7477_v16 = vld [vmem:[#allocation15_spill] sm:$0xff] }
 0x55c   :  { %v2071_v55 = vpop.f32.mrf.mxu0  ;;  %v2112_v29 = vpop.f32.mrf.mxu1 }
 0x55d   :  { %v3554_v14 = vmul.f32 -1.442695, %v2115_v20  ;;  %v2116_v11 = vadd.f32 %v2070_v27, %v7326_v34  ;;  %v3556_v47 = vmul.f32 -1.442695, %v2117_v51  ;;  %v2118_v62 = vadd.f32 %v2111_v46, %v7328_v52  ;;  %v7478_v51 = vld [vmem:[#allocation16_spill] sm:$0xff]  ;;  %v7479_v46 = vld [vmem:[#allocation17_spill] sm:$0xff] }
 0x55e   :  { %v2072_v37 = vpop.f32.mrf.mxu0  ;;  %v2113_v36 = vpop.f32.mrf.mxu1 }
 0x55f   :  { %3909 = vpow2.f32 %v3554_v14  ;;  %v3555_v17 = vmul.f32 -1.442695, %v2116_v11 }
 0x561   :  { %3911 = vpow2.f32 %v3555_v17  ;;  %v7476_v17 = vld [vmem:[#allocation14_spill] sm:$0xff] }
 0x562   :  { %3913 = vpow2.f32 %v3556_v47  ;;  %v7480_v47 = vld [vmem:[#allocation61_spill] sm:$0xff] }
 0x56c   :  { %v3910_v5 = vpop.eup %3909 }
 0x56d   :  { %v2152_v45 = vadd.f32 1.0, %v3910_v5  ;;  %v179_v5 = vadd.f32 %v7480_v47, %v7387_v48 }
 0x56e   :  { %v3912_v18 = vpop.eup %3911 }
 0x56f   :  { %3915 = vrcp.f32 %v2152_v45  ;;  %v2153_v55 = vadd.f32 1.0, %v3912_v18  ;;  %v3914_v37 = vpop.eup %3913 }
 0x570   :  { %3917 = vtanh.f32 %v2118_v62  ;;  %v2154_v11 = vadd.f32 1.0, %v3914_v37  ;;  %v7475_v62 = vld [vmem:[#allocation13_spill] sm:$0xff] }
 0x571   :  { %3919 = vrcp.f32 %v2153_v55  ;;  %v7481_v55 = vld [vmem:[#allocation63_spill] sm:$0xff] }
 0x572   :  { %3921 = vrcp.f32 %v2154_v11  ;;  %v181_v37 = vadd.f32 %v7481_v55, %v7389_v40 }
 0x57c   :  { %v3916_v36 = vpop.eup %3915 }
 0x57d   :  { %v3918_v14 = vpop.eup %3917 }
 0x57e   :  { %v3920_v29 = vpop.eup %3919  ;;  %v2163_v53 = vmul.f32 %v3918_v14, %v3916_v36  ;;  %v7482_v36 = vld [vmem:[#allocation18_spill] sm:$0xff]  ;;  %v7483_v14 = vld [vmem:[#allocation19_spill] sm:$0xff] }
 0x57f   :  { %v2162_v28 = vmul.f32 %v3920_v29, %v5686_v3  ;;  %v3922_v50 = vpop.eup %3921  ;;  %v7474_v3 = vld [vmem:[#allocation12_spill] sm:$0xff] }
 0x581   :  { %v5964_v25 = vadd.f32 %v2163_v53, %v2162_v28 }
 0x583   :  { %3923 = vtanh.f32 %v5964_v25 }
 0x590   :  { %v3924_v35 = vpop.eup %3923 }
 0x591   :  { %v2166_v20 = vmul.f32 %v3924_v35, %v3922_v50 }
 0x593   :  { %v2261_v27 = vpack.c.bf16 %v2166_v20, %v2166_v20 }
 0x595   :  { %2295 = vmatmul.mubr.bf16.vlgmr.msra.gmra.mxu0 %v2261_v27  ;;  %2336 = vmatmul.mubr.bf16.vlgmr.msra.gmra.mxu1 %v2261_v27 }
 0x596   :  { %2345 = vmatpush1.bf16.msra.mxu0 %v5692_v61  ;;  %2386 = vmatpush1.bf16.msra.mxu1 %v5698_v56 }
 0x597   :  { %2346 = vmatprep.subr.bf16.mxu0 %v5704_v2  ;;  %2387 = vmatprep.subr.bf16.mxu1 %v5710_v0 }
 0x598   :  { %2376 = vmatprep.mubr.bf16.mxu0 %v7196_v54  ;;  %2417 = vmatprep.mubr.bf16.mxu1 %v7196_v54 }
 0x59a   :  { %2347 = vmatpush1.bf16.msra.mxu0 %v5718_v60  ;;  %2388 = vmatpush1.bf16.msra.mxu1 %v5724_v1 }
 0x59b   :  { %2348 = vmatprep.subr.bf16.mxu0 %v5730_v42  ;;  %2389 = vmatprep.subr.bf16.mxu1 %v5736_v8 }
 0x59e   :  { %2349 = vmatpush1.bf16.msra.mxu0 %v5742_v31  ;;  %2390 = vmatpush1.bf16.msra.mxu1 %v5748_v13 }
 0x59f   :  { %2350 = vmatprep.subr.bf16.mxu0 %v5754_v10  ;;  %2391 = vmatprep.subr.bf16.mxu1 %v5760_v38 }
 0x5a2   :  { %2351 = vmatpush1.bf16.msra.mxu0 %v5766_v21  ;;  %2392 = vmatpush1.bf16.msra.mxu1 %v5772_v32 }
 0x5a3   :  { %2352 = vmatprep.subr.bf16.mxu0 %v5778_v19  ;;  %2393 = vmatprep.subr.bf16.mxu1 %v5784_v58 }
 0x5a6   :  { %2353 = vmatpush1.bf16.msra.mxu0 %v5790_v49  ;;  %2394 = vmatpush1.bf16.msra.mxu1 %v5796_v59 }
 0x5a7   :  { %2354 = vmatprep.subr.bf16.mxu0 %v7474_v3  ;;  %2395 = vmatprep.subr.bf16.mxu1 %v7475_v62 }
 0x5aa   :  { %2355 = vmatpush1.bf16.msra.mxu0 %v7476_v17  ;;  %2396 = vmatpush1.bf16.msra.mxu1 %v7477_v16 }
 0x5ab   :  { %2356 = vmatprep.subr.bf16.mxu0 %v7478_v51  ;;  %2397 = vmatprep.subr.bf16.mxu1 %v7479_v46 }
 0x5ad   :  { %v2209_v45 = vpop.f32.mrf.mxu0  ;;  %v2250_v18 = vpop.f32.mrf.mxu1 }
 0x5ae   :  { %2357 = vmatpush1.bf16.msra.mxu0 %v7482_v36  ;;  %2398 = vmatpush1.bf16.msra.mxu1 %v7483_v14  ;;  %v2257_v29 = vadd.f32 %v2209_v45, %v179_v5  ;;  %v6006_v5 = vld [vmem:[%s6863_s3 + $0xe4] ss:$16 sps:$4 sm:$0xff]   ;;  %v6012_v45 = vld [vmem:[%s6863_s3 + $0xec] ss:$16 sps:$4 sm:$0xff]  }
 0x5af   :  { %2358 = vmatprep.subr.bf16.mxu0 %v5850_v4  ;;  %2399 = vmatprep.subr.bf16.mxu1 %v5856_v41  ;;  %v2211_v11 = vpop.f32.mrf.mxu0  ;;  %v2252_v28 = vpop.f32.mrf.mxu1  ;;  %7484 = vst [vmem:[#allocation20_spill] sm:$0xff] %v6012_v45 }
 0x5b0   :  { %v3557_v53 = vmul.f32 -1.442695, %v2257_v29  ;;  %v2258_v50 = vadd.f32 %v2211_v11, %v181_v37  ;;  %v7485_v37 = vld [vmem:[#allocation60_spill] sm:$0xff]  ;;  %v6022_v11 = vld [vmem:[%s6863_s3 + $0xe0] ss:$16 sps:$4 sm:$0xff]  }
 0x5b1   :  { %v2213_v35 = vpop.f32.mrf.mxu0  ;;  %v2254_v20 = vpop.f32.mrf.mxu1  ;;  %v252_v29 = vadd.f32 %v7485_v37, %v4548_v57  ;;  %7486 = vst [vmem:[#allocation21_spill] sm:$0xff] %v6022_v11  ;;  %v6068_v37 = vld [vmem:[%s6863_s3 + $0xac] ss:$16 sps:$4 sm:$0xff]  }
 0x5b2   :  { %3925 = vpow2.f32 %v3557_v53  ;;  %2359 = vmatpush1.bf16.msra.mxu0 %v5862_v63  ;;  %2400 = vmatpush1.bf16.msra.mxu1 %v5868_v15  ;;  %v3558_v27 = vmul.f32 -1.442695, %v2258_v50  ;;  %v6028_v53 = vld [vmem:[%s6863_s3 + $0xe8] ss:$16 sps:$4 sm:$0xff]   ;;  %v6040_v50 = vld [vmem:[%s6863_s3 + $0xcc] ss:$16 sps:$4 sm:$0xff]  }
 0x5b3   :  { %v2214_v47 = vpop.f32.mrf.mxu0  ;;  %v2255_v55 = vpop.f32.mrf.mxu1  ;;  %2486 = vmatprep.subr.bf16.mxu0 %v6006_v5  ;;  %2527 = vmatprep.subr.bf16.mxu1 %v6012_v45  ;;  %7487 = vst [vmem:[#allocation22_spill] sm:$0xff] %v6028_v53  ;;  %7489 = vst [vmem:[#allocation24_spill] sm:$0xff] %v6040_v50  ;;  %v2259_v35 = vadd.f32 %v2250_v18, %v252_v29  ;;  %v6048_v20 = vld [vmem:[%s6863_s3 + $0xc0] ss:$16 sps:$4 sm:$0xff]   ;;  %v7492_v18 = vld [vmem:[#allocation62_spill] sm:$0xff] }
 0x5b4   :  { %3927 = vpow2.f32 %v3558_v27  ;;  %7490 = vst [vmem:[#allocation35_spill] sm:$0xff] %v6048_v20  ;;  %v6054_v27 = vld [vmem:[%s6863_s3 + $0xc8] ss:$16 sps:$4 sm:$0xff]   ;;  %v254_v47 = vadd.f32 %v7492_v18, %v7439_v12  ;;  %v6062_v55 = vld [vmem:[%s6863_s3 + $0xa4] ss:$16 sps:$4 sm:$0xff]   ;;  %7494 = vst [vmem:[#allocation75_spill] sm:$0xff] %v6068_v37 }
 0x5b5   :  { %2377 = vmatmul.mubr.bf16.vlgmr.msra.gmra.mxu0 %v5921_v39  ;;  %2418 = vmatmul.mubr.bf16.vlgmr.msra.gmra.mxu1 %v5921_v39  ;;  %v6034_v39 = vld [vmem:[%s6863_s3 + $0xc4] ss:$16 sps:$4 sm:$0xff]   ;;  %7491 = vst [vmem:[#allocation36_spill] sm:$0xff] %v6054_v27  ;;  %7493 = vst [vmem:[#allocation37_spill] sm:$0xff] %v6062_v55  ;;  %v3559_v29 = vmul.f32 -1.442695, %v2259_v35 }
 0x5b6   :  { %2487 = vmatpush1.bf16.msra.mxu0 %v6022_v11  ;;  %2528 = vmatpush1.bf16.msra.mxu1 %v6028_v53  ;;  %7488 = vst [vmem:[#allocation23_spill] sm:$0xff] %v6034_v39  ;;  %v6074_v18 = vld [vmem:[%s6863_s3 + $0xa0] ss:$16 sps:$4 sm:$0xff]   ;;  %v6086_v35 = vld [vmem:[%s6863_s3 + $0x84] ss:$16 sps:$4 sm:$0xff]  }
 0x5b7   :  { %2488 = vmatprep.subr.bf16.mxu0 %v6034_v39  ;;  %2529 = vmatprep.subr.bf16.mxu1 %v6040_v50  ;;  %7495 = vst [vmem:[#allocation76_spill] sm:$0xff] %v6074_v18  ;;  %7497 = vst [vmem:[#allocation78_spill] sm:$0xff] %v6086_v35  ;;  %3929 = vpow2.f32 %v3559_v29  ;;  %v6122_v29 = vld [vmem:[%s6863_s3 + $0x60] ss:$16 sps:$4 sm:$0xff]  }
 0x5b8   :  { %2518 = vmatprep.mubr.bf16.mxu0 %v7196_v54  ;;  %2559 = vmatprep.mubr.bf16.mxu1 %v7196_v54  ;;  %7503 = vst [vmem:[#allocation84_spill] sm:$0xff] %v6122_v29  ;;  %v6195_v50 = vld [vmem:[%s6863_s3] ss:$16 sps:$4 sm:$0xff]  }
 0x5b9   :  { %7515 = vst [vmem:[#allocation56_spill] sm:$0xff] %v6195_v50 }
 0x5ba   :  { %2489 = vmatpush1.bf16.msra.mxu0 %v6048_v20  ;;  %2530 = vmatpush1.bf16.msra.mxu1 %v6054_v27  ;;  %v2260_v20 = vadd.f32 %v2252_v28, %v254_v47  ;;  %v6092_v28 = vld [vmem:[%s6863_s3 + $0x8c] ss:$16 sps:$4 sm:$0xff]  }
 0x5bb   :  { %2490 = vmatprep.subr.bf16.mxu0 %v6062_v55  ;;  %2531 = vmatprep.subr.bf16.mxu1 %v6068_v37  ;;  %v6080_v55 = vld [vmem:[%s6863_s3 + $0xa8] ss:$16 sps:$4 sm:$0xff]   ;;  %7498 = vst [vmem:[#allocation79_spill] sm:$0xff] %v6092_v28  ;;  %v6098_v37 = vld [vmem:[%s6863_s3 + $0x80] ss:$16 sps:$4 sm:$0xff]  }
 0x5bc   :  { %7496 = vst [vmem:[#allocation77_spill] sm:$0xff] %v6080_v55  ;;  %3931 = vtanh.f32 %v2260_v20  ;;  %7499 = vst [vmem:[#allocation80_spill] sm:$0xff] %v6098_v37  ;;  %v6110_v20 = vld [vmem:[%s6863_s3 + $0x64] ss:$16 sps:$4 sm:$0xff]  }
 0x5bd   :  { %7501 = vst [vmem:[#allocation82_spill] sm:$0xff] %v6110_v20 }
 0x5be   :  { %2491 = vmatpush1.bf16.msra.mxu0 %v6074_v18  ;;  %2532 = vmatpush1.bf16.msra.mxu1 %v6080_v55 }
 0x5bf   :  { %v3926_v27 = vpop.eup %3925  ;;  %2492 = vmatprep.subr.bf16.mxu0 %v6086_v35  ;;  %2533 = vmatprep.subr.bf16.mxu1 %v6092_v28  ;;  %v6104_v35 = vld [vmem:[%s6863_s3 + $0x88] ss:$16 sps:$4 sm:$0xff]  }
 0x5c0   :  { %v2439_v47 = vadd.f32 1.0, %v3926_v27  ;;  %7500 = vst [vmem:[#allocation81_spill] sm:$0xff] %v6104_v35  ;;  %v6116_v27 = vld [vmem:[%s6863_s3 + $0x6c] ss:$16 sps:$4 sm:$0xff]  }
 0x5c1   :  { %v3928_v18 = vpop.eup %3927  ;;  %7502 = vst [vmem:[#allocation83_spill] sm:$0xff] %v6116_v27 }
 0x5c2   :  { %3933 = vrcp.f32 %v2439_v47  ;;  %v2440_v55 = vadd.f32 1.0, %v3928_v18  ;;  %2493 = vmatpush1.bf16.msra.mxu0 %v6098_v37  ;;  %2534 = vmatpush1.bf16.msra.mxu1 %v6104_v35  ;;  %v6128_v18 = vld [vmem:[%s6863_s3 + $0x68] ss:$16 sps:$4 sm:$0xff]   ;;  %v6134_v47 = vld [vmem:[%s6863_s3 + $0x44] ss:$16 sps:$4 sm:$0xff]  }
 0x5c3   :  { %2494 = vmatprep.subr.bf16.mxu0 %v6110_v20  ;;  %2535 = vmatprep.subr.bf16.mxu1 %v6116_v27  ;;  %7504 = vst [vmem:[#allocation85_spill] sm:$0xff] %v6128_v18  ;;  %7505 = vst [vmem:[#allocation3_spill] sm:$0xff] %v6134_v47  ;;  %v6188_v35 = vld [vmem:[%s6863_s3 + $0xc] ss:$16 sps:$4 sm:$0xff]  }
 0x5c4   :  { %3935 = vrcp.f32 %v2440_v55  ;;  %v6140_v55 = vld [vmem:[%s6863_s3 + $0x4c] ss:$16 sps:$4 sm:$0xff]   ;;  %7514 = vst [vmem:[#allocation87_spill] sm:$0xff] %v6188_v35 }
 0x5c5   :  { %7506 = vst [vmem:[#allocation53_spill] sm:$0xff] %v6140_v55 }
 0x5c6   :  { %2495 = vmatpush1.bf16.msra.mxu0 %v6122_v29  ;;  %2536 = vmatpush1.bf16.msra.mxu1 %v6128_v18  ;;  %v6146_v29 = vld [vmem:[%s6863_s3 + $0x40] ss:$16 sps:$4 sm:$0xff]   ;;  %v6152_v18 = vld [vmem:[%s6863_s3 + $0x48] ss:$16 sps:$4 sm:$0xff]  }
 0x5c7   :  { %2496 = vmatprep.subr.bf16.mxu0 %v6134_v47  ;;  %2537 = vmatprep.subr.bf16.mxu1 %v6140_v55  ;;  %7507 = vst [vmem:[#allocation4_spill] sm:$0xff] %v6146_v29  ;;  %7508 = vst [vmem:[#allocation55_spill] sm:$0xff] %v6152_v18  ;;  %v6158_v47 = vld [vmem:[%s6863_s3 + $0x24] ss:$16 sps:$4 sm:$0xff]   ;;  %v6164_v55 = vld [vmem:[%s6863_s3 + $0x2c] ss:$16 sps:$4 sm:$0xff]  }
 0x5c8   :  { %7509 = vst [vmem:[#allocation52_spill] sm:$0xff] %v6158_v47  ;;  %7510 = vst [vmem:[#allocation54_spill] sm:$0xff] %v6164_v55 }
 0x5ca   :  { %2497 = vmatpush1.bf16.msra.mxu0 %v6146_v29  ;;  %2538 = vmatpush1.bf16.msra.mxu1 %v6152_v18  ;;  %v3930_v29 = vpop.eup %3929  ;;  %v6170_v18 = vld [vmem:[%s6863_s3 + $0x20] ss:$16 sps:$4 sm:$0xff]  }
 0x5cb   :  { %2498 = vmatprep.subr.bf16.mxu0 %v6158_v47  ;;  %2539 = vmatprep.subr.bf16.mxu1 %v6164_v55  ;;  %v3932_v27 = vpop.eup %3931  ;;  %7511 = vst [vmem:[#allocation57_spill] sm:$0xff] %v6170_v18  ;;  %v6176_v47 = vld [vmem:[%s6863_s3 + $0x28] ss:$16 sps:$4 sm:$0xff]   ;;  %v6182_v55 = vld [vmem:[%s6863_s3 + $0x4] ss:$16 sps:$4 sm:$0xff]   ;;  %v2441_v28 = vadd.f32 1.0, %v3930_v29 }
 0x5cc   :  { %7512 = vst [vmem:[#allocation59_spill] sm:$0xff] %v6176_v47  ;;  %7513 = vst [vmem:[#allocation86_spill] sm:$0xff] %v6182_v55 }
 0x5cd   :  { %3937 = vrcp.f32 %v2441_v28  ;;  %v7520_v28 = vld [vmem:[#allocation30_spill] sm:$0xff] }
 0x5ce   :  { %2499 = vmatpush1.bf16.msra.mxu0 %v6170_v18  ;;  %2540 = vmatpush1.bf16.msra.mxu1 %v6176_v47 }
 0x5cf   :  { %v3934_v20 = vpop.eup %3933  ;;  %2500 = vmatprep.subr.bf16.mxu0 %v6182_v55  ;;  %2541 = vmatprep.subr.bf16.mxu1 %v6188_v35  ;;  %v6201_v55 = vld [vmem:[%s6863_s3 + $0x8] ss:$16 sps:$4 sm:$0xff]  }
 0x5d0   :  { %v2450_v18 = vmul.f32 %v3934_v20, %v3932_v27  ;;  %7516 = vst [vmem:[#allocation5_spill] sm:$0xff] %v6201_v55  ;;  %v6207_v20 = vld [vmem:[%s6864_s5 + $0xe4] ss:$16 sps:$4 sm:$0xff]  }
 0x5d1   :  { %v3936_v37 = vpop.eup %3935  ;;  %7517 = vst [vmem:[#allocation58_spill] sm:$0xff] %v6207_v20 }
 0x5d2   :  { %v2449_v47 = vmul.f32 %v3936_v37, %v5918_v22  ;;  %2501 = vmatpush1.bf16.msra.mxu0 %v6195_v50  ;;  %2542 = vmatpush1.bf16.msra.mxu1 %v6201_v55  ;;  %v6213_v22 = vld [vmem:[%s6864_s5 + $0xec] ss:$16 sps:$4 sm:$0xff]  }
 0x5d3   :  { %2573 = vmatprep.subr.bf16.mxu0 %v6207_v20  ;;  %7518 = vst [vmem:[#allocation72_spill] sm:$0xff] %v6213_v22  ;;  %2614 = vmatprep.subr.bf16.mxu1 %v6213_v22 }
 0x5d4   :  { %v6216_v37 = vadd.f32 %v2450_v18, %v2449_v47  ;;  %v7525_v18 = vld [vmem:[#allocation38_spill] sm:$0xff]  ;;  %v7526_v47 = vld [vmem:[#allocation39_spill] sm:$0xff] }
 0x5d6   :  { %3939 = vtanh.f32 %v6216_v37 }
 0x5da   :  { %v3938_v27 = vpop.eup %3937 }
 0x5e3   :  { %v3940_v29 = vpop.eup %3939 }
 0x5e4   :  { %v2453_v55 = vmul.f32 %v3940_v29, %v3938_v27  ;;  %v7532_v27 = vld [vmem:[#allocation45_spill] sm:$0xff]  ;;  %v7533_v29 = vld [vmem:[#allocation46_spill] sm:$0xff] }
 0x5e6   :  { %v6219_v50 = vpack.c.bf16 %v2453_v55, %v2453_v55  ;;  %v7531_v55 = vld [vmem:[#allocation44_spill] sm:$0xff] }
 0x5e8   :  { %7519 = vst [vmem:[#allocation73_spill] sm:$0xff] %v6219_v50  ;;  %2519 = vmatmul.mubr.bf16.vlgmr.msra.gmra.mxu0 %v6219_v50  ;;  %2560 = vmatmul.mubr.bf16.vlgmr.msra.gmra.mxu1 %v6219_v50 }
 0x5e9   :  { %2574 = vmatpush1.bf16.msra.mxu0 %v7442_v44  ;;  %2615 = vmatpush1.bf16.msra.mxu1 %v7443_v7  ;;  %v7521_v44 = vld [vmem:[#allocation31_spill] sm:$0xff]  ;;  %v7522_v7 = vld [vmem:[#allocation32_spill] sm:$0xff] }
 0x5ea   :  { %2575 = vmatprep.subr.bf16.mxu0 %v7444_v9  ;;  %2616 = vmatprep.subr.bf16.mxu1 %v7445_v30  ;;  %v7523_v9 = vld [vmem:[#allocation33_spill] sm:$0xff]  ;;  %v7524_v30 = vld [vmem:[#allocation34_spill] sm:$0xff] }
 0x5eb   :  { %2605 = vmatprep.mubr.bf16.mxu0 %v7196_v54  ;;  %2646 = vmatprep.mubr.bf16.mxu1 %v7196_v54 }
 0x5ed   :  { %2576 = vmatpush1.bf16.msra.mxu0 %v7446_v26  ;;  %2617 = vmatpush1.bf16.msra.mxu1 %v7447_v6  ;;  %v7527_v26 = vld [vmem:[#allocation40_spill] sm:$0xff]  ;;  %v7528_v6 = vld [vmem:[#allocation41_spill] sm:$0xff] }
 0x5ee   :  { %2577 = vmatprep.subr.bf16.mxu0 %v7448_v33  ;;  %2618 = vmatprep.subr.bf16.mxu1 %v7449_v24  ;;  %v7529_v33 = vld [vmem:[#allocation42_spill] sm:$0xff]  ;;  %v7530_v24 = vld [vmem:[#allocation43_spill] sm:$0xff] }
 0x5f1   :  { %2578 = vmatpush1.bf16.msra.mxu0 %v7520_v28  ;;  %2619 = vmatpush1.bf16.msra.mxu1 %v7521_v44  ;;  %v7534_v28 = vld [vmem:[#allocation47_spill] sm:$0xff]  ;;  %v7535_v44 = vld [vmem:[#allocation48_spill] sm:$0xff] }
 0x5f2   :  { %2579 = vmatprep.subr.bf16.mxu0 %v7522_v7  ;;  %2620 = vmatprep.subr.bf16.mxu1 %v7523_v9  ;;  %v7536_v7 = vld [vmem:[#allocation49_spill] sm:$0xff]  ;;  %v7537_v9 = vld [vmem:[#allocation50_spill] sm:$0xff] }
 0x5f5   :  { %2580 = vmatpush1.bf16.msra.mxu0 %v7524_v30  ;;  %2621 = vmatpush1.bf16.msra.mxu1 %v7525_v18  ;;  %v7538_v30 = vld [vmem:[#allocation51_spill] sm:$0xff] }
 0x5f6   :  { %2581 = vmatprep.subr.bf16.mxu0 %v7526_v47  ;;  %2622 = vmatprep.subr.bf16.mxu1 %v7527_v26  ;;  %v7539_v18 = vld [vmem:[#allocation7_spill] sm:$0xff]  ;;  %v7540_v47 = vld [vmem:[#allocation8_spill] sm:$0xff]  ;;  %v7541_v26 = vld [vmem:[#allocation9_spill] sm:$0xff] }
 0x5f9   :  { %2582 = vmatpush1.bf16.msra.mxu0 %v7528_v6  ;;  %2623 = vmatpush1.bf16.msra.mxu1 %v7529_v33  ;;  %v7542_v6 = vld [vmem:[#allocation10_spill] sm:$0xff]  ;;  %v7543_v33 = vld [vmem:[#allocation11_spill] sm:$0xff] }
 0x5fa   :  { %2583 = vmatprep.subr.bf16.mxu0 %v7530_v24  ;;  %2624 = vmatprep.subr.bf16.mxu1 %v7531_v55 }
 0x5fd   :  { %2584 = vmatpush1.bf16.msra.mxu0 %v7532_v27  ;;  %2625 = vmatpush1.bf16.msra.mxu1 %v7533_v29 }
 0x5fe   :  { %2585 = vmatprep.subr.bf16.mxu0 %v7534_v28  ;;  %2626 = vmatprep.subr.bf16.mxu1 %v7535_v44 }
 0x601   :  { %2586 = vmatpush1.bf16.msra.mxu0 %v7536_v7  ;;  %2627 = vmatpush1.bf16.msra.mxu1 %v7537_v9 }
 0x602   :  { %2587 = vmatprep.subr.bf16.mxu0 %v7538_v30  ;;  %2628 = vmatprep.subr.bf16.mxu1 %v7539_v18 }
 0x605   :  { %2588 = vmatpush1.bf16.msra.mxu0 %v7540_v47  ;;  %2629 = vmatpush1.bf16.msra.mxu1 %v7541_v26 }
 0x606   :  { %2655 = vmatprep.subr.bf16.mxu0 %v7542_v6  ;;  %2696 = vmatprep.subr.bf16.mxu1 %v7543_v33 }
 0x655   :  { %v2296_v24 = vpop.f32.mrf.mxu0  ;;  %v2337_v55 = vpop.f32.mrf.mxu1 }
 0x657   :  { %v2298_v27 = vpop.f32.mrf.mxu0  ;;  %v2339_v29 = vpop.f32.mrf.mxu1 }
 0x659   :  { %v2300_v28 = vpop.f32.mrf.mxu0  ;;  %v2341_v44 = vpop.f32.mrf.mxu1 }
 0x65b   :  { %v2301_v7 = vpop.f32.mrf.mxu0  ;;  %v2342_v9 = vpop.f32.mrf.mxu1 }
 0x675   :  { %v2378_v22 = vpop.f32.mrf.mxu0  ;;  %v2419_v30 = vpop.f32.mrf.mxu1 }
 0x676   :  { %v2379_v20 = vadd.f32 %v2378_v22, %v2296_v24  ;;  %v2420_v44 = vadd.f32 %v2419_v30, %v2337_v55 }
 0x677   :  { %v2380_v18 = vpop.f32.mrf.mxu0  ;;  %v2421_v35 = vpop.f32.mrf.mxu1 }
 0x678   :  { %v2426_v47 = vadd.f32 %v2379_v20, %v7325_v43  ;;  %v2381_v26 = vadd.f32 %v2380_v18, %v2298_v27  ;;  %v2428_v7 = vadd.f32 %v2420_v44, %v7327_v23  ;;  %v2422_v9 = vadd.f32 %v2421_v35, %v2339_v29  ;;  %v7544_v29 = vld [vmem:[#allocation65_spill] sm:$0xff] }
 0x679   :  { %v2382_v39 = vpop.f32.mrf.mxu0  ;;  %v2423_v6 = vpop.f32.mrf.mxu1 }
 0x67a   :  { %v3560_v53 = vmul.f32 -1.442695, %v2426_v47  ;;  %v2427_v33 = vadd.f32 %v2381_v26, %v7326_v34  ;;  %v3562_v22 = vmul.f32 -1.442695, %v2428_v7  ;;  %v2429_v45 = vadd.f32 %v2422_v9, %v7328_v52 }
 0x67b   :  { %v2383_v11 = vpop.f32.mrf.mxu0  ;;  %v2424_v50 = vpop.f32.mrf.mxu1  ;;  %v185_v26 = vadd.f32 %v7544_v29, %v7387_v48 }
 0x67c   :  { %3941 = vpow2.f32 %v3560_v53  ;;  %v3561_v28 = vmul.f32 -1.442695, %v2427_v33 }
 0x67e   :  { %3943 = vpow2.f32 %v3561_v28 }
 0x67f   :  { %3945 = vpow2.f32 %v3562_v22 }
 0x689   :  { %v3942_v24 = vpop.eup %3941 }
 0x68a   :  { %v2463_v20 = vadd.f32 1.0, %v3942_v24 }
 0x68b   :  { %v3944_v27 = vpop.eup %3943 }
 0x68c   :  { %3947 = vrcp.f32 %v2463_v20  ;;  %v2464_v39 = vadd.f32 1.0, %v3944_v27  ;;  %v3946_v11 = vpop.eup %3945 }
 0x68d   :  { %3949 = vtanh.f32 %v2429_v45  ;;  %v2465_v47 = vadd.f32 1.0, %v3946_v11  ;;  %v7545_v45 = vld [vmem:[#allocation67_spill] sm:$0xff] }
 0x68e   :  { %3951 = vrcp.f32 %v2464_v39  ;;  %v187_v28 = vadd.f32 %v7545_v45, %v7389_v40  ;;  %v7567_v45 = vld [vmem:[#allocation85_spill] sm:$0xff] }
 0x68f   :  { %3953 = vrcp.f32 %v2465_v47 }
 0x699   :  { %v3948_v50 = vpop.eup %3947 }
 0x69a   :  { %v3950_v53 = vpop.eup %3949 }
 0x69b   :  { %v3952_v18 = vpop.eup %3951  ;;  %v2474_v30 = vmul.f32 %v3950_v53, %v3948_v50 }
 0x69c   :  { %v2473_v55 = vmul.f32 %v3952_v18, %v5964_v25  ;;  %v3954_v25 = vpop.eup %3953 }
 0x69e   :  { %v6262_v35 = vadd.f32 %v2474_v30, %v2473_v55  ;;  %v7546_v55 = vld [vmem:[#allocation66_spill] sm:$0xff] }
 0x69f   :  { %v260_v30 = vadd.f32 %v7546_v55, %v7439_v12 }
 0x6a0   :  { %3955 = vtanh.f32 %v6262_v35 }
 0x6a8   :  { %v2520_v6 = vpop.f32.mrf.mxu0  ;;  %v2561_v33 = vpop.f32.mrf.mxu1 }
 0x6a9   :  { %v2568_v44 = vadd.f32 %v2520_v6, %v185_v26  ;;  %v7564_v26 = vld [vmem:[#allocation82_spill] sm:$0xff]  ;;  %v7565_v6 = vld [vmem:[#allocation83_spill] sm:$0xff] }
 0x6aa   :  { %v2522_v7 = vpop.f32.mrf.mxu0  ;;  %v2563_v9 = vpop.f32.mrf.mxu1 }
 0x6ab   :  { %v3563_v22 = vmul.f32 -1.442695, %v2568_v44  ;;  %v2569_v24 = vadd.f32 %v2522_v7, %v187_v28  ;;  %v2571_v29 = vadd.f32 %v2563_v9, %v260_v30  ;;  %v7568_v28 = vld [vmem:[#allocation3_spill] sm:$0xff]  ;;  %v7569_v44 = vld [vmem:[#allocation53_spill] sm:$0xff]  ;;  %v7570_v7 = vld [vmem:[#allocation4_spill] sm:$0xff] }
 0x6ac   :  { %v2524_v20 = vpop.f32.mrf.mxu0  ;;  %v2565_v27 = vpop.f32.mrf.mxu1  ;;  %v7571_v9 = vld [vmem:[#allocation55_spill] sm:$0xff]  ;;  %v7580_v30 = vld [vmem:[#allocation58_spill] sm:$0xff] }
 0x6ad   :  { %v3956_v39 = vpop.eup %3955  ;;  %3957 = vpow2.f32 %v3563_v22  ;;  %v3564_v11 = vmul.f32 -1.442695, %v2569_v24  ;;  %v7572_v22 = vld [vmem:[#allocation52_spill] sm:$0xff]  ;;  %v7573_v24 = vld [vmem:[#allocation54_spill] sm:$0xff]  ;;  %v7574_v27 = vld [vmem:[#allocation57_spill] sm:$0xff] }
 0x6ae   :  { %v2477_v50 = vmul.f32 %v3956_v39, %v3954_v25  ;;  %v2525_v53 = vpop.f32.mrf.mxu0  ;;  %v2566_v18 = vpop.f32.mrf.mxu1  ;;  %v7575_v39 = vld [vmem:[#allocation59_spill] sm:$0xff] }
 0x6af   :  { %3959 = vpow2.f32 %v3564_v11  ;;  %v7576_v11 = vld [vmem:[#allocation86_spill] sm:$0xff]  ;;  %v7578_v18 = vld [vmem:[#allocation56_spill] sm:$0xff] }
 0x6b0   :  { %v2572_v47 = vpack.c.bf16 %v2477_v50, %v2477_v50  ;;  %3961 = vtanh.f32 %v2571_v29  ;;  %v7577_v50 = vld [vmem:[#allocation87_spill] sm:$0xff]  ;;  %v7581_v29 = vld [vmem:[#allocation72_spill] sm:$0xff] }
 0x6b2   :  { %2606 = vmatmul.mubr.bf16.vlgmr.msra.gmra.mxu0 %v2572_v47  ;;  %2647 = vmatmul.mubr.bf16.vlgmr.msra.gmra.mxu1 %v2572_v47  ;;  %v7579_v47 = vld [vmem:[#allocation5_spill] sm:$0xff] }
 0x6b3   :  { %2656 = vmatpush1.bf16.msra.mxu0 %v5692_v61  ;;  %2697 = vmatpush1.bf16.msra.mxu1 %v5698_v56 }
 0x6b4   :  { %2657 = vmatprep.subr.bf16.mxu0 %v5704_v2  ;;  %2698 = vmatprep.subr.bf16.mxu1 %v5710_v0 }
 0x6b5   :  { %2687 = vmatprep.mubr.bf16.mxu0 %v7196_v54  ;;  %2728 = vmatprep.mubr.bf16.mxu1 %v7196_v54 }
 0x6b7   :  { %2658 = vmatpush1.bf16.msra.mxu0 %v5718_v60  ;;  %2699 = vmatpush1.bf16.msra.mxu1 %v5724_v1  ;;  %v7547_v60 = vld [vmem:[#allocation64_spill] sm:$0xff] }
 0x6b8   :  { %2659 = vmatprep.subr.bf16.mxu0 %v5730_v42  ;;  %2700 = vmatprep.subr.bf16.mxu1 %v5736_v8  ;;  %v258_v1 = vadd.f32 %v7547_v60, %v4548_v57  ;;  %v6380_v60 = vld [vmem:[%s6864_s5 + $0xc0] ss:$16 sps:$4 sm:$0xff]  }
 0x6ba   :  { %v3958_v61 = vpop.eup %3957  ;;  %v2570_v42 = vadd.f32 %v2561_v33, %v258_v1  ;;  %v7566_v33 = vld [vmem:[#allocation84_spill] sm:$0xff] }
 0x6bb   :  { %v2750_v56 = vadd.f32 1.0, %v3958_v61  ;;  %2660 = vmatpush1.bf16.msra.mxu0 %v5742_v31  ;;  %2701 = vmatpush1.bf16.msra.mxu1 %v5748_v13  ;;  %v6354_v61 = vld [vmem:[%s6864_s5 + $0xe0] ss:$16 sps:$4 sm:$0xff]   ;;  %v6386_v1 = vld [vmem:[%s6864_s5 + $0xc8] ss:$16 sps:$4 sm:$0xff]  }
 0x6bc   :  { %v3960_v2 = vpop.eup %3959  ;;  %2661 = vmatprep.subr.bf16.mxu0 %v5754_v10  ;;  %2702 = vmatprep.subr.bf16.mxu1 %v5760_v38  ;;  %v3565_v8 = vmul.f32 -1.442695, %v2570_v42  ;;  %v6392_v42 = vld [vmem:[%s6864_s5 + $0xa4] ss:$16 sps:$4 sm:$0xff]  }
 0x6bd   :  { %3963 = vrcp.f32 %v2750_v56  ;;  %v2751_v0 = vadd.f32 1.0, %v3960_v2  ;;  %v3962_v31 = vpop.eup %3961  ;;  %v6360_v56 = vld [vmem:[%s6864_s5 + $0xe8] ss:$16 sps:$4 sm:$0xff]   ;;  %v6366_v2 = vld [vmem:[%s6864_s5 + $0xc4] ss:$16 sps:$4 sm:$0xff]  }
 0x6bf   :  { %3965 = vrcp.f32 %v2751_v0  ;;  %2662 = vmatpush1.bf16.msra.mxu0 %v5766_v21  ;;  %2703 = vmatpush1.bf16.msra.mxu1 %v5772_v32  ;;  %v6372_v0 = vld [vmem:[%s6864_s5 + $0xcc] ss:$16 sps:$4 sm:$0xff]  }
 0x6c0   :  { %2663 = vmatprep.subr.bf16.mxu0 %v5778_v19  ;;  %2704 = vmatprep.subr.bf16.mxu1 %v5784_v58  ;;  %3967 = vpow2.f32 %v3565_v8  ;;  %v7548_v19 = vld [vmem:[#allocation20_spill] sm:$0xff]  ;;  %v7549_v58 = vld [vmem:[#allocation73_spill] sm:$0xff] }
 0x6c1   :  { %v6398_v8 = vld [vmem:[%s6864_s5 + $0xac] ss:$16 sps:$4 sm:$0xff]  }
 0x6c3   :  { %2664 = vmatpush1.bf16.msra.mxu0 %v5790_v49  ;;  %2705 = vmatpush1.bf16.msra.mxu1 %v5796_v59  ;;  %v7550_v49 = vld [vmem:[#allocation21_spill] sm:$0xff]  ;;  %v7551_v59 = vld [vmem:[#allocation22_spill] sm:$0xff] }
 0x6c4   :  { %2665 = vmatprep.subr.bf16.mxu0 %v7474_v3  ;;  %2706 = vmatprep.subr.bf16.mxu1 %v7475_v62  ;;  %v7555_v3 = vld [vmem:[#allocation36_spill] sm:$0xff]  ;;  %v7556_v62 = vld [vmem:[#allocation37_spill] sm:$0xff] }
 0x6c7   :  { %2666 = vmatpush1.bf16.msra.mxu0 %v7476_v17  ;;  %2707 = vmatpush1.bf16.msra.mxu1 %v7477_v16  ;;  %v7557_v17 = vld [vmem:[#allocation75_spill] sm:$0xff] }
 0x6c8   :  { %2667 = vmatprep.subr.bf16.mxu0 %v7478_v51  ;;  %2708 = vmatprep.subr.bf16.mxu1 %v7479_v46  ;;  %v7558_v51 = vld [vmem:[#allocation76_spill] sm:$0xff]  ;;  %v7559_v46 = vld [vmem:[#allocation77_spill] sm:$0xff] }
 0x6ca   :  { %v3964_v13 = vpop.eup %3963 }
 0x6cb   :  { %v2761_v10 = vmul.f32 %v3964_v13, %v3962_v31  ;;  %2668 = vmatpush1.bf16.msra.mxu0 %v7482_v36  ;;  %2709 = vmatpush1.bf16.msra.mxu1 %v7483_v14  ;;  %v7560_v36 = vld [vmem:[#allocation78_spill] sm:$0xff]  ;;  %v7561_v14 = vld [vmem:[#allocation79_spill] sm:$0xff] }
 0x6cc   :  { %v3966_v38 = vpop.eup %3965  ;;  %2669 = vmatprep.subr.bf16.mxu0 %v5850_v4  ;;  %2710 = vmatprep.subr.bf16.mxu1 %v5856_v41  ;;  %v7552_v4 = vld [vmem:[#allocation23_spill] sm:$0xff]  ;;  %v7553_v41 = vld [vmem:[#allocation24_spill] sm:$0xff] }
 0x6cd   :  { %v2760_v21 = vmul.f32 %v3966_v38, %v6216_v37  ;;  %v7563_v37 = vld [vmem:[#allocation81_spill] sm:$0xff]  ;;  %v6410_v13 = vld [vmem:[%s6864_s5 + $0xa8] ss:$16 sps:$4 sm:$0xff]   ;;  %v6422_v38 = vld [vmem:[%s6864_s5 + $0x8c] ss:$16 sps:$4 sm:$0xff]  }
 0x6ce   :  { %v6404_v31 = vld [vmem:[%s6864_s5 + $0xa0] ss:$16 sps:$4 sm:$0xff]  }
 0x6cf   :  { %v6304_v32 = vadd.f32 %v2761_v10, %v2760_v21  ;;  %2670 = vmatpush1.bf16.msra.mxu0 %v5862_v63  ;;  %2711 = vmatpush1.bf16.msra.mxu1 %v5868_v15  ;;  %v3968_v63 = vpop.eup %3967  ;;  %v7554_v15 = vld [vmem:[#allocation35_spill] sm:$0xff] }
 0x6d0   :  { %2797 = vmatprep.subr.bf16.mxu0 %v6006_v5  ;;  %2838 = vmatprep.subr.bf16.mxu1 %v7548_v19  ;;  %v2752_v16 = vadd.f32 1.0, %v3968_v63  ;;  %v7562_v5 = vld [vmem:[#allocation80_spill] sm:$0xff]  ;;  %v6416_v10 = vld [vmem:[%s6864_s5 + $0x84] ss:$16 sps:$4 sm:$0xff]   ;;  %v6428_v21 = vld [vmem:[%s6864_s5 + $0x80] ss:$16 sps:$4 sm:$0xff]  }
 0x6d1   :  { %3969 = vtanh.f32 %v6304_v32  ;;  %v6434_v19 = vld [vmem:[%s6864_s5 + $0x88] ss:$16 sps:$4 sm:$0xff]   ;;  %v6470_v63 = vld [vmem:[%s6864_s5 + $0x4c] ss:$16 sps:$4 sm:$0xff]  }
 0x6d2   :  { %2688 = vmatmul.mubr.bf16.vlgmr.msra.gmra.mxu0 %v7549_v58  ;;  %2729 = vmatmul.mubr.bf16.vlgmr.msra.gmra.mxu1 %v7549_v58  ;;  %3971 = vrcp.f32 %v2752_v16  ;;  %v6440_v58 = vld [vmem:[%s6864_s5 + $0x64] ss:$16 sps:$4 sm:$0xff]   ;;  %v6500_v16 = vld [vmem:[%s6864_s5 + $0x20] ss:$16 sps:$4 sm:$0xff]  }
 0x6d3   :  { %2798 = vmatpush1.bf16.msra.mxu0 %v7550_v49  ;;  %2839 = vmatpush1.bf16.msra.mxu1 %v7551_v59  ;;  %v6446_v49 = vld [vmem:[%s6864_s5 + $0x6c] ss:$16 sps:$4 sm:$0xff]   ;;  %v6452_v59 = vld [vmem:[%s6864_s5 + $0x60] ss:$16 sps:$4 sm:$0xff]  }
 0x6d4   :  { %2799 = vmatprep.subr.bf16.mxu0 %v7552_v4  ;;  %2840 = vmatprep.subr.bf16.mxu1 %v7553_v41  ;;  %v6458_v4 = vld [vmem:[%s6864_s5 + $0x68] ss:$16 sps:$4 sm:$0xff]   ;;  %v6464_v41 = vld [vmem:[%s6864_s5 + $0x44] ss:$16 sps:$4 sm:$0xff]  }
 0x6d5   :  { %2829 = vmatprep.mubr.bf16.mxu0 %v7196_v54  ;;  %2870 = vmatprep.mubr.bf16.mxu1 %v7196_v54 }
 0x6d7   :  { %2800 = vmatpush1.bf16.msra.mxu0 %v7554_v15  ;;  %2841 = vmatpush1.bf16.msra.mxu1 %v7555_v3  ;;  %v6476_v15 = vld [vmem:[%s6864_s5 + $0x40] ss:$16 sps:$4 sm:$0xff]   ;;  %v6482_v3 = vld [vmem:[%s6864_s5 + $0x48] ss:$16 sps:$4 sm:$0xff]  }
 0x6d8   :  { %2801 = vmatprep.subr.bf16.mxu0 %v7556_v62  ;;  %2842 = vmatprep.subr.bf16.mxu1 %v7557_v17  ;;  %v6488_v62 = vld [vmem:[%s6864_s5 + $0x24] ss:$16 sps:$4 sm:$0xff]   ;;  %v6494_v17 = vld [vmem:[%s6864_s5 + $0x2c] ss:$16 sps:$4 sm:$0xff]  }
 0x6db   :  { %2802 = vmatpush1.bf16.msra.mxu0 %v7558_v51  ;;  %2843 = vmatpush1.bf16.msra.mxu1 %v7559_v46  ;;  %v6506_v51 = vld [vmem:[%s6864_s5 + $0x28] ss:$16 sps:$4 sm:$0xff]   ;;  %v6512_v46 = vld [vmem:[%s6864_s5 + $0x4] ss:$16 sps:$4 sm:$0xff]  }
 0x6dc   :  { %2803 = vmatprep.subr.bf16.mxu0 %v7560_v36  ;;  %2844 = vmatprep.subr.bf16.mxu1 %v7561_v14  ;;  %v6518_v36 = vld [vmem:[%s6864_s5 + $0xc] ss:$16 sps:$4 sm:$0xff]   ;;  %v6524_v14 = vld [vmem:[%s6864_s5] ss:$16 sps:$4 sm:$0xff]  }
 0x6dd   :  { %7582 = vst [vmem:[#allocation74_spill] sm:$0xff] %v6524_v14 }
 0x6de   :  { %v3970_v25 = vpop.eup %3969 }
 0x6df   :  { %2804 = vmatpush1.bf16.msra.mxu0 %v7562_v5  ;;  %2845 = vmatpush1.bf16.msra.mxu1 %v7563_v37  ;;  %v3972_v20 = vpop.eup %3971  ;;  %v6530_v5 = vld [vmem:[%s6864_s5 + $0x8] ss:$16 sps:$4 sm:$0xff]   ;;  %v6536_v37 = vld [vmem:[%s6865_s4 + $0xe4] ss:$16 sps:$4 sm:$0xff]  }
 0x6e0   :  { %2805 = vmatprep.subr.bf16.mxu0 %v7564_v26  ;;  %2846 = vmatprep.subr.bf16.mxu1 %v7565_v6  ;;  %v2764_v53 = vmul.f32 %v3972_v20, %v3970_v25  ;;  %7583 = vst [vmem:[#allocation6_spill] sm:$0xff] %v6530_v5  ;;  %7584 = vst [vmem:[#allocation25_spill] sm:$0xff] %v6536_v37  ;;  %v6542_v26 = vld [vmem:[%s6865_s4 + $0xec] ss:$16 sps:$4 sm:$0xff]  }
 0x6e1   :  { %7585 = vst [vmem:[#allocation26_spill] sm:$0xff] %v6542_v26 }
 0x6e2   :  { %v6345_v55 = vpack.c.bf16 %v2764_v53, %v2764_v53 }
 0x6e3   :  { %2806 = vmatpush1.bf16.msra.mxu0 %v7566_v33  ;;  %2847 = vmatpush1.bf16.msra.mxu1 %v7567_v45 }
 0x6e4   :  { %2807 = vmatprep.subr.bf16.mxu0 %v7568_v28  ;;  %2848 = vmatprep.subr.bf16.mxu1 %v7569_v44 }
 0x6e7   :  { %2808 = vmatpush1.bf16.msra.mxu0 %v7570_v7  ;;  %2849 = vmatpush1.bf16.msra.mxu1 %v7571_v9 }
 0x6e8   :  { %2809 = vmatprep.subr.bf16.mxu0 %v7572_v22  ;;  %2850 = vmatprep.subr.bf16.mxu1 %v7573_v24 }
 0x6eb   :  { %2810 = vmatpush1.bf16.msra.mxu0 %v7574_v27  ;;  %2851 = vmatpush1.bf16.msra.mxu1 %v7575_v39 }
 0x6ec   :  { %2811 = vmatprep.subr.bf16.mxu0 %v7576_v11  ;;  %2852 = vmatprep.subr.bf16.mxu1 %v7577_v50 }
 0x6ef   :  { %2812 = vmatpush1.bf16.msra.mxu0 %v7578_v18  ;;  %2853 = vmatpush1.bf16.msra.mxu1 %v7579_v47 }
 0x6f0   :  { %2884 = vmatprep.subr.bf16.mxu0 %v7580_v30  ;;  %2925 = vmatprep.subr.bf16.mxu1 %v7581_v29 }
 0x6f2   :  { %2830 = vmatmul.mubr.bf16.vlgmr.msra.gmra.mxu0 %v6345_v55  ;;  %2871 = vmatmul.mubr.bf16.vlgmr.msra.gmra.mxu1 %v6345_v55 }
 0x6f3   :  { %2885 = vmatpush1.bf16.msra.mxu0 %v6354_v61  ;;  %2926 = vmatpush1.bf16.msra.mxu1 %v6360_v56 }
 0x6f4   :  { %2886 = vmatprep.subr.bf16.mxu0 %v6366_v2  ;;  %2927 = vmatprep.subr.bf16.mxu1 %v6372_v0 }
 0x6f5   :  { %2916 = vmatprep.mubr.bf16.mxu0 %v7196_v54  ;;  %2957 = vmatprep.mubr.bf16.mxu1 %v7196_v54 }
 0x6f7   :  { %2887 = vmatpush1.bf16.msra.mxu0 %v6380_v60  ;;  %2928 = vmatpush1.bf16.msra.mxu1 %v6386_v1 }
 0x6f8   :  { %2888 = vmatprep.subr.bf16.mxu0 %v6392_v42  ;;  %2929 = vmatprep.subr.bf16.mxu1 %v6398_v8 }
 0x6fb   :  { %2889 = vmatpush1.bf16.msra.mxu0 %v6404_v31  ;;  %2930 = vmatpush1.bf16.msra.mxu1 %v6410_v13 }
 0x6fc   :  { %2890 = vmatprep.subr.bf16.mxu0 %v6416_v10  ;;  %2931 = vmatprep.subr.bf16.mxu1 %v6422_v38 }
 0x6ff   :  { %2891 = vmatpush1.bf16.msra.mxu0 %v6428_v21  ;;  %2932 = vmatpush1.bf16.msra.mxu1 %v6434_v19 }
 0x700   :  { %2892 = vmatprep.subr.bf16.mxu0 %v6440_v58  ;;  %2933 = vmatprep.subr.bf16.mxu1 %v6446_v49 }
 0x703   :  { %2893 = vmatpush1.bf16.msra.mxu0 %v6452_v59  ;;  %2934 = vmatpush1.bf16.msra.mxu1 %v6458_v4 }
 0x704   :  { %2894 = vmatprep.subr.bf16.mxu0 %v6464_v41  ;;  %2935 = vmatprep.subr.bf16.mxu1 %v6470_v63 }
 0x707   :  { %2895 = vmatpush1.bf16.msra.mxu0 %v6476_v15  ;;  %2936 = vmatpush1.bf16.msra.mxu1 %v6482_v3 }
 0x708   :  { %2896 = vmatprep.subr.bf16.mxu0 %v6488_v62  ;;  %2937 = vmatprep.subr.bf16.mxu1 %v6494_v17 }
 0x70b   :  { %2897 = vmatpush1.bf16.msra.mxu0 %v6500_v16  ;;  %2938 = vmatpush1.bf16.msra.mxu1 %v6506_v51 }
 0x70c   :  { %2898 = vmatprep.subr.bf16.mxu0 %v6512_v46  ;;  %2939 = vmatprep.subr.bf16.mxu1 %v6518_v36 }
 0x70f   :  { %2899 = vmatpush1.bf16.msra.mxu0 %v6524_v14  ;;  %2940 = vmatpush1.bf16.msra.mxu1 %v6530_v5 }
 0x710   :  { %2966 = vmatprep.subr.bf16.mxu0 %v6536_v37  ;;  %3007 = vmatprep.subr.bf16.mxu1 %v6542_v26 }
 0x772   :  { %v2607_v6 = vpop.f32.mrf.mxu0  ;;  %v2648_v33 = vpop.f32.mrf.mxu1 }
 0x774   :  { %v2609_v45 = vpop.f32.mrf.mxu0  ;;  %v2650_v28 = vpop.f32.mrf.mxu1 }
 0x776   :  { %v2611_v44 = vpop.f32.mrf.mxu0  ;;  %v2652_v7 = vpop.f32.mrf.mxu1 }
 0x778   :  { %v2612_v9 = vpop.f32.mrf.mxu0  ;;  %v2653_v22 = vpop.f32.mrf.mxu1 }
 0x792   :  { %v2689_v24 = vpop.f32.mrf.mxu0  ;;  %v2730_v25 = vpop.f32.mrf.mxu1 }
 0x793   :  { %v2690_v20 = vadd.f32 %v2689_v24, %v2607_v6  ;;  %v2731_v7 = vadd.f32 %v2730_v25, %v2648_v33 }
 0x794   :  { %v2691_v27 = vpop.f32.mrf.mxu0  ;;  %v2732_v39 = vpop.f32.mrf.mxu1 }
 0x795   :  { %v2737_v11 = vadd.f32 %v2690_v20, %v7325_v43  ;;  %v2692_v50 = vadd.f32 %v2691_v27, %v2609_v45  ;;  %v2739_v9 = vadd.f32 %v2731_v7, %v7327_v23  ;;  %v2733_v22 = vadd.f32 %v2732_v39, %v2650_v28  ;;  %v7588_v28 = vld [vmem:[#allocation71_spill] sm:$0xff] }
 0x796   :  { %v2693_v53 = vpop.f32.mrf.mxu0  ;;  %v2734_v18 = vpop.f32.mrf.mxu1  ;;  %v191_v39 = vadd.f32 %v7588_v28, %v7389_v40 }
 0x797   :  { %v3566_v47 = vmul.f32 -1.442695, %v2737_v11  ;;  %v2738_v26 = vadd.f32 %v2692_v50, %v7326_v34  ;;  %v3568_v6 = vmul.f32 -1.442695, %v2739_v9  ;;  %v2740_v14 = vadd.f32 %v2733_v22, %v7328_v52 }
 0x798   :  { %v2694_v37 = vpop.f32.mrf.mxu0  ;;  %v2735_v5 = vpop.f32.mrf.mxu1 }
 0x799   :  { %3973 = vpow2.f32 %v3566_v47  ;;  %v3567_v44 = vmul.f32 -1.442695, %v2738_v26  ;;  %v7586_v5 = vld [vmem:[#allocation69_spill] sm:$0xff]  ;;  %v7587_v26 = vld [vmem:[#allocation68_spill] sm:$0xff] }
 0x79a   :  { %v189_v37 = vadd.f32 %v7586_v5, %v7387_v48  ;;  %v262_v33 = vadd.f32 %v7587_v26, %v4548_v57  ;;  %v7589_v26 = vld [vmem:[#allocation70_spill] sm:$0xff] }
 0x79b   :  { %3975 = vpow2.f32 %v3567_v44 }
 0x79c   :  { %3977 = vpow2.f32 %v3568_v6 }
 0x7a6   :  { %v3974_v24 = vpop.eup %3973 }
 0x7a7   :  { %v2774_v20 = vadd.f32 1.0, %v3974_v24 }
 0x7a8   :  { %v3976_v45 = vpop.eup %3975 }
 0x7a9   :  { %3979 = vrcp.f32 %v2774_v20  ;;  %v2775_v27 = vadd.f32 1.0, %v3976_v45  ;;  %v3978_v44 = vpop.eup %3977 }
 0x7aa   :  { %3981 = vtanh.f32 %v2740_v14  ;;  %v2776_v57 = vadd.f32 1.0, %v3978_v44 }
 0x7ab   :  { %3983 = vrcp.f32 %v2775_v27 }
 0x7b2   :  { %v2831_v25 = vpop.f32.mrf.mxu0  ;;  %v2872_v11 = vpop.f32.mrf.mxu1 }
 0x7b3   :  { %v2879_v50 = vadd.f32 %v2831_v25, %v189_v37  ;;  %v2881_v53 = vadd.f32 %v2872_v11, %v262_v33  ;;  %v264_v33 = vadd.f32 %v7589_v26, %v7439_v12  ;;  %v6564_v12 = vld [vmem:[%s6865_s4 + $0xe0] ss:$16 sps:$4 sm:$0xff]  }
 0x7b4   :  { %v2833_v18 = vpop.f32.mrf.mxu0  ;;  %v2874_v47 = vpop.f32.mrf.mxu1 }
 0x7b5   :  { %v3569_v7 = vmul.f32 -1.442695, %v2879_v50  ;;  %v2880_v9 = vadd.f32 %v2833_v18, %v191_v39  ;;  %v3571_v25 = vmul.f32 -1.442695, %v2881_v53  ;;  %v2882_v11 = vadd.f32 %v2874_v47, %v264_v33  ;;  %v6570_v53 = vld [vmem:[%s6865_s4 + $0xe8] ss:$16 sps:$4 sm:$0xff]  }
 0x7b6   :  { %v3980_v14 = vpop.eup %3979  ;;  %v2835_v22 = vpop.f32.mrf.mxu0  ;;  %v6576_v47 = vld [vmem:[%s6865_s4 + $0xc4] ss:$16 sps:$4 sm:$0xff]   ;;  %v6615_v33 = vld [vmem:[%s6865_s4 + $0xa0] ss:$16 sps:$4 sm:$0xff]  }
 0x7b7   :  { %v2876_v6 = vpop.f32.mrf.mxu1  ;;  %v3982_v24 = vpop.eup %3981  ;;  %3985 = vpow2.f32 %v3569_v7  ;;  %v3570_v48 = vmul.f32 -1.442695, %v2880_v9 }
 0x7b8   :  { %v3984_v20 = vpop.eup %3983  ;;  %v2836_v45 = vpop.f32.mrf.mxu0  ;;  %v2785_v40 = vmul.f32 %v3982_v24, %v3980_v14  ;;  %v6582_v14 = vld [vmem:[%s6865_s4 + $0xcc] ss:$16 sps:$4 sm:$0xff]  }
 0x7b9   :  { %v2877_v27 = vpop.f32.mrf.mxu1  ;;  %v2784_v5 = vmul.f32 %v3984_v20, %v6262_v35  ;;  %3987 = vpow2.f32 %v3570_v48  ;;  %v6590_v48 = vld [vmem:[%s6865_s4 + $0xc0] ss:$16 sps:$4 sm:$0xff]   ;;  %v6596_v20 = vld [vmem:[%s6865_s4 + $0xc8] ss:$16 sps:$4 sm:$0xff]   ;;  %v6602_v45 = vld [vmem:[%s6865_s4 + $0xa4] ss:$16 sps:$4 sm:$0xff]  }
 0x7ba   :  { %3989 = vrcp.f32 %v2776_v57  ;;  %v6608_v27 = vld [vmem:[%s6865_s4 + $0xac] ss:$16 sps:$4 sm:$0xff]  }
 0x7bb   :  { %v6556_v37 = vadd.f32 %v2785_v40, %v2784_v5 }
 0x7bd   :  { %3991 = vtanh.f32 %v6556_v37 }
 0x7be   :  { %3993 = vpow2.f32 %v3571_v25  ;;  %v6621_v25 = vld [vmem:[%s6865_s4 + $0xa8] ss:$16 sps:$4 sm:$0xff]  }
 0x7bf   :  { %3995 = vtanh.f32 %v2882_v11 }
 0x7c4   :  { %v3986_v28 = vpop.eup %3985 }
 0x7c5   :  { %v3061_v39 = vadd.f32 1.0, %v3986_v28  ;;  %v6627_v28 = vld [vmem:[%s6865_s4 + $0x84] ss:$16 sps:$4 sm:$0xff]  }
 0x7c6   :  { %v3988_v50 = vpop.eup %3987 }
 0x7c7   :  { %3997 = vrcp.f32 %v3061_v39  ;;  %v3062_v18 = vadd.f32 1.0, %v3988_v50  ;;  %v3990_v35 = vpop.eup %3989  ;;  %v6639_v39 = vld [vmem:[%s6865_s4 + $0x80] ss:$16 sps:$4 sm:$0xff]   ;;  %v6645_v50 = vld [vmem:[%s6865_s4 + $0x88] ss:$16 sps:$4 sm:$0xff]  }
 0x7c9   :  { %3999 = vrcp.f32 %v3062_v18  ;;  %v6651_v18 = vld [vmem:[%s6865_s4 + $0x64] ss:$16 sps:$4 sm:$0xff]  }
 0x7ca   :  { %v3992_v44 = vpop.eup %3991 }
 0x7cb   :  { %v2788_v7 = vmul.f32 %v3992_v44, %v3990_v35  ;;  %v3994_v22 = vpop.eup %3993  ;;  %v6657_v35 = vld [vmem:[%s6865_s4 + $0x6c] ss:$16 sps:$4 sm:$0xff]   ;;  %v6663_v44 = vld [vmem:[%s6865_s4 + $0x60] ss:$16 sps:$4 sm:$0xff]  }
 0x7cc   :  { %v3996_v6 = vpop.eup %3995  ;;  %v3063_v40 = vadd.f32 1.0, %v3994_v22  ;;  %v6681_v22 = vld [vmem:[%s6865_s4 + $0x4c] ss:$16 sps:$4 sm:$0xff]  }
 0x7cd   :  { %v2883_v9 = vpack.c.bf16 %v2788_v7, %v2788_v7  ;;  %v6669_v7 = vld [vmem:[%s6865_s4 + $0x68] ss:$16 sps:$4 sm:$0xff]  }
 0x7ce   :  { %4001 = vrcp.f32 %v3063_v40 }
 0x7cf   :  { %2917 = vmatmul.mubr.bf16.vlgmr.msra.gmra.mxu0 %v2883_v9  ;;  %2958 = vmatmul.mubr.bf16.vlgmr.msra.gmra.mxu1 %v2883_v9  ;;  %v6675_v9 = vld [vmem:[%s6865_s4 + $0x44] ss:$16 sps:$4 sm:$0xff]  }
 0x7d0   :  { %2967 = vmatpush1.bf16.msra.mxu0 %v6564_v12  ;;  %3008 = vmatpush1.bf16.msra.mxu1 %v6570_v53 }
 0x7d1   :  { %2968 = vmatprep.subr.bf16.mxu0 %v6576_v47  ;;  %3009 = vmatprep.subr.bf16.mxu1 %v6582_v14 }
 0x7d2   :  { %2998 = vmatprep.mubr.bf16.mxu0 %v7196_v54  ;;  %3039 = vmatprep.mubr.bf16.mxu1 %v7196_v54 }
 0x7d4   :  { %v3998_v24 = vpop.eup %3997  ;;  %2969 = vmatpush1.bf16.msra.mxu0 %v6590_v48  ;;  %3010 = vmatpush1.bf16.msra.mxu1 %v6596_v20 }
 0x7d5   :  { %v3072_v57 = vmul.f32 %v3998_v24, %v3996_v6  ;;  %2970 = vmatprep.subr.bf16.mxu0 %v6602_v45  ;;  %3011 = vmatprep.subr.bf16.mxu1 %v6608_v27  ;;  %v6687_v6 = vld [vmem:[%s6865_s4 + $0x40] ss:$16 sps:$4 sm:$0xff]   ;;  %v6693_v24 = vld [vmem:[%s6865_s4 + $0x48] ss:$16 sps:$4 sm:$0xff]  }
 0x7d6   :  { %v4000_v5 = vpop.eup %3999  ;;  %7590 = vst [vmem:[#allocation27_spill] sm:$0xff] %v6693_v24 }
 0x7d7   :  { %v3071_v26 = vmul.f32 %v4000_v5, %v6304_v32  ;;  %v6633_v32 = vld [vmem:[%s6865_s4 + $0x8c] ss:$16 sps:$4 sm:$0xff]  }
 0x7d8   :  { %2971 = vmatpush1.bf16.msra.mxu0 %v6615_v33  ;;  %3012 = vmatpush1.bf16.msra.mxu1 %v6621_v25  ;;  %v6705_v5 = vld [vmem:[%s6865_s4 + $0x2c] ss:$16 sps:$4 sm:$0xff]  }
 0x7d9   :  { %v3073_v11 = vadd.f32 %v3072_v57, %v3071_v26  ;;  %2972 = vmatprep.subr.bf16.mxu0 %v6627_v28  ;;  %3013 = vmatprep.subr.bf16.mxu1 %v6633_v32  ;;  %v6699_v57 = vld [vmem:[%s6865_s4 + $0x24] ss:$16 sps:$4 sm:$0xff]   ;;  %7592 = vst [vmem:[#allocation29_spill] sm:$0xff] %v6705_v5 }
 0x7da   :  { %7591 = vst [vmem:[#allocation28_spill] sm:$0xff] %v6699_v57 }
 0x7db   :  { %4003 = vtanh.f32 %v3073_v11  ;;  %v4002_v40 = vpop.eup %4001  ;;  %v6711_v11 = vld [vmem:[%s6865_s4 + $0x20] ss:$16 sps:$4 sm:$0xff]  }
 0x7dc   :  { %2973 = vmatpush1.bf16.msra.mxu0 %v6639_v39  ;;  %3014 = vmatpush1.bf16.msra.mxu1 %v6645_v50  ;;  %7593 = vst [vmem:[#allocation12_spill] sm:$0xff] %v6711_v11 }
 0x7dd   :  { %2974 = vmatprep.subr.bf16.mxu0 %v6651_v18  ;;  %3015 = vmatprep.subr.bf16.mxu1 %v6657_v35 }
 0x7e0   :  { %2975 = vmatpush1.bf16.msra.mxu0 %v6663_v44  ;;  %3016 = vmatpush1.bf16.msra.mxu1 %v6669_v7 }
 0x7e1   :  { %2976 = vmatprep.subr.bf16.mxu0 %v6675_v9  ;;  %3017 = vmatprep.subr.bf16.mxu1 %v6681_v22 }
 0x7e4   :  { %2977 = vmatpush1.bf16.msra.mxu0 %v6687_v6  ;;  %3018 = vmatpush1.bf16.msra.mxu1 %v6693_v24  ;;  %v6729_v24 = vld [vmem:[%s6865_s4 + $0xc] ss:$16 sps:$4 sm:$0xff]  }
 0x7e5   :  { %2978 = vmatprep.subr.bf16.mxu0 %v6699_v57  ;;  %3019 = vmatprep.subr.bf16.mxu1 %v6705_v5  ;;  %v6717_v57 = vld [vmem:[%s6865_s4 + $0x28] ss:$16 sps:$4 sm:$0xff]   ;;  %v6723_v5 = vld [vmem:[%s6865_s4 + $0x4] ss:$16 sps:$4 sm:$0xff]  }
 0x7e6   :  { %7594 = vst [vmem:[#allocation13_spill] sm:$0xff] %v6717_v57  ;;  %7595 = vst [vmem:[#allocation14_spill] sm:$0xff] %v6723_v5 }
 0x7e8   :  { %v4004_v26 = vpop.eup %4003  ;;  %2979 = vmatpush1.bf16.msra.mxu0 %v6711_v11  ;;  %3020 = vmatpush1.bf16.msra.mxu1 %v6717_v57  ;;  %v6737_v57 = vld [vmem:[%s6865_s4] ss:$16 sps:$4 sm:$0xff]  }
 0x7e9   :  { %2980 = vmatprep.subr.bf16.mxu0 %v6723_v5  ;;  %3021 = vmatprep.subr.bf16.mxu1 %v6729_v24  ;;  %v6732_v11 = vmul.f32 %v4004_v26, %v4002_v40  ;;  %v6743_v5 = vld [vmem:[%s6865_s4 + $0x8] ss:$16 sps:$4 sm:$0xff]  }
 0x7ec   :  { %2981 = vmatpush1.bf16.msra.mxu0 %v6737_v57  ;;  %3022 = vmatpush1.bf16.msra.mxu1 %v6743_v5 }
 0x7ed   :  { %3102 = vmatprep.subr.bf16.mxu0 %v7580_v30  ;;  %3143 = vmatprep.subr.bf16.mxu1 %v7581_v29  ;;  %v7597_v30 = vld [vmem:[#allocation6_spill] sm:$0xff]  ;;  %v7598_v29 = vld [vmem:[#allocation25_spill] sm:$0xff] }
 0x7ef   :  { %2999 = vmatmul.mubr.bf16.vlgmr.msra.gmra.mxu0 %v6345_v55  ;;  %3040 = vmatmul.mubr.bf16.vlgmr.msra.gmra.mxu1 %v6345_v55  ;;  %v7596_v55 = vld [vmem:[#allocation74_spill] sm:$0xff] }
 0x7f0   :  { %3103 = vmatpush1.bf16.msra.mxu0 %v6354_v61  ;;  %3144 = vmatpush1.bf16.msra.mxu1 %v6360_v56  ;;  %v7599_v61 = vld [vmem:[#allocation26_spill] sm:$0xff] }
 0x7f1   :  { %3104 = vmatprep.subr.bf16.mxu0 %v6366_v2  ;;  %3145 = vmatprep.subr.bf16.mxu1 %v6372_v0 }
 0x7f2   :  { %3134 = vmatprep.mubr.bf16.mxu0 %v7196_v54  ;;  %3175 = vmatprep.mubr.bf16.mxu1 %v7196_v54 }
 0x7f4   :  { %3105 = vmatpush1.bf16.msra.mxu0 %v6380_v60  ;;  %3146 = vmatpush1.bf16.msra.mxu1 %v6386_v1 }
 0x7f5   :  { %3106 = vmatprep.subr.bf16.mxu0 %v6392_v42  ;;  %3147 = vmatprep.subr.bf16.mxu1 %v6398_v8 }
 0x7f8   :  { %3107 = vmatpush1.bf16.msra.mxu0 %v6404_v31  ;;  %3148 = vmatpush1.bf16.msra.mxu1 %v6410_v13 }
 0x7f9   :  { %3108 = vmatprep.subr.bf16.mxu0 %v6416_v10  ;;  %3149 = vmatprep.subr.bf16.mxu1 %v6422_v38 }
 0x7fc   :  { %3109 = vmatpush1.bf16.msra.mxu0 %v6428_v21  ;;  %3150 = vmatpush1.bf16.msra.mxu1 %v6434_v19 }
 0x7fd   :  { %3110 = vmatprep.subr.bf16.mxu0 %v6440_v58  ;;  %3151 = vmatprep.subr.bf16.mxu1 %v6446_v49 }
 0x800   :  { %3111 = vmatpush1.bf16.msra.mxu0 %v6452_v59  ;;  %3152 = vmatpush1.bf16.msra.mxu1 %v6458_v4 }
 0x801   :  { %3112 = vmatprep.subr.bf16.mxu0 %v6464_v41  ;;  %3153 = vmatprep.subr.bf16.mxu1 %v6470_v63 }
 0x804   :  { %3113 = vmatpush1.bf16.msra.mxu0 %v6476_v15  ;;  %3154 = vmatpush1.bf16.msra.mxu1 %v6482_v3 }
 0x805   :  { %3114 = vmatprep.subr.bf16.mxu0 %v6488_v62  ;;  %3155 = vmatprep.subr.bf16.mxu1 %v6494_v17 }
 0x808   :  { %3115 = vmatpush1.bf16.msra.mxu0 %v6500_v16  ;;  %3156 = vmatpush1.bf16.msra.mxu1 %v6506_v51 }
 0x809   :  { %3116 = vmatprep.subr.bf16.mxu0 %v6512_v46  ;;  %3157 = vmatprep.subr.bf16.mxu1 %v6518_v36 }
 0x80c   :  { %3117 = vmatpush1.bf16.msra.mxu0 %v7596_v55  ;;  %3158 = vmatpush1.bf16.msra.mxu1 %v7597_v30 }
 0x80d   :  { %3184 = vmatprep.subr.bf16.mxu0 %v7598_v29  ;;  %3225 = vmatprep.subr.bf16.mxu1 %v7599_v61 }
 0x88f   :  { %v2918_v56 = vpop.f32.mrf.mxu0  ;;  %v2959_v2 = vpop.f32.mrf.mxu1 }
 0x891   :  { %v2920_v0 = vpop.f32.mrf.mxu0  ;;  %v2961_v60 = vpop.f32.mrf.mxu1 }
 0x893   :  { %v2922_v1 = vpop.f32.mrf.mxu0  ;;  %v2963_v42 = vpop.f32.mrf.mxu1 }
 0x895   :  { %v2923_v8 = vpop.f32.mrf.mxu0  ;;  %v2964_v31 = vpop.f32.mrf.mxu1 }
 0x8af   :  { %v3000_v13 = vpop.f32.mrf.mxu0  ;;  %v3041_v10 = vpop.f32.mrf.mxu1 }
 0x8b0   :  { %v3001_v38 = vadd.f32 %v3000_v13, %v2918_v56  ;;  %v3042_v17 = vadd.f32 %v3041_v10, %v2959_v2 }
 0x8b1   :  { %v3002_v21 = vpop.f32.mrf.mxu0  ;;  %v3043_v19 = vpop.f32.mrf.mxu1 }
 0x8b2   :  { %v3048_v58 = vadd.f32 %v3001_v38, %v7325_v43  ;;  %v3003_v49 = vadd.f32 %v3002_v21, %v2920_v0  ;;  %v3050_v16 = vadd.f32 %v3042_v17, %v7327_v23  ;;  %v3044_v51 = vadd.f32 %v3043_v19, %v2961_v60 }
 0x8b3   :  { %v3004_v59 = vpop.f32.mrf.mxu0  ;;  %v3045_v4 = vpop.f32.mrf.mxu1 }
 0x8b4   :  { %v3572_v41 = vmul.f32 -1.442695, %v3048_v58  ;;  %v3049_v63 = vadd.f32 %v3003_v49, %v7326_v34  ;;  %v3574_v46 = vmul.f32 -1.442695, %v3050_v16  ;;  %v3051_v40 = vadd.f32 %v3044_v51, %v7328_v52 }
 0x8b5   :  { %v3005_v15 = vpop.f32.mrf.mxu0  ;;  %v3046_v3 = vpop.f32.mrf.mxu1 }
 0x8b6   :  { %4005 = vpow2.f32 %v3572_v41  ;;  %v3573_v62 = vmul.f32 -1.442695, %v3049_v63 }
 0x8b8   :  { %4007 = vpow2.f32 %v3573_v62 }
 0x8b9   :  { %4009 = vpow2.f32 %v3574_v46 }
 0x8c3   :  { %v4006_v36 = vpop.eup %4005 }
 0x8c4   :  { %v3085_v26 = vadd.f32 1.0, %v4006_v36 }
 0x8c5   :  { %v4008_v55 = vpop.eup %4007 }
 0x8c6   :  { %4011 = vrcp.f32 %v3085_v26  ;;  %v3086_v30 = vadd.f32 1.0, %v4008_v55  ;;  %v4010_v29 = vpop.eup %4009 }
 0x8c7   :  { %4013 = vtanh.f32 %v3051_v40  ;;  %v3087_v1 = vadd.f32 1.0, %v4010_v29 }
 0x8c8   :  { %4015 = vrcp.f32 %v3086_v30 }
 0x8c9   :  { %4017 = vrcp.f32 %v3087_v1 }
 0x8d3   :  { %v4012_v61 = vpop.eup %4011 }
 0x8d4   :  { %v4014_v56 = vpop.eup %4013 }
 0x8d5   :  { %v4016_v0 = vpop.eup %4015  ;;  %v3096_v42 = vmul.f32 %v4014_v56, %v4012_v61 }
 0x8d6   :  { %v3095_v2 = vmul.f32 %v4016_v0, %v6556_v37  ;;  %v4018_v8 = vpop.eup %4017  ;;  %v7601_v37 = vld [vmem:[#allocation28_spill] sm:$0xff] }
 0x8d8   :  { %v6789_v60 = vadd.f32 %v3096_v42, %v3095_v2 }
 0x8da   :  { %4019 = vtanh.f32 %v6789_v60 }
 0x8e7   :  { %v4020_v31 = vpop.eup %4019 }
 0x8e8   :  { %v3099_v13 = vmul.f32 %v4020_v31, %v4018_v8  ;;  %v3578_v8 = vld [vmem:[%s6869_s8] ss:$0 sm:$0xff] }
 0x8ea   :  { %v3101_v10 = vpack.c.bf16 %v3099_v13, %v3099_v13 }
 0x8ec   :  { %3135 = vmatmul.mubr.bf16.vlgmr.msra.gmra.mxu0 %v3101_v10  ;;  %3176 = vmatmul.mubr.bf16.vlgmr.msra.gmra.mxu1 %v3101_v10 }
 0x8ed   :  { %3185 = vmatpush1.bf16.msra.mxu0 %v6564_v12  ;;  %3226 = vmatpush1.bf16.msra.mxu1 %v6570_v53  ;;  %v7602_v12 = vld [vmem:[#allocation29_spill] sm:$0xff]  ;;  %v7603_v53 = vld [vmem:[#allocation12_spill] sm:$0xff] }
 0x8ee   :  { %3186 = vmatprep.subr.bf16.mxu0 %v6576_v47  ;;  %3227 = vmatprep.subr.bf16.mxu1 %v6582_v14  ;;  %v7604_v47 = vld [vmem:[#allocation13_spill] sm:$0xff]  ;;  %v7605_v14 = vld [vmem:[#allocation14_spill] sm:$0xff] }
 0x8ef   :  { %3216 = vmatprep.mubr.bf16.mxu0 %v7196_v54  ;;  %3257 = vmatprep.mubr.bf16.mxu1 %v7196_v54  ;;  %v7600_v54 = vld [vmem:[#allocation27_spill] sm:$0xff] }
 0x8f1   :  { %3187 = vmatpush1.bf16.msra.mxu0 %v6590_v48  ;;  %3228 = vmatpush1.bf16.msra.mxu1 %v6596_v20  ;;  %v3100_v48 = vpack.c.bf16 %v6732_v11, %v6732_v11  ;;  %v3773_v20 = vld [vmem:[%s6868_s7 + $0x38] sm:$0xff]  }
 0x8f2   :  { %3188 = vmatprep.subr.bf16.mxu0 %v6602_v45  ;;  %3229 = vmatprep.subr.bf16.mxu1 %v6608_v27  ;;  %v4230_v45 = vmov 0.0   ;;  %v3774_v27 = vld [vmem:[%s6868_s7 + $0x30] sm:$0xff]  }
 0x8f5   :  { %3189 = vmatpush1.bf16.msra.mxu0 %v6615_v33  ;;  %3230 = vmatpush1.bf16.msra.mxu1 %v6621_v25  ;;  %v3775_v33 = vld [vmem:[%s6868_s7 + $0x28] sm:$0xff]   ;;  %v3776_v25 = vld [vmem:[%s6868_s7 + $0x20] sm:$0xff]  }
 0x8f6   :  { %3190 = vmatprep.subr.bf16.mxu0 %v6627_v28  ;;  %3231 = vmatprep.subr.bf16.mxu1 %v6633_v32  ;;  %v3777_v28 = vld [vmem:[%s6868_s7 + $0x18] sm:$0xff]   ;;  %v3778_v32 = vld [vmem:[%s6868_s7 + $0x10] sm:$0xff]  }
 0x8f9   :  { %3191 = vmatpush1.bf16.msra.mxu0 %v6639_v39  ;;  %3232 = vmatpush1.bf16.msra.mxu1 %v6645_v50  ;;  %v3779_v39 = vld [vmem:[%s6868_s7 + $0x8] sm:$0xff]   ;;  %v3780_v50 = vld [vmem:[%s6868_s7] sm:$0xff]  }
 0x8fa   :  { %3192 = vmatprep.subr.bf16.mxu0 %v6651_v18  ;;  %3233 = vmatprep.subr.bf16.mxu1 %v6657_v35 }
 0x8fd   :  { %3193 = vmatpush1.bf16.msra.mxu0 %v6663_v44  ;;  %3234 = vmatpush1.bf16.msra.mxu1 %v6669_v7 }
 0x8fe   :  { %3194 = vmatprep.subr.bf16.mxu0 %v6675_v9  ;;  %3235 = vmatprep.subr.bf16.mxu1 %v6681_v22 }
 0x901   :  { %3195 = vmatpush1.bf16.msra.mxu0 %v6687_v6  ;;  %3236 = vmatpush1.bf16.msra.mxu1 %v7600_v54 }
 0x902   :  { %3196 = vmatprep.subr.bf16.mxu0 %v7601_v37  ;;  %3237 = vmatprep.subr.bf16.mxu1 %v7602_v12 }
 0x905   :  { %3197 = vmatpush1.bf16.msra.mxu0 %v7603_v53  ;;  %3238 = vmatpush1.bf16.msra.mxu1 %v7604_v47 }
 0x906   :  { %3198 = vmatprep.subr.bf16.mxu0 %v7605_v14  ;;  %3239 = vmatprep.subr.bf16.mxu1 %v6729_v24 }
 0x909   :  { %3199 = vmatpush1.bf16.msra.mxu0 %v6737_v57  ;;  %3240 = vmatpush1.bf16.msra.mxu1 %v6743_v5 }
 0x90a   :  { %3596 = vmatprep.subr.bf16.mxu0 %v4230_v45 }
 0x90c   :  { %3217 = vmatmul.mubr.bf16.vlgmr.msra.gmra.mxu0 %v3100_v48  ;;  %3258 = vmatmul.mubr.bf16.vlgmr.msra.gmra.mxu1 %v3100_v48 }
 0x90d   :  { %3597 = vmatpush3.bf16.msra.mxu0 %v3773_v20  ;;  %3612 = vmatprep.mubr.msk.bf16.mxu0 %vm4231_vm1, %v4230_v45 }
 0x90e   :  { %3598 = vmatprep.subr.bf16.mxu0 %v4230_v45 }
 0x911   :  { %3599 = vmatpush3.bf16.msra.mxu0 %v3774_v27 }
 0x912   :  { %3600 = vmatprep.subr.bf16.mxu0 %v4230_v45 }
 0x915   :  { %3601 = vmatpush3.bf16.msra.mxu0 %v3775_v33 }
 0x916   :  { %3602 = vmatprep.subr.bf16.mxu0 %v4230_v45 }
 0x919   :  { %3603 = vmatpush3.bf16.msra.mxu0 %v3776_v25 }
 0x91a   :  { %3604 = vmatprep.subr.bf16.mxu0 %v4230_v45 }
 0x91d   :  { %3605 = vmatpush3.bf16.msra.mxu0 %v3777_v28 }
 0x91e   :  { %3606 = vmatprep.subr.bf16.mxu0 %v4230_v45 }
 0x921   :  { %3607 = vmatpush3.bf16.msra.mxu0 %v3778_v32 }
 0x922   :  { %3608 = vmatprep.subr.bf16.mxu0 %v4230_v45 }
 0x925   :  { %3609 = vmatpush3.bf16.msra.mxu0 %v3779_v39 }
 0x926   :  { %3610 = vmatprep.subr.bf16.mxu0 %v4230_v45 }
 0x929   :  { %3611 = vmatpush3.bf16.msra.mxu0 %v3780_v50 }
 0x9ac   :  { %v3136_v18 = vpop.f32.mrf.mxu0  ;;  %v3177_v35 = vpop.f32.mrf.mxu1 }
 0x9ae   :  { %v3138_v44 = vpop.f32.mrf.mxu0  ;;  %v3179_v7 = vpop.f32.mrf.mxu1 }
 0x9b0   :  { %v3140_v9 = vpop.f32.mrf.mxu0  ;;  %v3181_v22 = vpop.f32.mrf.mxu1 }
 0x9b2   :  { %v3141_v6 = vpop.f32.mrf.mxu0  ;;  %v3182_v24 = vpop.f32.mrf.mxu1 }
 0x9cc   :  { %v3218_v57 = vpop.f32.mrf.mxu0  ;;  %v3259_v5 = vpop.f32.mrf.mxu1 }
 0x9cd   :  { %v3219_v11 = vadd.f32 %v3218_v57, %v3136_v18  ;;  %v3260_v62 = vadd.f32 %v3259_v5, %v3177_v35 }
 0x9ce   :  { %v3220_v38 = vpop.f32.mrf.mxu0  ;;  %v3261_v21 = vpop.f32.mrf.mxu1 }
 0x9cf   :  { %v3266_v19 = vadd.f32 %v3219_v11, %v7325_v43  ;;  %v3221_v58 = vadd.f32 %v3220_v38, %v3138_v44  ;;  %v3268_v17 = vadd.f32 %v3260_v62, %v7327_v23  ;;  %v3262_v16 = vadd.f32 %v3261_v21, %v3179_v7 }
 0x9d0   :  { %v3222_v49 = vpop.f32.mrf.mxu0  ;;  %v3263_v59 = vpop.f32.mrf.mxu1 }
 0x9d1   :  { %v3575_v4 = vmul.f32 -1.442695, %v3266_v19  ;;  %v3267_v41 = vadd.f32 %v3221_v58, %v7326_v34  ;;  %v3577_v51 = vmul.f32 -1.442695, %v3268_v17  ;;  %v3269_v36 = vadd.f32 %v3262_v16, %v7328_v52 }
 0x9d2   :  { %v3223_v63 = vpop.f32.mrf.mxu0  ;;  %v3264_v15 = vpop.f32.mrf.mxu1 }
 0x9d3   :  { %4021 = vpow2.f32 %v3575_v4  ;;  %v3576_v3 = vmul.f32 -1.442695, %v3267_v41 }
 0x9d5   :  { %4023 = vpow2.f32 %v3576_v3 }
 0x9d6   :  { %4025 = vpow2.f32 %v3577_v51 }
 0x9e0   :  { %v4022_v46 = vpop.eup %4021 }
 0x9e1   :  { %v3279_v43 = vadd.f32 1.0, %v4022_v46 }
 0x9e2   :  { %v4024_v40 = vpop.eup %4023 }
 0x9e3   :  { %4027 = vrcp.f32 %v3279_v43  ;;  %v3280_v26 = vadd.f32 1.0, %v4024_v40  ;;  %v4026_v34 = vpop.eup %4025 }
 0x9e4   :  { %4029 = vtanh.f32 %v3269_v36  ;;  %v3281_v61 = vadd.f32 1.0, %v4026_v34 }
 0x9e5   :  { %4031 = vrcp.f32 %v3280_v26 }
 0x9e6   :  { %4033 = vrcp.f32 %v3281_v61 }
 0x9f0   :  { %v4028_v55 = vpop.eup %4027 }
 0x9f1   :  { %v4030_v30 = vpop.eup %4029 }
 0x9f2   :  { %v4032_v29 = vpop.eup %4031  ;;  %v3290_v23 = vmul.f32 %v4030_v30, %v4028_v55 }
 0x9f3   :  { %v3289_v56 = vmul.f32 %v4032_v29, %v6789_v60  ;;  %v4034_v1 = vpop.eup %4033 }
 0x9f5   :  { %v3291_v0 = vadd.f32 %v3290_v23, %v3289_v56 }
 0x9f7   :  { %4035 = vtanh.f32 %v3291_v0 }
 0xa04   :  { %v4036_v52 = vpop.eup %4035 }
 0xa05   :  { %v3293_v2 = vmul.f32 %v4036_v52, %v4034_v1 }
 0xa07   :  { %v3294_v42 = vpack.c.bf16 %v3293_v2, %v3293_v2 }
 0xa09   :  { %3613 = vmatmul.mubr.bf16.vlgmr.msra.gmra.mxu0 %v3294_v42 }
 0xac9   :  { %v3400_v31 = vpop.f32.mrf.mxu0 }
 0xaca   :  { %v3401_v13 = vadd.f32 %v3578_v8, %v3400_v31 }
 0xacb   :  { %v3614_v10 = vpop.f32.mrf.mxu0 }
 0xacc   :  { %3406 = vst [vmem:[%s6870_s9] sm:$0xff] %v3401_v13 }
 0xacd   :  { %v3403_v60 = vpop.f32.mrf.mxu0 }
 0xacf   :  { %v3615_v54 = vpop.f32.mrf.mxu0 }

</bundles_post_ra>
